<compile_context>
chip_gen: v5e
topology: v5e:2x2
jax: 0.10.0
libtpu: 0.0.40
codegen_flags: <defaults>
</compile_context>

<pallas_src>
import jax
import jax.numpy as jnp
import numpy as np
from jax.experimental import pallas as pl
from jax.experimental.pallas import tpu as pltpu

BN_EPS = 1e-5

# Padded input geometry (28x28 input, padding=1 on conv1a).
_PH = 30
_PW = 30


def _flat_len(vh, vw, rs, cs):
    """Flat length needed for a (vh x vw) valid lattice with strides (rs, cs)."""
    return (vh - 1) * rs + (vw - 1) * cs + 1


def _final_geometry():
    """Valid lattice (vh, vw), strides (rs, cs) and flat length after conv4."""
    vh, vw, rs, cs = _PH, _PW, _PW, 1
    vh, vw = vh - 2, vw - 2                                # conv1a
    vh, vw = vh - 2, vw - 2                                # conv1b
    vh, vw, rs, cs = vh // 2, vw // 2, 2 * rs, 2 * cs      # maxpool 2x2
    for _ in range(5):                                     # conv2a..conv4
        vh, vw = vh - 2, vw - 2
    return vh, vw, rs, cs, _flat_len(vh, vw, rs, cs)


def _gap_mask():
    """(1, 1, L_final) mask of valid lattice positions * 1/(vh*vw)."""
    vh, vw, rs, cs, L = _final_geometry()
    m = np.zeros((1, 1, L), np.float32)
    inv = 1.0 / float(vh * vw)
    for i in range(vh):
        for j in range(vw):
            m[0, 0, i * rs + j * cs] = inv
    return jnp.asarray(m)


# --------------------------------------------------------------------------
# Single fused kernel: conv1 .. conv4 + global avg pool + log_softmax.
# Activations are SSA values (compiler keeps them in vregs / VMEM).
# Layout inside the kernel: (B, C, flat_spatial)  -> spatial on lanes.
# --------------------------------------------------------------------------
def _make_fused_kernel(B):
    f32 = jnp.float32

    def kernel(x_ref,
               w1a_ref,
               w1b_ref, b1b_ref, s1b_ref, t1b_ref,
               w1c_ref,
               w2a_ref,
               w2b_ref, b2b_ref,
               w3a_ref, b3a_ref,
               w3b_ref, b3b_ref,
               w4_ref, b4_ref,
               gmask_ref,
               o_ref):

        def conv3x3(x, w_ref, b_ref, cin, cout, vh, vw, rs, cs):
            # x: (B, cin, L_in) flat activation on a (vh, vw) valid lattice
            # with strides (rs, cs).  Returns ((B, cout, L_out), vh-2, vw-2, L_out).
            assert x.shape == (B, cin, _flat_len(vh, vw, rs, cs))
            ovh, ovw = vh - 2, vw - 2
            lout = _flat_len(ovh, ovw, rs, cs)
            if b_ref is None:
                acc = jnp.zeros((B, cout, lout), f32)
            else:
                # Folded-BN bias seeds the accumulator (spatially constant).
                acc = jnp.broadcast_to(b_ref[...], (B, cout, lout))
            for kh in range(3):
                for kw in range(3):
                    st = kh * rs + kw * cs
                    xs = x[:, :, st:st + lout]            # (B, cin, lout)
                    wt = w_ref[kh, kw, :, :]              # (cout, cin)
                    if cin == 1:
                        # VPU broadcast-multiply: avoid K=1 MXU matmuls.
                        acc = acc + xs * wt               # -> (B, cout, lout)
                    else:
                        wb = jnp.broadcast_to(wt, (B, cout, cin))
                        acc = acc + jnp.einsum(
                            'bdc,bcl->bdl', wb, xs,
                            preferred_element_type=f32)
            return acc, ovh, ovw, lout

        relu = lambda v: jnp.maximum(v, 0.0)

        x0 = x_ref[...].astype(f32)                       # (B, 1, 900)

        # ---------------- conv1 block ----------------
        rs, cs = _PW, 1
        a, vh, vw, L = conv3x3(x0, w1a_ref, None, 1, 8, _PH, _PW, rs, cs)
        a = relu(a)                                       # (B, 8, 838)  [BN1a folded fwd]
        a, vh, vw, L = conv3x3(a, w1b_ref, b1b_ref, 8, 16, vh, vw, rs, cs)
        a = relu(a) * s1b_ref[...] + t1b_ref[...]         # (B, 16, 776) BN1b explicit

        # MaxPool2d(2,2): two shifted-slice maxes (rows, then columns).
        lr = _flat_len(vh - 1, vw, rs, cs)                # 746
        lp = _flat_len(vh - 1, vw - 1, rs, cs)            # 745
        rmax = jnp.maximum(a[:, :, 0:lr], a[:, :, rs:rs + lr])
        a = jnp.maximum(rmax[:, :, 0:lp], rmax[:, :, cs:cs + lp])
        vh, vw = vh // 2, vw // 2                         # 13 x 13
        rs, cs = 2 * rs, 2 * cs                           # lattice (60, 2)

        # 1x1 conv 16 -> 8 (pointwise over the whole flat slab).
        w1c_b = jnp.broadcast_to(w1c_ref[...], (B, 8, 16))
        a = jnp.einsum('bdc,bcl->bdl', w1c_b, a,
                       preferred_element_type=f32)        # (B, 8, 745)

        # ---------------- conv2 block ----------------
        a, vh, vw, L = conv3x3(a, w2a_ref, None, 8, 8, vh, vw, rs, cs)
        a = relu(a)                                       # (B, 8, 621)  [BN2a folded fwd]
        a, vh, vw, L = conv3x3(a, w2b_ref, b2b_ref, 8, 8, vh, vw, rs, cs)
        a = relu(a)                                       # (B, 8, 497)  [BN2b folded fwd]

        # ---------------- conv3 block ----------------
        a, vh, vw, L = conv3x3(a, w3a_ref, b3a_ref, 8, 16, vh, vw, rs, cs)
        a = relu(a)                                       # (B, 16, 373) [BN3a folded fwd]
        a, vh, vw, L = conv3x3(a, w3b_ref, b3b_ref, 16, 10, vh, vw, rs, cs)
        a = relu(a)                                       # (B, 10, 249) [BN3b folded fwd]

        # -------- conv4 + AdaptiveAvgPool2d((1,1)) + log_softmax --------
        a, vh, vw, L = conv3x3(a, w4_ref, b4_ref, 10, 10, vh, vw, rs, cs)
        # gmask already contains the 1/(vh*vw) factor and zeros on garbage.
        gap = jnp.sum(a * gmask_ref[...], axis=-1, keepdims=True)   # (B, 10, 1)

        # log_softmax over the class (sublane) axis.
        mx = jnp.max(gap, axis=1, keepdims=True)
        e = jnp.exp(gap - mx)
        lse = jnp.log(jnp.sum(e, axis=1, keepdims=True)) + mx
        o_ref[...] = (gap - lse).astype(o_ref.dtype)      # (B, 10, 1)

    return kernel


# --------------------------------------------------------------------------
# Wrapper: layout glue (NCHW -> flat), BN folding, single pallas_call.
# --------------------------------------------------------------------------
def net_forward(x_nchw, p, block_b=None):
    N = x_nchw.shape[0]
    x = x_nchw.astype(jnp.float32)
    x = jnp.pad(x, ((0, 0), (0, 0), (1, 1), (1, 1)))      # conv1a padding=1
    x = x.reshape(N, 1, _PH * _PW)                        # (N, 1, 900) flat

    if block_b is None:
        # >= 2 grid steps whenever N >= 2 (v7x megacore), up to 8 imgs/step.
        B = min(8, max(1, N // 2))
    else:
        B = block_b
    Npad = ((N + B - 1) // B) * B
    if Npad != N:
        x = jnp.pad(x, ((0, Npad - N), (0, 0), (0, 0)))

    # Kernel-facing parameter layouts: conv weights (KH, KW, Cout, Cin),
    # 1x1 weight (Cout, Cin), biases / BN scale & shift (C, 1).
    def hwoi(w):
        return jnp.transpose(w, (0, 1, 3, 2))

    def col(v):
        return v.reshape(-1, 1)

    def fold(w_hwio, s_prev, t_prev):
        # Fold "y -> s*y + t" (BN of the PREVIOUS layer) into this conv.
        s = s_prev.reshape(1, 1, -1, 1)                   # scale over cin
        wf = hwoi(w_hwio * s)                             # (3, 3, cout, cin)
        b = jnp.einsum('hwio,i->o', w_hwio, t_prev.reshape(-1))
        return wf, b.reshape(-1, 1)                       # bias (cout, 1)

    w1b_f, b1b = fold(p["w1b"], p["s1a"], p["t1a"])
    w2b_f, b2b = fold(p["w2b"], p["s2a"], p["t2a"])
    w3a_f, b3a = fold(p["w3a"], p["s2b"], p["t2b"])
    w3b_f, b3b = fold(p["w3b"], p["s3a"], p["t3a"])
    w4_f, b4 = fold(p["w4"], p["s3b"], p["t3b"])

    weight_args = (
        hwoi(p["w1a"]),
        w1b_f, b1b, col(p["s1b"]), col(p["t1b"]),
        p["w1c"].T,
        hwoi(p["w2a"]),
        w2b_f, b2b,
        w3a_f, b3a,
        w3b_f, b3b,
        w4_f, b4,
        _gap_mask(),
    )

    def replicated_spec(a):
        zeros = (0,) * a.ndim
        return pl.BlockSpec(a.shape, lambda b, _z=zeros: _z)

    in_specs = [pl.BlockSpec((B, 1, _PH * _PW), lambda b: (b, 0, 0))]
    in_specs += [replicated_spec(a) for a in weight_args]

    out = pl.pallas_call(
        _make_fused_kernel(B),
        out_shape=jax.ShapeDtypeStruct((Npad, 10, 1), jnp.float32),
        grid=(Npad // B,),
        in_specs=in_specs,
        out_specs=pl.BlockSpec((B, 10, 1), lambda b: (b, 0, 0)),
        compiler_params=pltpu.CompilerParams(
            dimension_semantics=("parallel",)),
    )(x, *weight_args)
    return out.reshape(Npad, 10)[:N]


# --------------------------------------------------------------------------
# Deterministic parameter construction (shapes from the module's __init__).
# --------------------------------------------------------------------------
def _conv_w(key, kh, kw, cin, cout):
    bound = 1.0 / np.sqrt(cin * kh * kw)
    return jax.random.uniform(key, (kh, kw, cin, cout), jnp.float32, -bound, bound)


def _bn_fold(key, c):
    k1, k2, k3, k4 = jax.random.split(key, 4)
    gamma = 1.0 + 0.1 * jax.random.normal(k1, (c,), jnp.float32)
    beta = 0.1 * jax.random.normal(k2, (c,), jnp.float32)
    mean = 0.1 * jax.random.normal(k3, (c,), jnp.float32)
    var = 1.0 + 0.2 * jax.random.uniform(k4, (c,), jnp.float32)
    scale = gamma * jax.lax.rsqrt(var + BN_EPS)
    shift = beta - mean * scale
    return scale.reshape(1, c), shift.reshape(1, c)


def init_params(key):
    ks = jax.random.split(key, 16)
    p = {}
    p["w1a"] = _conv_w(ks[0], 3, 3, 1, 8)
    p["s1a"], p["t1a"] = _bn_fold(ks[1], 8)
    p["w1b"] = _conv_w(ks[2], 3, 3, 8, 16)
    p["s1b"], p["t1b"] = _bn_fold(ks[3], 16)
    p["w1c"] = _conv_w(ks[4], 1, 1, 16, 8).reshape(16, 8)      # 1x1 conv
    p["w2a"] = _conv_w(ks[5], 3, 3, 8, 8)
    p["s2a"], p["t2a"] = _bn_fold(ks[6], 8)
    p["w2b"] = _conv_w(ks[7], 3, 3, 8, 8)
    p["s2b"], p["t2b"] = _bn_fold(ks[8], 8)
    p["w3a"] = _conv_w(ks[9], 3, 3, 8, 16)
    p["s3a"], p["t3a"] = _bn_fold(ks[10], 16)
    p["w3b"] = _conv_w(ks[11], 3, 3, 16, 10)
    p["s3b"], p["t3b"] = _bn_fold(ks[12], 10)
    p["w4"] = _conv_w(ks[13], 3, 3, 10, 10)
    return p


# --------------------------------------------------------------------------
# Pure-JAX reference (sanity check of the fused kernel; unfolded math).
# --------------------------------------------------------------------------
def _ref_conv(x, w):
    return jax.lax.conv_general_dilated(
        x, w, window_strides=(1, 1), padding="VALID",
        dimension_numbers=("NHWC", "HWIO", "NHWC"),
        precision=jax.lax.Precision.HIGHEST)


def net_reference(x_nchw, p):
    x = jnp.transpose(x_nchw, (0, 2, 3, 1)).astype(jnp.float32)

    def crb(x, w, s, t):
        y = jnp.maximum(_ref_conv(x, w), 0.0)
        return y * s.reshape(1, 1, 1, -1) + t.reshape(1, 1, 1, -1)

    xp = jnp.pad(x, ((0, 0), (1, 1), (1, 1), (0, 0)))
    x = crb(xp, p["w1a"], p["s1a"], p["t1a"])
    x = crb(x, p["w1b"], p["s1b"], p["t1b"])
    x = jax.lax.reduce_window(x, -jnp.inf, jax.lax.max,
                              (1, 2, 2, 1), (1, 2, 2, 1), "VALID")
    x = jnp.einsum("nhwc,cd->nhwd", x, p["w1c"],
                   precision=jax.lax.Precision.HIGHEST)
    x = crb(x, p["w2a"], p["s2a"], p["t2a"])
    x = crb(x, p["w2b"], p["s2b"], p["t2b"])
    x = crb(x, p["w3a"], p["s3a"], p["t3a"])
    x = crb(x, p["w3b"], p["s3b"], p["t3b"])
    x = _ref_conv(x, p["w4"])
    x = jnp.mean(x, axis=(1, 2))                                  # (N, 10)
    return jax.nn.log_softmax(x, axis=1)


if __name__ == "__main__":
    key = jax.random.PRNGKey(0)
    kp, kx = jax.random.split(key)
    params = init_params(kp)
    # Input consistent with the module: N=2 images, 1 channel, 28x28 (NCHW).
    x = jax.random.normal(kx, (2, 1, 28, 28), jnp.float32)

    out = jax.jit(net_forward)(x, params)
    out = jax.block_until_ready(out)
    assert out.shape == (2, 10)

    ref = np.asarray(net_reference(x, params))
    np.testing.assert_allclose(np.asarray(out), ref, atol=3e-2, rtol=3e-2)
    print("KERNEL_OK")
</pallas_src>

<mosaic_0001>
module attributes {stable_mosaic.version = 11 : i64} {
  func.func @kernel(%arg0: i32, %arg1: memref<1x1x900xf32, #tpu.memory_space<vmem>>, %arg2: memref<3x3x8x1xf32, #tpu.memory_space<vmem>>, %arg3: memref<3x3x16x8xf32, #tpu.memory_space<vmem>>, %arg4: memref<16x1xf32, #tpu.memory_space<vmem>>, %arg5: memref<16x1xf32, #tpu.memory_space<vmem>>, %arg6: memref<16x1xf32, #tpu.memory_space<vmem>>, %arg7: memref<8x16xf32, #tpu.memory_space<vmem>>, %arg8: memref<3x3x8x8xf32, #tpu.memory_space<vmem>>, %arg9: memref<3x3x8x8xf32, #tpu.memory_space<vmem>>, %arg10: memref<8x1xf32, #tpu.memory_space<vmem>>, %arg11: memref<3x3x16x8xf32, #tpu.memory_space<vmem>>, %arg12: memref<16x1xf32, #tpu.memory_space<vmem>>, %arg13: memref<3x3x10x16xf32, #tpu.memory_space<vmem>>, %arg14: memref<10x1xf32, #tpu.memory_space<vmem>>, %arg15: memref<3x3x10x10xf32, #tpu.memory_space<vmem>>, %arg16: memref<10x1xf32, #tpu.memory_space<vmem>>, %arg17: memref<1x1x125xf32, #tpu.memory_space<vmem>>, %arg18: memref<1x10x1xf32, #tpu.memory_space<vmem>>) attributes {dimension_semantics = [#tpu.dimension_semantics<parallel>], iteration_bounds = array<i64: 2>, scalar_prefetch = 0 : i64, scratch_operands = 0 : i64, tpu.core_type = #tpu.core_type<tc>, window_params = [{transform_indices = @transform_0, window_bounds = array<i64: 1, 1, 900>}, {pipeline_mode = #tpu.pipeline_mode<synchronous>, transform_indices = @transform_1, window_bounds = array<i64: 3, 3, 8, 1>}, {pipeline_mode = #tpu.pipeline_mode<synchronous>, transform_indices = @transform_2, window_bounds = array<i64: 3, 3, 16, 8>}, {pipeline_mode = #tpu.pipeline_mode<synchronous>, transform_indices = @transform_3, window_bounds = array<i64: 16, 1>}, {pipeline_mode = #tpu.pipeline_mode<synchronous>, transform_indices = @transform_4, window_bounds = array<i64: 16, 1>}, {pipeline_mode = #tpu.pipeline_mode<synchronous>, transform_indices = @transform_5, window_bounds = array<i64: 16, 1>}, {pipeline_mode = #tpu.pipeline_mode<synchronous>, transform_indices = @transform_6, window_bounds = array<i64: 8, 16>}, {pipeline_mode = #tpu.pipeline_mode<synchronous>, transform_indices = @transform_7, window_bounds = array<i64: 3, 3, 8, 8>}, {pipeline_mode = #tpu.pipeline_mode<synchronous>, transform_indices = @transform_8, window_bounds = array<i64: 3, 3, 8, 8>}, {pipeline_mode = #tpu.pipeline_mode<synchronous>, transform_indices = @transform_9, window_bounds = array<i64: 8, 1>}, {pipeline_mode = #tpu.pipeline_mode<synchronous>, transform_indices = @transform_10, window_bounds = array<i64: 3, 3, 16, 8>}, {pipeline_mode = #tpu.pipeline_mode<synchronous>, transform_indices = @transform_11, window_bounds = array<i64: 16, 1>}, {pipeline_mode = #tpu.pipeline_mode<synchronous>, transform_indices = @transform_12, window_bounds = array<i64: 3, 3, 10, 16>}, {pipeline_mode = #tpu.pipeline_mode<synchronous>, transform_indices = @transform_13, window_bounds = array<i64: 10, 1>}, {pipeline_mode = #tpu.pipeline_mode<synchronous>, transform_indices = @transform_14, window_bounds = array<i64: 3, 3, 10, 10>}, {pipeline_mode = #tpu.pipeline_mode<synchronous>, transform_indices = @transform_15, window_bounds = array<i64: 10, 1>}, {pipeline_mode = #tpu.pipeline_mode<synchronous>, transform_indices = @transform_16, window_bounds = array<i64: 1, 1, 125>}, {transform_indices = @transform_17, window_bounds = array<i64: 1, 10, 1>}]} {
    %c0 = arith.constant 0 : index
    %c0_0 = arith.constant 0 : index
    %c0_1 = arith.constant 0 : index
    %0 = vector.load %arg1[%c0, %c0_0, %c0_1] : memref<1x1x900xf32, #tpu.memory_space<vmem>>, vector<1x1x900xf32>
    %cst = arith.constant 0.000000e+00 : f32
    %1 = vector.broadcast %cst : f32 to vector<1x8x838xf32>
    %2 = vector.extract_strided_slice %0 {offsets = [0, 0, 0], sizes = [1, 1, 838], strides = [1, 1, 1]} : vector<1x1x900xf32> to vector<1x1x838xf32>
    %c0_2 = arith.constant 0 : index
    %c0_3 = arith.constant 0 : index
    %c0_4 = arith.constant 0 : index
    %c0_5 = arith.constant 0 : index
    %3 = vector.load %arg2[%c0_2, %c0_3, %c0_4, %c0_5] : memref<3x3x8x1xf32, #tpu.memory_space<vmem>>, vector<1x1x8x1xf32>
    %4 = vector.shape_cast %3 : vector<1x1x8x1xf32> to vector<8x1xf32>
    %5 = vector.shape_cast %4 : vector<8x1xf32> to vector<1x8x1xf32>
    %6 = vector.broadcast %2 : vector<1x1x838xf32> to vector<1x8x838xf32>
    %7 = vector.broadcast %5 : vector<1x8x1xf32> to vector<1x8x838xf32>
    %8 = arith.mulf %6, %7 : vector<1x8x838xf32>
    %9 = arith.addf %1, %8 : vector<1x8x838xf32>
    %10 = vector.extract_strided_slice %0 {offsets = [0, 0, 1], sizes = [1, 1, 838], strides = [1, 1, 1]} : vector<1x1x900xf32> to vector<1x1x838xf32>
    %c0_6 = arith.constant 0 : index
    %c1 = arith.constant 1 : index
    %c0_7 = arith.constant 0 : index
    %c0_8 = arith.constant 0 : index
    %11 = vector.load %arg2[%c0_6, %c1, %c0_7, %c0_8] : memref<3x3x8x1xf32, #tpu.memory_space<vmem>>, vector<1x1x8x1xf32>
    %12 = vector.shape_cast %11 : vector<1x1x8x1xf32> to vector<8x1xf32>
    %13 = vector.shape_cast %12 : vector<8x1xf32> to vector<1x8x1xf32>
    %14 = vector.broadcast %10 : vector<1x1x838xf32> to vector<1x8x838xf32>
    %15 = vector.broadcast %13 : vector<1x8x1xf32> to vector<1x8x838xf32>
    %16 = arith.mulf %14, %15 : vector<1x8x838xf32>
    %17 = arith.addf %9, %16 : vector<1x8x838xf32>
    %18 = vector.extract_strided_slice %0 {offsets = [0, 0, 2], sizes = [1, 1, 838], strides = [1, 1, 1]} : vector<1x1x900xf32> to vector<1x1x838xf32>
    %c0_9 = arith.constant 0 : index
    %c2 = arith.constant 2 : index
    %c0_10 = arith.constant 0 : index
    %c0_11 = arith.constant 0 : index
    %19 = vector.load %arg2[%c0_9, %c2, %c0_10, %c0_11] : memref<3x3x8x1xf32, #tpu.memory_space<vmem>>, vector<1x1x8x1xf32>
    %20 = vector.shape_cast %19 : vector<1x1x8x1xf32> to vector<8x1xf32>
    %21 = vector.shape_cast %20 : vector<8x1xf32> to vector<1x8x1xf32>
    %22 = vector.broadcast %18 : vector<1x1x838xf32> to vector<1x8x838xf32>
    %23 = vector.broadcast %21 : vector<1x8x1xf32> to vector<1x8x838xf32>
    %24 = arith.mulf %22, %23 : vector<1x8x838xf32>
    %25 = arith.addf %17, %24 : vector<1x8x838xf32>
    %26 = vector.extract_strided_slice %0 {offsets = [0, 0, 30], sizes = [1, 1, 838], strides = [1, 1, 1]} : vector<1x1x900xf32> to vector<1x1x838xf32>
    %c1_12 = arith.constant 1 : index
    %c0_13 = arith.constant 0 : index
    %c0_14 = arith.constant 0 : index
    %c0_15 = arith.constant 0 : index
    %27 = vector.load %arg2[%c1_12, %c0_13, %c0_14, %c0_15] : memref<3x3x8x1xf32, #tpu.memory_space<vmem>>, vector<1x1x8x1xf32>
    %28 = vector.shape_cast %27 : vector<1x1x8x1xf32> to vector<8x1xf32>
    %29 = vector.shape_cast %28 : vector<8x1xf32> to vector<1x8x1xf32>
    %30 = vector.broadcast %26 : vector<1x1x838xf32> to vector<1x8x838xf32>
    %31 = vector.broadcast %29 : vector<1x8x1xf32> to vector<1x8x838xf32>
    %32 = arith.mulf %30, %31 : vector<1x8x838xf32>
    %33 = arith.addf %25, %32 : vector<1x8x838xf32>
    %34 = vector.extract_strided_slice %0 {offsets = [0, 0, 31], sizes = [1, 1, 838], strides = [1, 1, 1]} : vector<1x1x900xf32> to vector<1x1x838xf32>
    %c1_16 = arith.constant 1 : index
    %c1_17 = arith.constant 1 : index
    %c0_18 = arith.constant 0 : index
    %c0_19 = arith.constant 0 : index
    %35 = vector.load %arg2[%c1_16, %c1_17, %c0_18, %c0_19] : memref<3x3x8x1xf32, #tpu.memory_space<vmem>>, vector<1x1x8x1xf32>
    %36 = vector.shape_cast %35 : vector<1x1x8x1xf32> to vector<8x1xf32>
    %37 = vector.shape_cast %36 : vector<8x1xf32> to vector<1x8x1xf32>
    %38 = vector.broadcast %34 : vector<1x1x838xf32> to vector<1x8x838xf32>
    %39 = vector.broadcast %37 : vector<1x8x1xf32> to vector<1x8x838xf32>
    %40 = arith.mulf %38, %39 : vector<1x8x838xf32>
    %41 = arith.addf %33, %40 : vector<1x8x838xf32>
    %42 = vector.extract_strided_slice %0 {offsets = [0, 0, 32], sizes = [1, 1, 838], strides = [1, 1, 1]} : vector<1x1x900xf32> to vector<1x1x838xf32>
    %c1_20 = arith.constant 1 : index
    %c2_21 = arith.constant 2 : index
    %c0_22 = arith.constant 0 : index
    %c0_23 = arith.constant 0 : index
    %43 = vector.load %arg2[%c1_20, %c2_21, %c0_22, %c0_23] : memref<3x3x8x1xf32, #tpu.memory_space<vmem>>, vector<1x1x8x1xf32>
    %44 = vector.shape_cast %43 : vector<1x1x8x1xf32> to vector<8x1xf32>
    %45 = vector.shape_cast %44 : vector<8x1xf32> to vector<1x8x1xf32>
    %46 = vector.broadcast %42 : vector<1x1x838xf32> to vector<1x8x838xf32>
    %47 = vector.broadcast %45 : vector<1x8x1xf32> to vector<1x8x838xf32>
    %48 = arith.mulf %46, %47 : vector<1x8x838xf32>
    %49 = arith.addf %41, %48 : vector<1x8x838xf32>
    %50 = vector.extract_strided_slice %0 {offsets = [0, 0, 60], sizes = [1, 1, 838], strides = [1, 1, 1]} : vector<1x1x900xf32> to vector<1x1x838xf32>
    %c2_24 = arith.constant 2 : index
    %c0_25 = arith.constant 0 : index
    %c0_26 = arith.constant 0 : index
    %c0_27 = arith.constant 0 : index
    %51 = vector.load %arg2[%c2_24, %c0_25, %c0_26, %c0_27] : memref<3x3x8x1xf32, #tpu.memory_space<vmem>>, vector<1x1x8x1xf32>
    %52 = vector.shape_cast %51 : vector<1x1x8x1xf32> to vector<8x1xf32>
    %53 = vector.shape_cast %52 : vector<8x1xf32> to vector<1x8x1xf32>
    %54 = vector.broadcast %50 : vector<1x1x838xf32> to vector<1x8x838xf32>
    %55 = vector.broadcast %53 : vector<1x8x1xf32> to vector<1x8x838xf32>
    %56 = arith.mulf %54, %55 : vector<1x8x838xf32>
    %57 = arith.addf %49, %56 : vector<1x8x838xf32>
    %58 = vector.extract_strided_slice %0 {offsets = [0, 0, 61], sizes = [1, 1, 838], strides = [1, 1, 1]} : vector<1x1x900xf32> to vector<1x1x838xf32>
    %c2_28 = arith.constant 2 : index
    %c1_29 = arith.constant 1 : index
    %c0_30 = arith.constant 0 : index
    %c0_31 = arith.constant 0 : index
    %59 = vector.load %arg2[%c2_28, %c1_29, %c0_30, %c0_31] : memref<3x3x8x1xf32, #tpu.memory_space<vmem>>, vector<1x1x8x1xf32>
    %60 = vector.shape_cast %59 : vector<1x1x8x1xf32> to vector<8x1xf32>
    %61 = vector.shape_cast %60 : vector<8x1xf32> to vector<1x8x1xf32>
    %62 = vector.broadcast %58 : vector<1x1x838xf32> to vector<1x8x838xf32>
    %63 = vector.broadcast %61 : vector<1x8x1xf32> to vector<1x8x838xf32>
    %64 = arith.mulf %62, %63 : vector<1x8x838xf32>
    %65 = arith.addf %57, %64 : vector<1x8x838xf32>
    %66 = vector.extract_strided_slice %0 {offsets = [0, 0, 62], sizes = [1, 1, 838], strides = [1, 1, 1]} : vector<1x1x900xf32> to vector<1x1x838xf32>
    %c2_32 = arith.constant 2 : index
    %c2_33 = arith.constant 2 : index
    %c0_34 = arith.constant 0 : index
    %c0_35 = arith.constant 0 : index
    %67 = vector.load %arg2[%c2_32, %c2_33, %c0_34, %c0_35] : memref<3x3x8x1xf32, #tpu.memory_space<vmem>>, vector<1x1x8x1xf32>
    %68 = vector.shape_cast %67 : vector<1x1x8x1xf32> to vector<8x1xf32>
    %69 = vector.shape_cast %68 : vector<8x1xf32> to vector<1x8x1xf32>
    %70 = vector.broadcast %66 : vector<1x1x838xf32> to vector<1x8x838xf32>
    %71 = vector.broadcast %69 : vector<1x8x1xf32> to vector<1x8x838xf32>
    %72 = arith.mulf %70, %71 : vector<1x8x838xf32>
    %73 = arith.addf %65, %72 : vector<1x8x838xf32>
    %cst_36 = arith.constant 0.000000e+00 : f32
    %74 = vector.broadcast %cst_36 : f32 to vector<1x8x838xf32>
    %75 = arith.maximumf %73, %74 : vector<1x8x838xf32>
    %c0_37 = arith.constant 0 : index
    %c0_38 = arith.constant 0 : index
    %76 = vector.load %arg4[%c0_37, %c0_38] : memref<16x1xf32, #tpu.memory_space<vmem>>, vector<16x1xf32>
    %77 = vector.shape_cast %76 : vector<16x1xf32> to vector<1x16x1xf32>
    %78 = vector.broadcast %77 : vector<1x16x1xf32> to vector<1x16x776xf32>
    %79 = vector.extract_strided_slice %75 {offsets = [0, 0, 0], sizes = [1, 8, 776], strides = [1, 1, 1]} : vector<1x8x838xf32> to vector<1x8x776xf32>
    %c0_39 = arith.constant 0 : index
    %c0_40 = arith.constant 0 : index
    %c0_41 = arith.constant 0 : index
    %c0_42 = arith.constant 0 : index
    %80 = vector.load %arg3[%c0_39, %c0_40, %c0_41, %c0_42] : memref<3x3x16x8xf32, #tpu.memory_space<vmem>>, vector<1x1x16x8xf32>
    %81 = vector.shape_cast %80 : vector<1x1x16x8xf32> to vector<16x8xf32>
    %82 = vector.shape_cast %81 : vector<16x8xf32> to vector<1x16x8xf32>
    "tpu.trace_start"() <{level = 10 : i32, message = "bdc,bcl->bdl"}> : () -> ()
    %cst_43 = arith.constant dense<0.000000e+00> : vector<1x16x776xf32>
    %83 = tpu.matmul %82, %79, %cst_43 {dimension_numbers = #tpu.dot_dimension_numbers<[2], [1], [1], [2], [0, 0, 0, 1, 1, 2], [0], [0]>} : vector<1x16x8xf32>, vector<1x8x776xf32>, vector<1x16x776xf32> -> vector<1x16x776xf32>
    "tpu.trace_stop"() : () -> ()
    %84 = arith.addf %78, %83 : vector<1x16x776xf32>
    %85 = vector.extract_strided_slice %75 {offsets = [0, 0, 1], sizes = [1, 8, 776], strides = [1, 1, 1]} : vector<1x8x838xf32> to vector<1x8x776xf32>
    %c0_44 = arith.constant 0 : index
    %c1_45 = arith.constant 1 : index
    %c0_46 = arith.constant 0 : index
    %c0_47 = arith.constant 0 : index
    %86 = vector.load %arg3[%c0_44, %c1_45, %c0_46, %c0_47] : memref<3x3x16x8xf32, #tpu.memory_space<vmem>>, vector<1x1x16x8xf32>
    %87 = vector.shape_cast %86 : vector<1x1x16x8xf32> to vector<16x8xf32>
    %88 = vector.shape_cast %87 : vector<16x8xf32> to vector<1x16x8xf32>
    "tpu.trace_start"() <{level = 10 : i32, message = "bdc,bcl->bdl"}> : () -> ()
    %cst_48 = arith.constant dense<0.000000e+00> : vector<1x16x776xf32>
    %89 = tpu.matmul %88, %85, %cst_48 {dimension_numbers = #tpu.dot_dimension_numbers<[2], [1], [1], [2], [0, 0, 0, 1, 1, 2], [0], [0]>} : vector<1x16x8xf32>, vector<1x8x776xf32>, vector<1x16x776xf32> -> vector<1x16x776xf32>
    "tpu.trace_stop"() : () -> ()
    %90 = arith.addf %84, %89 : vector<1x16x776xf32>
    %91 = vector.extract_strided_slice %75 {offsets = [0, 0, 2], sizes = [1, 8, 776], strides = [1, 1, 1]} : vector<1x8x838xf32> to vector<1x8x776xf32>
    %c0_49 = arith.constant 0 : index
    %c2_50 = arith.constant 2 : index
    %c0_51 = arith.constant 0 : index
    %c0_52 = arith.constant 0 : index
    %92 = vector.load %arg3[%c0_49, %c2_50, %c0_51, %c0_52] : memref<3x3x16x8xf32, #tpu.memory_space<vmem>>, vector<1x1x16x8xf32>
    %93 = vector.shape_cast %92 : vector<1x1x16x8xf32> to vector<16x8xf32>
    %94 = vector.shape_cast %93 : vector<16x8xf32> to vector<1x16x8xf32>
    "tpu.trace_start"() <{level = 10 : i32, message = "bdc,bcl->bdl"}> : () -> ()
    %cst_53 = arith.constant dense<0.000000e+00> : vector<1x16x776xf32>
    %95 = tpu.matmul %94, %91, %cst_53 {dimension_numbers = #tpu.dot_dimension_numbers<[2], [1], [1], [2], [0, 0, 0, 1, 1, 2], [0], [0]>} : vector<1x16x8xf32>, vector<1x8x776xf32>, vector<1x16x776xf32> -> vector<1x16x776xf32>
    "tpu.trace_stop"() : () -> ()
    %96 = arith.addf %90, %95 : vector<1x16x776xf32>
    %97 = vector.extract_strided_slice %75 {offsets = [0, 0, 30], sizes = [1, 8, 776], strides = [1, 1, 1]} : vector<1x8x838xf32> to vector<1x8x776xf32>
    %c1_54 = arith.constant 1 : index
    %c0_55 = arith.constant 0 : index
    %c0_56 = arith.constant 0 : index
    %c0_57 = arith.constant 0 : index
    %98 = vector.load %arg3[%c1_54, %c0_55, %c0_56, %c0_57] : memref<3x3x16x8xf32, #tpu.memory_space<vmem>>, vector<1x1x16x8xf32>
    %99 = vector.shape_cast %98 : vector<1x1x16x8xf32> to vector<16x8xf32>
    %100 = vector.shape_cast %99 : vector<16x8xf32> to vector<1x16x8xf32>
    "tpu.trace_start"() <{level = 10 : i32, message = "bdc,bcl->bdl"}> : () -> ()
    %cst_58 = arith.constant dense<0.000000e+00> : vector<1x16x776xf32>
    %101 = tpu.matmul %100, %97, %cst_58 {dimension_numbers = #tpu.dot_dimension_numbers<[2], [1], [1], [2], [0, 0, 0, 1, 1, 2], [0], [0]>} : vector<1x16x8xf32>, vector<1x8x776xf32>, vector<1x16x776xf32> -> vector<1x16x776xf32>
    "tpu.trace_stop"() : () -> ()
    %102 = arith.addf %96, %101 : vector<1x16x776xf32>
    %103 = vector.extract_strided_slice %75 {offsets = [0, 0, 31], sizes = [1, 8, 776], strides = [1, 1, 1]} : vector<1x8x838xf32> to vector<1x8x776xf32>
    %c1_59 = arith.constant 1 : index
    %c1_60 = arith.constant 1 : index
    %c0_61 = arith.constant 0 : index
    %c0_62 = arith.constant 0 : index
    %104 = vector.load %arg3[%c1_59, %c1_60, %c0_61, %c0_62] : memref<3x3x16x8xf32, #tpu.memory_space<vmem>>, vector<1x1x16x8xf32>
    %105 = vector.shape_cast %104 : vector<1x1x16x8xf32> to vector<16x8xf32>
    %106 = vector.shape_cast %105 : vector<16x8xf32> to vector<1x16x8xf32>
    "tpu.trace_start"() <{level = 10 : i32, message = "bdc,bcl->bdl"}> : () -> ()
    %cst_63 = arith.constant dense<0.000000e+00> : vector<1x16x776xf32>
    %107 = tpu.matmul %106, %103, %cst_63 {dimension_numbers = #tpu.dot_dimension_numbers<[2], [1], [1], [2], [0, 0, 0, 1, 1, 2], [0], [0]>} : vector<1x16x8xf32>, vector<1x8x776xf32>, vector<1x16x776xf32> -> vector<1x16x776xf32>
    "tpu.trace_stop"() : () -> ()
    %108 = arith.addf %102, %107 : vector<1x16x776xf32>
    %109 = vector.extract_strided_slice %75 {offsets = [0, 0, 32], sizes = [1, 8, 776], strides = [1, 1, 1]} : vector<1x8x838xf32> to vector<1x8x776xf32>
    %c1_64 = arith.constant 1 : index
    %c2_65 = arith.constant 2 : index
    %c0_66 = arith.constant 0 : index
    %c0_67 = arith.constant 0 : index
    %110 = vector.load %arg3[%c1_64, %c2_65, %c0_66, %c0_67] : memref<3x3x16x8xf32, #tpu.memory_space<vmem>>, vector<1x1x16x8xf32>
    %111 = vector.shape_cast %110 : vector<1x1x16x8xf32> to vector<16x8xf32>
    %112 = vector.shape_cast %111 : vector<16x8xf32> to vector<1x16x8xf32>
    "tpu.trace_start"() <{level = 10 : i32, message = "bdc,bcl->bdl"}> : () -> ()
    %cst_68 = arith.constant dense<0.000000e+00> : vector<1x16x776xf32>
    %113 = tpu.matmul %112, %109, %cst_68 {dimension_numbers = #tpu.dot_dimension_numbers<[2], [1], [1], [2], [0, 0, 0, 1, 1, 2], [0], [0]>} : vector<1x16x8xf32>, vector<1x8x776xf32>, vector<1x16x776xf32> -> vector<1x16x776xf32>
    "tpu.trace_stop"() : () -> ()
    %114 = arith.addf %108, %113 : vector<1x16x776xf32>
    %115 = vector.extract_strided_slice %75 {offsets = [0, 0, 60], sizes = [1, 8, 776], strides = [1, 1, 1]} : vector<1x8x838xf32> to vector<1x8x776xf32>
    %c2_69 = arith.constant 2 : index
    %c0_70 = arith.constant 0 : index
    %c0_71 = arith.constant 0 : index
    %c0_72 = arith.constant 0 : index
    %116 = vector.load %arg3[%c2_69, %c0_70, %c0_71, %c0_72] : memref<3x3x16x8xf32, #tpu.memory_space<vmem>>, vector<1x1x16x8xf32>
    %117 = vector.shape_cast %116 : vector<1x1x16x8xf32> to vector<16x8xf32>
    %118 = vector.shape_cast %117 : vector<16x8xf32> to vector<1x16x8xf32>
    "tpu.trace_start"() <{level = 10 : i32, message = "bdc,bcl->bdl"}> : () -> ()
    %cst_73 = arith.constant dense<0.000000e+00> : vector<1x16x776xf32>
    %119 = tpu.matmul %118, %115, %cst_73 {dimension_numbers = #tpu.dot_dimension_numbers<[2], [1], [1], [2], [0, 0, 0, 1, 1, 2], [0], [0]>} : vector<1x16x8xf32>, vector<1x8x776xf32>, vector<1x16x776xf32> -> vector<1x16x776xf32>
    "tpu.trace_stop"() : () -> ()
    %120 = arith.addf %114, %119 : vector<1x16x776xf32>
    %121 = vector.extract_strided_slice %75 {offsets = [0, 0, 61], sizes = [1, 8, 776], strides = [1, 1, 1]} : vector<1x8x838xf32> to vector<1x8x776xf32>
    %c2_74 = arith.constant 2 : index
    %c1_75 = arith.constant 1 : index
    %c0_76 = arith.constant 0 : index
    %c0_77 = arith.constant 0 : index
    %122 = vector.load %arg3[%c2_74, %c1_75, %c0_76, %c0_77] : memref<3x3x16x8xf32, #tpu.memory_space<vmem>>, vector<1x1x16x8xf32>
    %123 = vector.shape_cast %122 : vector<1x1x16x8xf32> to vector<16x8xf32>
    %124 = vector.shape_cast %123 : vector<16x8xf32> to vector<1x16x8xf32>
    "tpu.trace_start"() <{level = 10 : i32, message = "bdc,bcl->bdl"}> : () -> ()
    %cst_78 = arith.constant dense<0.000000e+00> : vector<1x16x776xf32>
    %125 = tpu.matmul %124, %121, %cst_78 {dimension_numbers = #tpu.dot_dimension_numbers<[2], [1], [1], [2], [0, 0, 0, 1, 1, 2], [0], [0]>} : vector<1x16x8xf32>, vector<1x8x776xf32>, vector<1x16x776xf32> -> vector<1x16x776xf32>
    "tpu.trace_stop"() : () -> ()
    %126 = arith.addf %120, %125 : vector<1x16x776xf32>
    %127 = vector.extract_strided_slice %75 {offsets = [0, 0, 62], sizes = [1, 8, 776], strides = [1, 1, 1]} : vector<1x8x838xf32> to vector<1x8x776xf32>
    %c2_79 = arith.constant 2 : index
    %c2_80 = arith.constant 2 : index
    %c0_81 = arith.constant 0 : index
    %c0_82 = arith.constant 0 : index
    %128 = vector.load %arg3[%c2_79, %c2_80, %c0_81, %c0_82] : memref<3x3x16x8xf32, #tpu.memory_space<vmem>>, vector<1x1x16x8xf32>
    %129 = vector.shape_cast %128 : vector<1x1x16x8xf32> to vector<16x8xf32>
    %130 = vector.shape_cast %129 : vector<16x8xf32> to vector<1x16x8xf32>
    "tpu.trace_start"() <{level = 10 : i32, message = "bdc,bcl->bdl"}> : () -> ()
    %cst_83 = arith.constant dense<0.000000e+00> : vector<1x16x776xf32>
    %131 = tpu.matmul %130, %127, %cst_83 {dimension_numbers = #tpu.dot_dimension_numbers<[2], [1], [1], [2], [0, 0, 0, 1, 1, 2], [0], [0]>} : vector<1x16x8xf32>, vector<1x8x776xf32>, vector<1x16x776xf32> -> vector<1x16x776xf32>
    "tpu.trace_stop"() : () -> ()
    %132 = arith.addf %126, %131 : vector<1x16x776xf32>
    %cst_84 = arith.constant 0.000000e+00 : f32
    %133 = vector.broadcast %cst_84 : f32 to vector<1x16x776xf32>
    %134 = arith.maximumf %132, %133 : vector<1x16x776xf32>
    %c0_85 = arith.constant 0 : index
    %c0_86 = arith.constant 0 : index
    %135 = vector.load %arg5[%c0_85, %c0_86] : memref<16x1xf32, #tpu.memory_space<vmem>>, vector<16x1xf32>
    %136 = vector.shape_cast %135 : vector<16x1xf32> to vector<1x16x1xf32>
    %137 = vector.broadcast %136 : vector<1x16x1xf32> to vector<1x16x776xf32>
    %138 = arith.mulf %134, %137 : vector<1x16x776xf32>
    %c0_87 = arith.constant 0 : index
    %c0_88 = arith.constant 0 : index
    %139 = vector.load %arg6[%c0_87, %c0_88] : memref<16x1xf32, #tpu.memory_space<vmem>>, vector<16x1xf32>
    %140 = vector.shape_cast %139 : vector<16x1xf32> to vector<1x16x1xf32>
    %141 = vector.broadcast %140 : vector<1x16x1xf32> to vector<1x16x776xf32>
    %142 = arith.addf %138, %141 : vector<1x16x776xf32>
    %143 = vector.extract_strided_slice %142 {offsets = [0, 0, 0], sizes = [1, 16, 746], strides = [1, 1, 1]} : vector<1x16x776xf32> to vector<1x16x746xf32>
    %144 = vector.extract_strided_slice %142 {offsets = [0, 0, 30], sizes = [1, 16, 746], strides = [1, 1, 1]} : vector<1x16x776xf32> to vector<1x16x746xf32>
    %145 = arith.maximumf %143, %144 : vector<1x16x746xf32>
    %146 = vector.extract_strided_slice %145 {offsets = [0, 0, 0], sizes = [1, 16, 745], strides = [1, 1, 1]} : vector<1x16x746xf32> to vector<1x16x745xf32>
    %147 = vector.extract_strided_slice %145 {offsets = [0, 0, 1], sizes = [1, 16, 745], strides = [1, 1, 1]} : vector<1x16x746xf32> to vector<1x16x745xf32>
    %148 = arith.maximumf %146, %147 : vector<1x16x745xf32>
    %c0_89 = arith.constant 0 : index
    %c0_90 = arith.constant 0 : index
    %149 = vector.load %arg7[%c0_89, %c0_90] : memref<8x16xf32, #tpu.memory_space<vmem>>, vector<8x16xf32>
    %150 = vector.shape_cast %149 : vector<8x16xf32> to vector<1x8x16xf32>
    "tpu.trace_start"() <{level = 10 : i32, message = "bdc,bcl->bdl"}> : () -> ()
    %cst_91 = arith.constant dense<0.000000e+00> : vector<1x8x745xf32>
    %151 = tpu.matmul %150, %148, %cst_91 {dimension_numbers = #tpu.dot_dimension_numbers<[2], [1], [1], [2], [0, 0, 0, 1, 1, 2], [0], [0]>} : vector<1x8x16xf32>, vector<1x16x745xf32>, vector<1x8x745xf32> -> vector<1x8x745xf32>
    %cst_92 = arith.constant 0.000000e+00 : f32
    "tpu.trace_stop"() : () -> ()
    %152 = vector.broadcast %cst_92 : f32 to vector<1x8x621xf32>
    %153 = vector.extract_strided_slice %151 {offsets = [0, 0, 0], sizes = [1, 8, 621], strides = [1, 1, 1]} : vector<1x8x745xf32> to vector<1x8x621xf32>
    %c0_93 = arith.constant 0 : index
    %c0_94 = arith.constant 0 : index
    %c0_95 = arith.constant 0 : index
    %c0_96 = arith.constant 0 : index
    %154 = vector.load %arg8[%c0_93, %c0_94, %c0_95, %c0_96] : memref<3x3x8x8xf32, #tpu.memory_space<vmem>>, vector<1x1x8x8xf32>
    %155 = vector.shape_cast %154 : vector<1x1x8x8xf32> to vector<8x8xf32>
    %156 = vector.shape_cast %155 : vector<8x8xf32> to vector<1x8x8xf32>
    "tpu.trace_start"() <{level = 10 : i32, message = "bdc,bcl->bdl"}> : () -> ()
    %cst_97 = arith.constant dense<0.000000e+00> : vector<1x8x621xf32>
    %157 = tpu.matmul %156, %153, %cst_97 {dimension_numbers = #tpu.dot_dimension_numbers<[2], [1], [1], [2], [0, 0, 0, 1, 1, 2], [0], [0]>} : vector<1x8x8xf32>, vector<1x8x621xf32>, vector<1x8x621xf32> -> vector<1x8x621xf32>
    "tpu.trace_stop"() : () -> ()
    %158 = arith.addf %152, %157 : vector<1x8x621xf32>
    %159 = vector.extract_strided_slice %151 {offsets = [0, 0, 2], sizes = [1, 8, 621], strides = [1, 1, 1]} : vector<1x8x745xf32> to vector<1x8x621xf32>
    %c0_98 = arith.constant 0 : index
    %c1_99 = arith.constant 1 : index
    %c0_100 = arith.constant 0 : index
    %c0_101 = arith.constant 0 : index
    %160 = vector.load %arg8[%c0_98, %c1_99, %c0_100, %c0_101] : memref<3x3x8x8xf32, #tpu.memory_space<vmem>>, vector<1x1x8x8xf32>
    %161 = vector.shape_cast %160 : vector<1x1x8x8xf32> to vector<8x8xf32>
    %162 = vector.shape_cast %161 : vector<8x8xf32> to vector<1x8x8xf32>
    "tpu.trace_start"() <{level = 10 : i32, message = "bdc,bcl->bdl"}> : () -> ()
    %cst_102 = arith.constant dense<0.000000e+00> : vector<1x8x621xf32>
    %163 = tpu.matmul %162, %159, %cst_102 {dimension_numbers = #tpu.dot_dimension_numbers<[2], [1], [1], [2], [0, 0, 0, 1, 1, 2], [0], [0]>} : vector<1x8x8xf32>, vector<1x8x621xf32>, vector<1x8x621xf32> -> vector<1x8x621xf32>
    "tpu.trace_stop"() : () -> ()
    %164 = arith.addf %158, %163 : vector<1x8x621xf32>
    %165 = vector.extract_strided_slice %151 {offsets = [0, 0, 4], sizes = [1, 8, 621], strides = [1, 1, 1]} : vector<1x8x745xf32> to vector<1x8x621xf32>
    %c0_103 = arith.constant 0 : index
    %c2_104 = arith.constant 2 : index
    %c0_105 = arith.constant 0 : index
    %c0_106 = arith.constant 0 : index
    %166 = vector.load %arg8[%c0_103, %c2_104, %c0_105, %c0_106] : memref<3x3x8x8xf32, #tpu.memory_space<vmem>>, vector<1x1x8x8xf32>
    %167 = vector.shape_cast %166 : vector<1x1x8x8xf32> to vector<8x8xf32>
    %168 = vector.shape_cast %167 : vector<8x8xf32> to vector<1x8x8xf32>
    "tpu.trace_start"() <{level = 10 : i32, message = "bdc,bcl->bdl"}> : () -> ()
    %cst_107 = arith.constant dense<0.000000e+00> : vector<1x8x621xf32>
    %169 = tpu.matmul %168, %165, %cst_107 {dimension_numbers = #tpu.dot_dimension_numbers<[2], [1], [1], [2], [0, 0, 0, 1, 1, 2], [0], [0]>} : vector<1x8x8xf32>, vector<1x8x621xf32>, vector<1x8x621xf32> -> vector<1x8x621xf32>
    "tpu.trace_stop"() : () -> ()
    %170 = arith.addf %164, %169 : vector<1x8x621xf32>
    %171 = vector.extract_strided_slice %151 {offsets = [0, 0, 60], sizes = [1, 8, 621], strides = [1, 1, 1]} : vector<1x8x745xf32> to vector<1x8x621xf32>
    %c1_108 = arith.constant 1 : index
    %c0_109 = arith.constant 0 : index
    %c0_110 = arith.constant 0 : index
    %c0_111 = arith.constant 0 : index
    %172 = vector.load %arg8[%c1_108, %c0_109, %c0_110, %c0_111] : memref<3x3x8x8xf32, #tpu.memory_space<vmem>>, vector<1x1x8x8xf32>
    %173 = vector.shape_cast %172 : vector<1x1x8x8xf32> to vector<8x8xf32>
    %174 = vector.shape_cast %173 : vector<8x8xf32> to vector<1x8x8xf32>
    "tpu.trace_start"() <{level = 10 : i32, message = "bdc,bcl->bdl"}> : () -> ()
    %cst_112 = arith.constant dense<0.000000e+00> : vector<1x8x621xf32>
    %175 = tpu.matmul %174, %171, %cst_112 {dimension_numbers = #tpu.dot_dimension_numbers<[2], [1], [1], [2], [0, 0, 0, 1, 1, 2], [0], [0]>} : vector<1x8x8xf32>, vector<1x8x621xf32>, vector<1x8x621xf32> -> vector<1x8x621xf32>
    "tpu.trace_stop"() : () -> ()
    %176 = arith.addf %170, %175 : vector<1x8x621xf32>
    %177 = vector.extract_strided_slice %151 {offsets = [0, 0, 62], sizes = [1, 8, 621], strides = [1, 1, 1]} : vector<1x8x745xf32> to vector<1x8x621xf32>
    %c1_113 = arith.constant 1 : index
    %c1_114 = arith.constant 1 : index
    %c0_115 = arith.constant 0 : index
    %c0_116 = arith.constant 0 : index
    %178 = vector.load %arg8[%c1_113, %c1_114, %c0_115, %c0_116] : memref<3x3x8x8xf32, #tpu.memory_space<vmem>>, vector<1x1x8x8xf32>
    %179 = vector.shape_cast %178 : vector<1x1x8x8xf32> to vector<8x8xf32>
    %180 = vector.shape_cast %179 : vector<8x8xf32> to vector<1x8x8xf32>
    "tpu.trace_start"() <{level = 10 : i32, message = "bdc,bcl->bdl"}> : () -> ()
    %cst_117 = arith.constant dense<0.000000e+00> : vector<1x8x621xf32>
    %181 = tpu.matmul %180, %177, %cst_117 {dimension_numbers = #tpu.dot_dimension_numbers<[2], [1], [1], [2], [0, 0, 0, 1, 1, 2], [0], [0]>} : vector<1x8x8xf32>, vector<1x8x621xf32>, vector<1x8x621xf32> -> vector<1x8x621xf32>
    "tpu.trace_stop"() : () -> ()
    %182 = arith.addf %176, %181 : vector<1x8x621xf32>
    %183 = vector.extract_strided_slice %151 {offsets = [0, 0, 64], sizes = [1, 8, 621], strides = [1, 1, 1]} : vector<1x8x745xf32> to vector<1x8x621xf32>
    %c1_118 = arith.constant 1 : index
    %c2_119 = arith.constant 2 : index
    %c0_120 = arith.constant 0 : index
    %c0_121 = arith.constant 0 : index
    %184 = vector.load %arg8[%c1_118, %c2_119, %c0_120, %c0_121] : memref<3x3x8x8xf32, #tpu.memory_space<vmem>>, vector<1x1x8x8xf32>
    %185 = vector.shape_cast %184 : vector<1x1x8x8xf32> to vector<8x8xf32>
    %186 = vector.shape_cast %185 : vector<8x8xf32> to vector<1x8x8xf32>
    "tpu.trace_start"() <{level = 10 : i32, message = "bdc,bcl->bdl"}> : () -> ()
    %cst_122 = arith.constant dense<0.000000e+00> : vector<1x8x621xf32>
    %187 = tpu.matmul %186, %183, %cst_122 {dimension_numbers = #tpu.dot_dimension_numbers<[2], [1], [1], [2], [0, 0, 0, 1, 1, 2], [0], [0]>} : vector<1x8x8xf32>, vector<1x8x621xf32>, vector<1x8x621xf32> -> vector<1x8x621xf32>
    "tpu.trace_stop"() : () -> ()
    %188 = arith.addf %182, %187 : vector<1x8x621xf32>
    %189 = vector.extract_strided_slice %151 {offsets = [0, 0, 120], sizes = [1, 8, 621], strides = [1, 1, 1]} : vector<1x8x745xf32> to vector<1x8x621xf32>
    %c2_123 = arith.constant 2 : index
    %c0_124 = arith.constant 0 : index
    %c0_125 = arith.constant 0 : index
    %c0_126 = arith.constant 0 : index
    %190 = vector.load %arg8[%c2_123, %c0_124, %c0_125, %c0_126] : memref<3x3x8x8xf32, #tpu.memory_space<vmem>>, vector<1x1x8x8xf32>
    %191 = vector.shape_cast %190 : vector<1x1x8x8xf32> to vector<8x8xf32>
    %192 = vector.shape_cast %191 : vector<8x8xf32> to vector<1x8x8xf32>
    "tpu.trace_start"() <{level = 10 : i32, message = "bdc,bcl->bdl"}> : () -> ()
    %cst_127 = arith.constant dense<0.000000e+00> : vector<1x8x621xf32>
    %193 = tpu.matmul %192, %189, %cst_127 {dimension_numbers = #tpu.dot_dimension_numbers<[2], [1], [1], [2], [0, 0, 0, 1, 1, 2], [0], [0]>} : vector<1x8x8xf32>, vector<1x8x621xf32>, vector<1x8x621xf32> -> vector<1x8x621xf32>
    "tpu.trace_stop"() : () -> ()
    %194 = arith.addf %188, %193 : vector<1x8x621xf32>
    %195 = vector.extract_strided_slice %151 {offsets = [0, 0, 122], sizes = [1, 8, 621], strides = [1, 1, 1]} : vector<1x8x745xf32> to vector<1x8x621xf32>
    %c2_128 = arith.constant 2 : index
    %c1_129 = arith.constant 1 : index
    %c0_130 = arith.constant 0 : index
    %c0_131 = arith.constant 0 : index
    %196 = vector.load %arg8[%c2_128, %c1_129, %c0_130, %c0_131] : memref<3x3x8x8xf32, #tpu.memory_space<vmem>>, vector<1x1x8x8xf32>
    %197 = vector.shape_cast %196 : vector<1x1x8x8xf32> to vector<8x8xf32>
    %198 = vector.shape_cast %197 : vector<8x8xf32> to vector<1x8x8xf32>
    "tpu.trace_start"() <{level = 10 : i32, message = "bdc,bcl->bdl"}> : () -> ()
    %cst_132 = arith.constant dense<0.000000e+00> : vector<1x8x621xf32>
    %199 = tpu.matmul %198, %195, %cst_132 {dimension_numbers = #tpu.dot_dimension_numbers<[2], [1], [1], [2], [0, 0, 0, 1, 1, 2], [0], [0]>} : vector<1x8x8xf32>, vector<1x8x621xf32>, vector<1x8x621xf32> -> vector<1x8x621xf32>
    "tpu.trace_stop"() : () -> ()
    %200 = arith.addf %194, %199 : vector<1x8x621xf32>
    %201 = vector.extract_strided_slice %151 {offsets = [0, 0, 124], sizes = [1, 8, 621], strides = [1, 1, 1]} : vector<1x8x745xf32> to vector<1x8x621xf32>
    %c2_133 = arith.constant 2 : index
    %c2_134 = arith.constant 2 : index
    %c0_135 = arith.constant 0 : index
    %c0_136 = arith.constant 0 : index
    %202 = vector.load %arg8[%c2_133, %c2_134, %c0_135, %c0_136] : memref<3x3x8x8xf32, #tpu.memory_space<vmem>>, vector<1x1x8x8xf32>
    %203 = vector.shape_cast %202 : vector<1x1x8x8xf32> to vector<8x8xf32>
    %204 = vector.shape_cast %203 : vector<8x8xf32> to vector<1x8x8xf32>
    "tpu.trace_start"() <{level = 10 : i32, message = "bdc,bcl->bdl"}> : () -> ()
    %cst_137 = arith.constant dense<0.000000e+00> : vector<1x8x621xf32>
    %205 = tpu.matmul %204, %201, %cst_137 {dimension_numbers = #tpu.dot_dimension_numbers<[2], [1], [1], [2], [0, 0, 0, 1, 1, 2], [0], [0]>} : vector<1x8x8xf32>, vector<1x8x621xf32>, vector<1x8x621xf32> -> vector<1x8x621xf32>
    "tpu.trace_stop"() : () -> ()
    %206 = arith.addf %200, %205 : vector<1x8x621xf32>
    %cst_138 = arith.constant 0.000000e+00 : f32
    %207 = vector.broadcast %cst_138 : f32 to vector<1x8x621xf32>
    %208 = arith.maximumf %206, %207 : vector<1x8x621xf32>
    %c0_139 = arith.constant 0 : index
    %c0_140 = arith.constant 0 : index
    %209 = vector.load %arg10[%c0_139, %c0_140] : memref<8x1xf32, #tpu.memory_space<vmem>>, vector<8x1xf32>
    %210 = vector.shape_cast %209 : vector<8x1xf32> to vector<1x8x1xf32>
    %211 = vector.broadcast %210 : vector<1x8x1xf32> to vector<1x8x497xf32>
    %212 = vector.extract_strided_slice %208 {offsets = [0, 0, 0], sizes = [1, 8, 497], strides = [1, 1, 1]} : vector<1x8x621xf32> to vector<1x8x497xf32>
    %c0_141 = arith.constant 0 : index
    %c0_142 = arith.constant 0 : index
    %c0_143 = arith.constant 0 : index
    %c0_144 = arith.constant 0 : index
    %213 = vector.load %arg9[%c0_141, %c0_142, %c0_143, %c0_144] : memref<3x3x8x8xf32, #tpu.memory_space<vmem>>, vector<1x1x8x8xf32>
    %214 = vector.shape_cast %213 : vector<1x1x8x8xf32> to vector<8x8xf32>
    %215 = vector.shape_cast %214 : vector<8x8xf32> to vector<1x8x8xf32>
    "tpu.trace_start"() <{level = 10 : i32, message = "bdc,bcl->bdl"}> : () -> ()
    %cst_145 = arith.constant dense<0.000000e+00> : vector<1x8x497xf32>
    %216 = tpu.matmul %215, %212, %cst_145 {dimension_numbers = #tpu.dot_dimension_numbers<[2], [1], [1], [2], [0, 0, 0, 1, 1, 2], [0], [0]>} : vector<1x8x8xf32>, vector<1x8x497xf32>, vector<1x8x497xf32> -> vector<1x8x497xf32>
    "tpu.trace_stop"() : () -> ()
    %217 = arith.addf %211, %216 : vector<1x8x497xf32>
    %218 = vector.extract_strided_slice %208 {offsets = [0, 0, 2], sizes = [1, 8, 497], strides = [1, 1, 1]} : vector<1x8x621xf32> to vector<1x8x497xf32>
    %c0_146 = arith.constant 0 : index
    %c1_147 = arith.constant 1 : index
    %c0_148 = arith.constant 0 : index
    %c0_149 = arith.constant 0 : index
    %219 = vector.load %arg9[%c0_146, %c1_147, %c0_148, %c0_149] : memref<3x3x8x8xf32, #tpu.memory_space<vmem>>, vector<1x1x8x8xf32>
    %220 = vector.shape_cast %219 : vector<1x1x8x8xf32> to vector<8x8xf32>
    %221 = vector.shape_cast %220 : vector<8x8xf32> to vector<1x8x8xf32>
    "tpu.trace_start"() <{level = 10 : i32, message = "bdc,bcl->bdl"}> : () -> ()
    %cst_150 = arith.constant dense<0.000000e+00> : vector<1x8x497xf32>
    %222 = tpu.matmul %221, %218, %cst_150 {dimension_numbers = #tpu.dot_dimension_numbers<[2], [1], [1], [2], [0, 0, 0, 1, 1, 2], [0], [0]>} : vector<1x8x8xf32>, vector<1x8x497xf32>, vector<1x8x497xf32> -> vector<1x8x497xf32>
    "tpu.trace_stop"() : () -> ()
    %223 = arith.addf %217, %222 : vector<1x8x497xf32>
    %224 = vector.extract_strided_slice %208 {offsets = [0, 0, 4], sizes = [1, 8, 497], strides = [1, 1, 1]} : vector<1x8x621xf32> to vector<1x8x497xf32>
    %c0_151 = arith.constant 0 : index
    %c2_152 = arith.constant 2 : index
    %c0_153 = arith.constant 0 : index
    %c0_154 = arith.constant 0 : index
    %225 = vector.load %arg9[%c0_151, %c2_152, %c0_153, %c0_154] : memref<3x3x8x8xf32, #tpu.memory_space<vmem>>, vector<1x1x8x8xf32>
    %226 = vector.shape_cast %225 : vector<1x1x8x8xf32> to vector<8x8xf32>
    %227 = vector.shape_cast %226 : vector<8x8xf32> to vector<1x8x8xf32>
    "tpu.trace_start"() <{level = 10 : i32, message = "bdc,bcl->bdl"}> : () -> ()
    %cst_155 = arith.constant dense<0.000000e+00> : vector<1x8x497xf32>
    %228 = tpu.matmul %227, %224, %cst_155 {dimension_numbers = #tpu.dot_dimension_numbers<[2], [1], [1], [2], [0, 0, 0, 1, 1, 2], [0], [0]>} : vector<1x8x8xf32>, vector<1x8x497xf32>, vector<1x8x497xf32> -> vector<1x8x497xf32>
    "tpu.trace_stop"() : () -> ()
    %229 = arith.addf %223, %228 : vector<1x8x497xf32>
    %230 = vector.extract_strided_slice %208 {offsets = [0, 0, 60], sizes = [1, 8, 497], strides = [1, 1, 1]} : vector<1x8x621xf32> to vector<1x8x497xf32>
    %c1_156 = arith.constant 1 : index
    %c0_157 = arith.constant 0 : index
    %c0_158 = arith.constant 0 : index
    %c0_159 = arith.constant 0 : index
    %231 = vector.load %arg9[%c1_156, %c0_157, %c0_158, %c0_159] : memref<3x3x8x8xf32, #tpu.memory_space<vmem>>, vector<1x1x8x8xf32>
    %232 = vector.shape_cast %231 : vector<1x1x8x8xf32> to vector<8x8xf32>
    %233 = vector.shape_cast %232 : vector<8x8xf32> to vector<1x8x8xf32>
    "tpu.trace_start"() <{level = 10 : i32, message = "bdc,bcl->bdl"}> : () -> ()
    %cst_160 = arith.constant dense<0.000000e+00> : vector<1x8x497xf32>
    %234 = tpu.matmul %233, %230, %cst_160 {dimension_numbers = #tpu.dot_dimension_numbers<[2], [1], [1], [2], [0, 0, 0, 1, 1, 2], [0], [0]>} : vector<1x8x8xf32>, vector<1x8x497xf32>, vector<1x8x497xf32> -> vector<1x8x497xf32>
    "tpu.trace_stop"() : () -> ()
    %235 = arith.addf %229, %234 : vector<1x8x497xf32>
    %236 = vector.extract_strided_slice %208 {offsets = [0, 0, 62], sizes = [1, 8, 497], strides = [1, 1, 1]} : vector<1x8x621xf32> to vector<1x8x497xf32>
    %c1_161 = arith.constant 1 : index
    %c1_162 = arith.constant 1 : index
    %c0_163 = arith.constant 0 : index
    %c0_164 = arith.constant 0 : index
    %237 = vector.load %arg9[%c1_161, %c1_162, %c0_163, %c0_164] : memref<3x3x8x8xf32, #tpu.memory_space<vmem>>, vector<1x1x8x8xf32>
    %238 = vector.shape_cast %237 : vector<1x1x8x8xf32> to vector<8x8xf32>
    %239 = vector.shape_cast %238 : vector<8x8xf32> to vector<1x8x8xf32>
    "tpu.trace_start"() <{level = 10 : i32, message = "bdc,bcl->bdl"}> : () -> ()
    %cst_165 = arith.constant dense<0.000000e+00> : vector<1x8x497xf32>
    %240 = tpu.matmul %239, %236, %cst_165 {dimension_numbers = #tpu.dot_dimension_numbers<[2], [1], [1], [2], [0, 0, 0, 1, 1, 2], [0], [0]>} : vector<1x8x8xf32>, vector<1x8x497xf32>, vector<1x8x497xf32> -> vector<1x8x497xf32>
    "tpu.trace_stop"() : () -> ()
    %241 = arith.addf %235, %240 : vector<1x8x497xf32>
    %242 = vector.extract_strided_slice %208 {offsets = [0, 0, 64], sizes = [1, 8, 497], strides = [1, 1, 1]} : vector<1x8x621xf32> to vector<1x8x497xf32>
    %c1_166 = arith.constant 1 : index
    %c2_167 = arith.constant 2 : index
    %c0_168 = arith.constant 0 : index
    %c0_169 = arith.constant 0 : index
    %243 = vector.load %arg9[%c1_166, %c2_167, %c0_168, %c0_169] : memref<3x3x8x8xf32, #tpu.memory_space<vmem>>, vector<1x1x8x8xf32>
    %244 = vector.shape_cast %243 : vector<1x1x8x8xf32> to vector<8x8xf32>
    %245 = vector.shape_cast %244 : vector<8x8xf32> to vector<1x8x8xf32>
    "tpu.trace_start"() <{level = 10 : i32, message = "bdc,bcl->bdl"}> : () -> ()
    %cst_170 = arith.constant dense<0.000000e+00> : vector<1x8x497xf32>
    %246 = tpu.matmul %245, %242, %cst_170 {dimension_numbers = #tpu.dot_dimension_numbers<[2], [1], [1], [2], [0, 0, 0, 1, 1, 2], [0], [0]>} : vector<1x8x8xf32>, vector<1x8x497xf32>, vector<1x8x497xf32> -> vector<1x8x497xf32>
    "tpu.trace_stop"() : () -> ()
    %247 = arith.addf %241, %246 : vector<1x8x497xf32>
    %248 = vector.extract_strided_slice %208 {offsets = [0, 0, 120], sizes = [1, 8, 497], strides = [1, 1, 1]} : vector<1x8x621xf32> to vector<1x8x497xf32>
    %c2_171 = arith.constant 2 : index
    %c0_172 = arith.constant 0 : index
    %c0_173 = arith.constant 0 : index
    %c0_174 = arith.constant 0 : index
    %249 = vector.load %arg9[%c2_171, %c0_172, %c0_173, %c0_174] : memref<3x3x8x8xf32, #tpu.memory_space<vmem>>, vector<1x1x8x8xf32>
    %250 = vector.shape_cast %249 : vector<1x1x8x8xf32> to vector<8x8xf32>
    %251 = vector.shape_cast %250 : vector<8x8xf32> to vector<1x8x8xf32>
    "tpu.trace_start"() <{level = 10 : i32, message = "bdc,bcl->bdl"}> : () -> ()
    %cst_175 = arith.constant dense<0.000000e+00> : vector<1x8x497xf32>
    %252 = tpu.matmul %251, %248, %cst_175 {dimension_numbers = #tpu.dot_dimension_numbers<[2], [1], [1], [2], [0, 0, 0, 1, 1, 2], [0], [0]>} : vector<1x8x8xf32>, vector<1x8x497xf32>, vector<1x8x497xf32> -> vector<1x8x497xf32>
    "tpu.trace_stop"() : () -> ()
    %253 = arith.addf %247, %252 : vector<1x8x497xf32>
    %254 = vector.extract_strided_slice %208 {offsets = [0, 0, 122], sizes = [1, 8, 497], strides = [1, 1, 1]} : vector<1x8x621xf32> to vector<1x8x497xf32>
    %c2_176 = arith.constant 2 : index
    %c1_177 = arith.constant 1 : index
    %c0_178 = arith.constant 0 : index
    %c0_179 = arith.constant 0 : index
    %255 = vector.load %arg9[%c2_176, %c1_177, %c0_178, %c0_179] : memref<3x3x8x8xf32, #tpu.memory_space<vmem>>, vector<1x1x8x8xf32>
    %256 = vector.shape_cast %255 : vector<1x1x8x8xf32> to vector<8x8xf32>
    %257 = vector.shape_cast %256 : vector<8x8xf32> to vector<1x8x8xf32>
    "tpu.trace_start"() <{level = 10 : i32, message = "bdc,bcl->bdl"}> : () -> ()
    %cst_180 = arith.constant dense<0.000000e+00> : vector<1x8x497xf32>
    %258 = tpu.matmul %257, %254, %cst_180 {dimension_numbers = #tpu.dot_dimension_numbers<[2], [1], [1], [2], [0, 0, 0, 1, 1, 2], [0], [0]>} : vector<1x8x8xf32>, vector<1x8x497xf32>, vector<1x8x497xf32> -> vector<1x8x497xf32>
    "tpu.trace_stop"() : () -> ()
    %259 = arith.addf %253, %258 : vector<1x8x497xf32>
    %260 = vector.extract_strided_slice %208 {offsets = [0, 0, 124], sizes = [1, 8, 497], strides = [1, 1, 1]} : vector<1x8x621xf32> to vector<1x8x497xf32>
    %c2_181 = arith.constant 2 : index
    %c2_182 = arith.constant 2 : index
    %c0_183 = arith.constant 0 : index
    %c0_184 = arith.constant 0 : index
    %261 = vector.load %arg9[%c2_181, %c2_182, %c0_183, %c0_184] : memref<3x3x8x8xf32, #tpu.memory_space<vmem>>, vector<1x1x8x8xf32>
    %262 = vector.shape_cast %261 : vector<1x1x8x8xf32> to vector<8x8xf32>
    %263 = vector.shape_cast %262 : vector<8x8xf32> to vector<1x8x8xf32>
    "tpu.trace_start"() <{level = 10 : i32, message = "bdc,bcl->bdl"}> : () -> ()
    %cst_185 = arith.constant dense<0.000000e+00> : vector<1x8x497xf32>
    %264 = tpu.matmul %263, %260, %cst_185 {dimension_numbers = #tpu.dot_dimension_numbers<[2], [1], [1], [2], [0, 0, 0, 1, 1, 2], [0], [0]>} : vector<1x8x8xf32>, vector<1x8x497xf32>, vector<1x8x497xf32> -> vector<1x8x497xf32>
    "tpu.trace_stop"() : () -> ()
    %265 = arith.addf %259, %264 : vector<1x8x497xf32>
    %cst_186 = arith.constant 0.000000e+00 : f32
    %266 = vector.broadcast %cst_186 : f32 to vector<1x8x497xf32>
    %267 = arith.maximumf %265, %266 : vector<1x8x497xf32>
    %c0_187 = arith.constant 0 : index
    %c0_188 = arith.constant 0 : index
    %268 = vector.load %arg12[%c0_187, %c0_188] : memref<16x1xf32, #tpu.memory_space<vmem>>, vector<16x1xf32>
    %269 = vector.shape_cast %268 : vector<16x1xf32> to vector<1x16x1xf32>
    %270 = vector.broadcast %269 : vector<1x16x1xf32> to vector<1x16x373xf32>
    %271 = vector.extract_strided_slice %267 {offsets = [0, 0, 0], sizes = [1, 8, 373], strides = [1, 1, 1]} : vector<1x8x497xf32> to vector<1x8x373xf32>
    %c0_189 = arith.constant 0 : index
    %c0_190 = arith.constant 0 : index
    %c0_191 = arith.constant 0 : index
    %c0_192 = arith.constant 0 : index
    %272 = vector.load %arg11[%c0_189, %c0_190, %c0_191, %c0_192] : memref<3x3x16x8xf32, #tpu.memory_space<vmem>>, vector<1x1x16x8xf32>
    %273 = vector.shape_cast %272 : vector<1x1x16x8xf32> to vector<16x8xf32>
    %274 = vector.shape_cast %273 : vector<16x8xf32> to vector<1x16x8xf32>
    "tpu.trace_start"() <{level = 10 : i32, message = "bdc,bcl->bdl"}> : () -> ()
    %cst_193 = arith.constant dense<0.000000e+00> : vector<1x16x373xf32>
    %275 = tpu.matmul %274, %271, %cst_193 {dimension_numbers = #tpu.dot_dimension_numbers<[2], [1], [1], [2], [0, 0, 0, 1, 1, 2], [0], [0]>} : vector<1x16x8xf32>, vector<1x8x373xf32>, vector<1x16x373xf32> -> vector<1x16x373xf32>
    "tpu.trace_stop"() : () -> ()
    %276 = arith.addf %270, %275 : vector<1x16x373xf32>
    %277 = vector.extract_strided_slice %267 {offsets = [0, 0, 2], sizes = [1, 8, 373], strides = [1, 1, 1]} : vector<1x8x497xf32> to vector<1x8x373xf32>
    %c0_194 = arith.constant 0 : index
    %c1_195 = arith.constant 1 : index
    %c0_196 = arith.constant 0 : index
    %c0_197 = arith.constant 0 : index
    %278 = vector.load %arg11[%c0_194, %c1_195, %c0_196, %c0_197] : memref<3x3x16x8xf32, #tpu.memory_space<vmem>>, vector<1x1x16x8xf32>
    %279 = vector.shape_cast %278 : vector<1x1x16x8xf32> to vector<16x8xf32>
    %280 = vector.shape_cast %279 : vector<16x8xf32> to vector<1x16x8xf32>
    "tpu.trace_start"() <{level = 10 : i32, message = "bdc,bcl->bdl"}> : () -> ()
    %cst_198 = arith.constant dense<0.000000e+00> : vector<1x16x373xf32>
    %281 = tpu.matmul %280, %277, %cst_198 {dimension_numbers = #tpu.dot_dimension_numbers<[2], [1], [1], [2], [0, 0, 0, 1, 1, 2], [0], [0]>} : vector<1x16x8xf32>, vector<1x8x373xf32>, vector<1x16x373xf32> -> vector<1x16x373xf32>
    "tpu.trace_stop"() : () -> ()
    %282 = arith.addf %276, %281 : vector<1x16x373xf32>
    %283 = vector.extract_strided_slice %267 {offsets = [0, 0, 4], sizes = [1, 8, 373], strides = [1, 1, 1]} : vector<1x8x497xf32> to vector<1x8x373xf32>
    %c0_199 = arith.constant 0 : index
    %c2_200 = arith.constant 2 : index
    %c0_201 = arith.constant 0 : index
    %c0_202 = arith.constant 0 : index
    %284 = vector.load %arg11[%c0_199, %c2_200, %c0_201, %c0_202] : memref<3x3x16x8xf32, #tpu.memory_space<vmem>>, vector<1x1x16x8xf32>
    %285 = vector.shape_cast %284 : vector<1x1x16x8xf32> to vector<16x8xf32>
    %286 = vector.shape_cast %285 : vector<16x8xf32> to vector<1x16x8xf32>
    "tpu.trace_start"() <{level = 10 : i32, message = "bdc,bcl->bdl"}> : () -> ()
    %cst_203 = arith.constant dense<0.000000e+00> : vector<1x16x373xf32>
    %287 = tpu.matmul %286, %283, %cst_203 {dimension_numbers = #tpu.dot_dimension_numbers<[2], [1], [1], [2], [0, 0, 0, 1, 1, 2], [0], [0]>} : vector<1x16x8xf32>, vector<1x8x373xf32>, vector<1x16x373xf32> -> vector<1x16x373xf32>
    "tpu.trace_stop"() : () -> ()
    %288 = arith.addf %282, %287 : vector<1x16x373xf32>
    %289 = vector.extract_strided_slice %267 {offsets = [0, 0, 60], sizes = [1, 8, 373], strides = [1, 1, 1]} : vector<1x8x497xf32> to vector<1x8x373xf32>
    %c1_204 = arith.constant 1 : index
    %c0_205 = arith.constant 0 : index
    %c0_206 = arith.constant 0 : index
    %c0_207 = arith.constant 0 : index
    %290 = vector.load %arg11[%c1_204, %c0_205, %c0_206, %c0_207] : memref<3x3x16x8xf32, #tpu.memory_space<vmem>>, vector<1x1x16x8xf32>
    %291 = vector.shape_cast %290 : vector<1x1x16x8xf32> to vector<16x8xf32>
    %292 = vector.shape_cast %291 : vector<16x8xf32> to vector<1x16x8xf32>
    "tpu.trace_start"() <{level = 10 : i32, message = "bdc,bcl->bdl"}> : () -> ()
    %cst_208 = arith.constant dense<0.000000e+00> : vector<1x16x373xf32>
    %293 = tpu.matmul %292, %289, %cst_208 {dimension_numbers = #tpu.dot_dimension_numbers<[2], [1], [1], [2], [0, 0, 0, 1, 1, 2], [0], [0]>} : vector<1x16x8xf32>, vector<1x8x373xf32>, vector<1x16x373xf32> -> vector<1x16x373xf32>
    "tpu.trace_stop"() : () -> ()
    %294 = arith.addf %288, %293 : vector<1x16x373xf32>
    %295 = vector.extract_strided_slice %267 {offsets = [0, 0, 62], sizes = [1, 8, 373], strides = [1, 1, 1]} : vector<1x8x497xf32> to vector<1x8x373xf32>
    %c1_209 = arith.constant 1 : index
    %c1_210 = arith.constant 1 : index
    %c0_211 = arith.constant 0 : index
    %c0_212 = arith.constant 0 : index
    %296 = vector.load %arg11[%c1_209, %c1_210, %c0_211, %c0_212] : memref<3x3x16x8xf32, #tpu.memory_space<vmem>>, vector<1x1x16x8xf32>
    %297 = vector.shape_cast %296 : vector<1x1x16x8xf32> to vector<16x8xf32>
    %298 = vector.shape_cast %297 : vector<16x8xf32> to vector<1x16x8xf32>
    "tpu.trace_start"() <{level = 10 : i32, message = "bdc,bcl->bdl"}> : () -> ()
    %cst_213 = arith.constant dense<0.000000e+00> : vector<1x16x373xf32>
    %299 = tpu.matmul %298, %295, %cst_213 {dimension_numbers = #tpu.dot_dimension_numbers<[2], [1], [1], [2], [0, 0, 0, 1, 1, 2], [0], [0]>} : vector<1x16x8xf32>, vector<1x8x373xf32>, vector<1x16x373xf32> -> vector<1x16x373xf32>
    "tpu.trace_stop"() : () -> ()
    %300 = arith.addf %294, %299 : vector<1x16x373xf32>
    %301 = vector.extract_strided_slice %267 {offsets = [0, 0, 64], sizes = [1, 8, 373], strides = [1, 1, 1]} : vector<1x8x497xf32> to vector<1x8x373xf32>
    %c1_214 = arith.constant 1 : index
    %c2_215 = arith.constant 2 : index
    %c0_216 = arith.constant 0 : index
    %c0_217 = arith.constant 0 : index
    %302 = vector.load %arg11[%c1_214, %c2_215, %c0_216, %c0_217] : memref<3x3x16x8xf32, #tpu.memory_space<vmem>>, vector<1x1x16x8xf32>
    %303 = vector.shape_cast %302 : vector<1x1x16x8xf32> to vector<16x8xf32>
    %304 = vector.shape_cast %303 : vector<16x8xf32> to vector<1x16x8xf32>
    "tpu.trace_start"() <{level = 10 : i32, message = "bdc,bcl->bdl"}> : () -> ()
    %cst_218 = arith.constant dense<0.000000e+00> : vector<1x16x373xf32>
    %305 = tpu.matmul %304, %301, %cst_218 {dimension_numbers = #tpu.dot_dimension_numbers<[2], [1], [1], [2], [0, 0, 0, 1, 1, 2], [0], [0]>} : vector<1x16x8xf32>, vector<1x8x373xf32>, vector<1x16x373xf32> -> vector<1x16x373xf32>
    "tpu.trace_stop"() : () -> ()
    %306 = arith.addf %300, %305 : vector<1x16x373xf32>
    %307 = vector.extract_strided_slice %267 {offsets = [0, 0, 120], sizes = [1, 8, 373], strides = [1, 1, 1]} : vector<1x8x497xf32> to vector<1x8x373xf32>
    %c2_219 = arith.constant 2 : index
    %c0_220 = arith.constant 0 : index
    %c0_221 = arith.constant 0 : index
    %c0_222 = arith.constant 0 : index
    %308 = vector.load %arg11[%c2_219, %c0_220, %c0_221, %c0_222] : memref<3x3x16x8xf32, #tpu.memory_space<vmem>>, vector<1x1x16x8xf32>
    %309 = vector.shape_cast %308 : vector<1x1x16x8xf32> to vector<16x8xf32>
    %310 = vector.shape_cast %309 : vector<16x8xf32> to vector<1x16x8xf32>
    "tpu.trace_start"() <{level = 10 : i32, message = "bdc,bcl->bdl"}> : () -> ()
    %cst_223 = arith.constant dense<0.000000e+00> : vector<1x16x373xf32>
    %311 = tpu.matmul %310, %307, %cst_223 {dimension_numbers = #tpu.dot_dimension_numbers<[2], [1], [1], [2], [0, 0, 0, 1, 1, 2], [0], [0]>} : vector<1x16x8xf32>, vector<1x8x373xf32>, vector<1x16x373xf32> -> vector<1x16x373xf32>
    "tpu.trace_stop"() : () -> ()
    %312 = arith.addf %306, %311 : vector<1x16x373xf32>
    %313 = vector.extract_strided_slice %267 {offsets = [0, 0, 122], sizes = [1, 8, 373], strides = [1, 1, 1]} : vector<1x8x497xf32> to vector<1x8x373xf32>
    %c2_224 = arith.constant 2 : index
    %c1_225 = arith.constant 1 : index
    %c0_226 = arith.constant 0 : index
    %c0_227 = arith.constant 0 : index
    %314 = vector.load %arg11[%c2_224, %c1_225, %c0_226, %c0_227] : memref<3x3x16x8xf32, #tpu.memory_space<vmem>>, vector<1x1x16x8xf32>
    %315 = vector.shape_cast %314 : vector<1x1x16x8xf32> to vector<16x8xf32>
    %316 = vector.shape_cast %315 : vector<16x8xf32> to vector<1x16x8xf32>
    "tpu.trace_start"() <{level = 10 : i32, message = "bdc,bcl->bdl"}> : () -> ()
    %cst_228 = arith.constant dense<0.000000e+00> : vector<1x16x373xf32>
    %317 = tpu.matmul %316, %313, %cst_228 {dimension_numbers = #tpu.dot_dimension_numbers<[2], [1], [1], [2], [0, 0, 0, 1, 1, 2], [0], [0]>} : vector<1x16x8xf32>, vector<1x8x373xf32>, vector<1x16x373xf32> -> vector<1x16x373xf32>
    "tpu.trace_stop"() : () -> ()
    %318 = arith.addf %312, %317 : vector<1x16x373xf32>
    %319 = vector.extract_strided_slice %267 {offsets = [0, 0, 124], sizes = [1, 8, 373], strides = [1, 1, 1]} : vector<1x8x497xf32> to vector<1x8x373xf32>
    %c2_229 = arith.constant 2 : index
    %c2_230 = arith.constant 2 : index
    %c0_231 = arith.constant 0 : index
    %c0_232 = arith.constant 0 : index
    %320 = vector.load %arg11[%c2_229, %c2_230, %c0_231, %c0_232] : memref<3x3x16x8xf32, #tpu.memory_space<vmem>>, vector<1x1x16x8xf32>
    %321 = vector.shape_cast %320 : vector<1x1x16x8xf32> to vector<16x8xf32>
    %322 = vector.shape_cast %321 : vector<16x8xf32> to vector<1x16x8xf32>
    "tpu.trace_start"() <{level = 10 : i32, message = "bdc,bcl->bdl"}> : () -> ()
    %cst_233 = arith.constant dense<0.000000e+00> : vector<1x16x373xf32>
    %323 = tpu.matmul %322, %319, %cst_233 {dimension_numbers = #tpu.dot_dimension_numbers<[2], [1], [1], [2], [0, 0, 0, 1, 1, 2], [0], [0]>} : vector<1x16x8xf32>, vector<1x8x373xf32>, vector<1x16x373xf32> -> vector<1x16x373xf32>
    "tpu.trace_stop"() : () -> ()
    %324 = arith.addf %318, %323 : vector<1x16x373xf32>
    %cst_234 = arith.constant 0.000000e+00 : f32
    %325 = vector.broadcast %cst_234 : f32 to vector<1x16x373xf32>
    %326 = arith.maximumf %324, %325 : vector<1x16x373xf32>
    %c0_235 = arith.constant 0 : index
    %c0_236 = arith.constant 0 : index
    %327 = vector.load %arg14[%c0_235, %c0_236] : memref<10x1xf32, #tpu.memory_space<vmem>>, vector<10x1xf32>
    %328 = vector.shape_cast %327 : vector<10x1xf32> to vector<1x10x1xf32>
    %329 = vector.broadcast %328 : vector<1x10x1xf32> to vector<1x10x249xf32>
    %330 = vector.extract_strided_slice %326 {offsets = [0, 0, 0], sizes = [1, 16, 249], strides = [1, 1, 1]} : vector<1x16x373xf32> to vector<1x16x249xf32>
    %c0_237 = arith.constant 0 : index
    %c0_238 = arith.constant 0 : index
    %c0_239 = arith.constant 0 : index
    %c0_240 = arith.constant 0 : index
    %331 = vector.load %arg13[%c0_237, %c0_238, %c0_239, %c0_240] : memref<3x3x10x16xf32, #tpu.memory_space<vmem>>, vector<1x1x10x16xf32>
    %332 = vector.shape_cast %331 : vector<1x1x10x16xf32> to vector<10x16xf32>
    %333 = vector.shape_cast %332 : vector<10x16xf32> to vector<1x10x16xf32>
    "tpu.trace_start"() <{level = 10 : i32, message = "bdc,bcl->bdl"}> : () -> ()
    %cst_241 = arith.constant dense<0.000000e+00> : vector<1x10x249xf32>
    %334 = tpu.matmul %333, %330, %cst_241 {dimension_numbers = #tpu.dot_dimension_numbers<[2], [1], [1], [2], [0, 0, 0, 1, 1, 2], [0], [0]>} : vector<1x10x16xf32>, vector<1x16x249xf32>, vector<1x10x249xf32> -> vector<1x10x249xf32>
    "tpu.trace_stop"() : () -> ()
    %335 = arith.addf %329, %334 : vector<1x10x249xf32>
    %336 = vector.extract_strided_slice %326 {offsets = [0, 0, 2], sizes = [1, 16, 249], strides = [1, 1, 1]} : vector<1x16x373xf32> to vector<1x16x249xf32>
    %c0_242 = arith.constant 0 : index
    %c1_243 = arith.constant 1 : index
    %c0_244 = arith.constant 0 : index
    %c0_245 = arith.constant 0 : index
    %337 = vector.load %arg13[%c0_242, %c1_243, %c0_244, %c0_245] : memref<3x3x10x16xf32, #tpu.memory_space<vmem>>, vector<1x1x10x16xf32>
    %338 = vector.shape_cast %337 : vector<1x1x10x16xf32> to vector<10x16xf32>
    %339 = vector.shape_cast %338 : vector<10x16xf32> to vector<1x10x16xf32>
    "tpu.trace_start"() <{level = 10 : i32, message = "bdc,bcl->bdl"}> : () -> ()
    %cst_246 = arith.constant dense<0.000000e+00> : vector<1x10x249xf32>
    %340 = tpu.matmul %339, %336, %cst_246 {dimension_numbers = #tpu.dot_dimension_numbers<[2], [1], [1], [2], [0, 0, 0, 1, 1, 2], [0], [0]>} : vector<1x10x16xf32>, vector<1x16x249xf32>, vector<1x10x249xf32> -> vector<1x10x249xf32>
    "tpu.trace_stop"() : () -> ()
    %341 = arith.addf %335, %340 : vector<1x10x249xf32>
    %342 = vector.extract_strided_slice %326 {offsets = [0, 0, 4], sizes = [1, 16, 249], strides = [1, 1, 1]} : vector<1x16x373xf32> to vector<1x16x249xf32>
    %c0_247 = arith.constant 0 : index
    %c2_248 = arith.constant 2 : index
    %c0_249 = arith.constant 0 : index
    %c0_250 = arith.constant 0 : index
    %343 = vector.load %arg13[%c0_247, %c2_248, %c0_249, %c0_250] : memref<3x3x10x16xf32, #tpu.memory_space<vmem>>, vector<1x1x10x16xf32>
    %344 = vector.shape_cast %343 : vector<1x1x10x16xf32> to vector<10x16xf32>
    %345 = vector.shape_cast %344 : vector<10x16xf32> to vector<1x10x16xf32>
    "tpu.trace_start"() <{level = 10 : i32, message = "bdc,bcl->bdl"}> : () -> ()
    %cst_251 = arith.constant dense<0.000000e+00> : vector<1x10x249xf32>
    %346 = tpu.matmul %345, %342, %cst_251 {dimension_numbers = #tpu.dot_dimension_numbers<[2], [1], [1], [2], [0, 0, 0, 1, 1, 2], [0], [0]>} : vector<1x10x16xf32>, vector<1x16x249xf32>, vector<1x10x249xf32> -> vector<1x10x249xf32>
    "tpu.trace_stop"() : () -> ()
    %347 = arith.addf %341, %346 : vector<1x10x249xf32>
    %348 = vector.extract_strided_slice %326 {offsets = [0, 0, 60], sizes = [1, 16, 249], strides = [1, 1, 1]} : vector<1x16x373xf32> to vector<1x16x249xf32>
    %c1_252 = arith.constant 1 : index
    %c0_253 = arith.constant 0 : index
    %c0_254 = arith.constant 0 : index
    %c0_255 = arith.constant 0 : index
    %349 = vector.load %arg13[%c1_252, %c0_253, %c0_254, %c0_255] : memref<3x3x10x16xf32, #tpu.memory_space<vmem>>, vector<1x1x10x16xf32>
    %350 = vector.shape_cast %349 : vector<1x1x10x16xf32> to vector<10x16xf32>
    %351 = vector.shape_cast %350 : vector<10x16xf32> to vector<1x10x16xf32>
    "tpu.trace_start"() <{level = 10 : i32, message = "bdc,bcl->bdl"}> : () -> ()
    %cst_256 = arith.constant dense<0.000000e+00> : vector<1x10x249xf32>
    %352 = tpu.matmul %351, %348, %cst_256 {dimension_numbers = #tpu.dot_dimension_numbers<[2], [1], [1], [2], [0, 0, 0, 1, 1, 2], [0], [0]>} : vector<1x10x16xf32>, vector<1x16x249xf32>, vector<1x10x249xf32> -> vector<1x10x249xf32>
    "tpu.trace_stop"() : () -> ()
    %353 = arith.addf %347, %352 : vector<1x10x249xf32>
    %354 = vector.extract_strided_slice %326 {offsets = [0, 0, 62], sizes = [1, 16, 249], strides = [1, 1, 1]} : vector<1x16x373xf32> to vector<1x16x249xf32>
    %c1_257 = arith.constant 1 : index
    %c1_258 = arith.constant 1 : index
    %c0_259 = arith.constant 0 : index
    %c0_260 = arith.constant 0 : index
    %355 = vector.load %arg13[%c1_257, %c1_258, %c0_259, %c0_260] : memref<3x3x10x16xf32, #tpu.memory_space<vmem>>, vector<1x1x10x16xf32>
    %356 = vector.shape_cast %355 : vector<1x1x10x16xf32> to vector<10x16xf32>
    %357 = vector.shape_cast %356 : vector<10x16xf32> to vector<1x10x16xf32>
    "tpu.trace_start"() <{level = 10 : i32, message = "bdc,bcl->bdl"}> : () -> ()
    %cst_261 = arith.constant dense<0.000000e+00> : vector<1x10x249xf32>
    %358 = tpu.matmul %357, %354, %cst_261 {dimension_numbers = #tpu.dot_dimension_numbers<[2], [1], [1], [2], [0, 0, 0, 1, 1, 2], [0], [0]>} : vector<1x10x16xf32>, vector<1x16x249xf32>, vector<1x10x249xf32> -> vector<1x10x249xf32>
    "tpu.trace_stop"() : () -> ()
    %359 = arith.addf %353, %358 : vector<1x10x249xf32>
    %360 = vector.extract_strided_slice %326 {offsets = [0, 0, 64], sizes = [1, 16, 249], strides = [1, 1, 1]} : vector<1x16x373xf32> to vector<1x16x249xf32>
    %c1_262 = arith.constant 1 : index
    %c2_263 = arith.constant 2 : index
    %c0_264 = arith.constant 0 : index
    %c0_265 = arith.constant 0 : index
    %361 = vector.load %arg13[%c1_262, %c2_263, %c0_264, %c0_265] : memref<3x3x10x16xf32, #tpu.memory_space<vmem>>, vector<1x1x10x16xf32>
    %362 = vector.shape_cast %361 : vector<1x1x10x16xf32> to vector<10x16xf32>
    %363 = vector.shape_cast %362 : vector<10x16xf32> to vector<1x10x16xf32>
    "tpu.trace_start"() <{level = 10 : i32, message = "bdc,bcl->bdl"}> : () -> ()
    %cst_266 = arith.constant dense<0.000000e+00> : vector<1x10x249xf32>
    %364 = tpu.matmul %363, %360, %cst_266 {dimension_numbers = #tpu.dot_dimension_numbers<[2], [1], [1], [2], [0, 0, 0, 1, 1, 2], [0], [0]>} : vector<1x10x16xf32>, vector<1x16x249xf32>, vector<1x10x249xf32> -> vector<1x10x249xf32>
    "tpu.trace_stop"() : () -> ()
    %365 = arith.addf %359, %364 : vector<1x10x249xf32>
    %366 = vector.extract_strided_slice %326 {offsets = [0, 0, 120], sizes = [1, 16, 249], strides = [1, 1, 1]} : vector<1x16x373xf32> to vector<1x16x249xf32>
    %c2_267 = arith.constant 2 : index
    %c0_268 = arith.constant 0 : index
    %c0_269 = arith.constant 0 : index
    %c0_270 = arith.constant 0 : index
    %367 = vector.load %arg13[%c2_267, %c0_268, %c0_269, %c0_270] : memref<3x3x10x16xf32, #tpu.memory_space<vmem>>, vector<1x1x10x16xf32>
    %368 = vector.shape_cast %367 : vector<1x1x10x16xf32> to vector<10x16xf32>
    %369 = vector.shape_cast %368 : vector<10x16xf32> to vector<1x10x16xf32>
    "tpu.trace_start"() <{level = 10 : i32, message = "bdc,bcl->bdl"}> : () -> ()
    %cst_271 = arith.constant dense<0.000000e+00> : vector<1x10x249xf32>
    %370 = tpu.matmul %369, %366, %cst_271 {dimension_numbers = #tpu.dot_dimension_numbers<[2], [1], [1], [2], [0, 0, 0, 1, 1, 2], [0], [0]>} : vector<1x10x16xf32>, vector<1x16x249xf32>, vector<1x10x249xf32> -> vector<1x10x249xf32>
    "tpu.trace_stop"() : () -> ()
    %371 = arith.addf %365, %370 : vector<1x10x249xf32>
    %372 = vector.extract_strided_slice %326 {offsets = [0, 0, 122], sizes = [1, 16, 249], strides = [1, 1, 1]} : vector<1x16x373xf32> to vector<1x16x249xf32>
    %c2_272 = arith.constant 2 : index
    %c1_273 = arith.constant 1 : index
    %c0_274 = arith.constant 0 : index
    %c0_275 = arith.constant 0 : index
    %373 = vector.load %arg13[%c2_272, %c1_273, %c0_274, %c0_275] : memref<3x3x10x16xf32, #tpu.memory_space<vmem>>, vector<1x1x10x16xf32>
    %374 = vector.shape_cast %373 : vector<1x1x10x16xf32> to vector<10x16xf32>
    %375 = vector.shape_cast %374 : vector<10x16xf32> to vector<1x10x16xf32>
    "tpu.trace_start"() <{level = 10 : i32, message = "bdc,bcl->bdl"}> : () -> ()
    %cst_276 = arith.constant dense<0.000000e+00> : vector<1x10x249xf32>
    %376 = tpu.matmul %375, %372, %cst_276 {dimension_numbers = #tpu.dot_dimension_numbers<[2], [1], [1], [2], [0, 0, 0, 1, 1, 2], [0], [0]>} : vector<1x10x16xf32>, vector<1x16x249xf32>, vector<1x10x249xf32> -> vector<1x10x249xf32>
    "tpu.trace_stop"() : () -> ()
    %377 = arith.addf %371, %376 : vector<1x10x249xf32>
    %378 = vector.extract_strided_slice %326 {offsets = [0, 0, 124], sizes = [1, 16, 249], strides = [1, 1, 1]} : vector<1x16x373xf32> to vector<1x16x249xf32>
    %c2_277 = arith.constant 2 : index
    %c2_278 = arith.constant 2 : index
    %c0_279 = arith.constant 0 : index
    %c0_280 = arith.constant 0 : index
    %379 = vector.load %arg13[%c2_277, %c2_278, %c0_279, %c0_280] : memref<3x3x10x16xf32, #tpu.memory_space<vmem>>, vector<1x1x10x16xf32>
    %380 = vector.shape_cast %379 : vector<1x1x10x16xf32> to vector<10x16xf32>
    %381 = vector.shape_cast %380 : vector<10x16xf32> to vector<1x10x16xf32>
    "tpu.trace_start"() <{level = 10 : i32, message = "bdc,bcl->bdl"}> : () -> ()
    %cst_281 = arith.constant dense<0.000000e+00> : vector<1x10x249xf32>
    %382 = tpu.matmul %381, %378, %cst_281 {dimension_numbers = #tpu.dot_dimension_numbers<[2], [1], [1], [2], [0, 0, 0, 1, 1, 2], [0], [0]>} : vector<1x10x16xf32>, vector<1x16x249xf32>, vector<1x10x249xf32> -> vector<1x10x249xf32>
    "tpu.trace_stop"() : () -> ()
    %383 = arith.addf %377, %382 : vector<1x10x249xf32>
    %cst_282 = arith.constant 0.000000e+00 : f32
    %384 = vector.broadcast %cst_282 : f32 to vector<1x10x249xf32>
    %385 = arith.maximumf %383, %384 : vector<1x10x249xf32>
    %c0_283 = arith.constant 0 : index
    %c0_284 = arith.constant 0 : index
    %386 = vector.load %arg16[%c0_283, %c0_284] : memref<10x1xf32, #tpu.memory_space<vmem>>, vector<10x1xf32>
    %387 = vector.shape_cast %386 : vector<10x1xf32> to vector<1x10x1xf32>
    %388 = vector.broadcast %387 : vector<1x10x1xf32> to vector<1x10x125xf32>
    %389 = vector.extract_strided_slice %385 {offsets = [0, 0, 0], sizes = [1, 10, 125], strides = [1, 1, 1]} : vector<1x10x249xf32> to vector<1x10x125xf32>
    %c0_285 = arith.constant 0 : index
    %c0_286 = arith.constant 0 : index
    %c0_287 = arith.constant 0 : index
    %c0_288 = arith.constant 0 : index
    %390 = vector.load %arg15[%c0_285, %c0_286, %c0_287, %c0_288] : memref<3x3x10x10xf32, #tpu.memory_space<vmem>>, vector<1x1x10x10xf32>
    %391 = vector.shape_cast %390 : vector<1x1x10x10xf32> to vector<10x10xf32>
    %392 = vector.shape_cast %391 : vector<10x10xf32> to vector<1x10x10xf32>
    "tpu.trace_start"() <{level = 10 : i32, message = "bdc,bcl->bdl"}> : () -> ()
    %cst_289 = arith.constant dense<0.000000e+00> : vector<1x10x125xf32>
    %393 = tpu.matmul %392, %389, %cst_289 {dimension_numbers = #tpu.dot_dimension_numbers<[2], [1], [1], [2], [0, 0, 0, 1, 1, 2], [0], [0]>} : vector<1x10x10xf32>, vector<1x10x125xf32>, vector<1x10x125xf32> -> vector<1x10x125xf32>
    "tpu.trace_stop"() : () -> ()
    %394 = arith.addf %388, %393 : vector<1x10x125xf32>
    %395 = vector.extract_strided_slice %385 {offsets = [0, 0, 2], sizes = [1, 10, 125], strides = [1, 1, 1]} : vector<1x10x249xf32> to vector<1x10x125xf32>
    %c0_290 = arith.constant 0 : index
    %c1_291 = arith.constant 1 : index
    %c0_292 = arith.constant 0 : index
    %c0_293 = arith.constant 0 : index
    %396 = vector.load %arg15[%c0_290, %c1_291, %c0_292, %c0_293] : memref<3x3x10x10xf32, #tpu.memory_space<vmem>>, vector<1x1x10x10xf32>
    %397 = vector.shape_cast %396 : vector<1x1x10x10xf32> to vector<10x10xf32>
    %398 = vector.shape_cast %397 : vector<10x10xf32> to vector<1x10x10xf32>
    "tpu.trace_start"() <{level = 10 : i32, message = "bdc,bcl->bdl"}> : () -> ()
    %cst_294 = arith.constant dense<0.000000e+00> : vector<1x10x125xf32>
    %399 = tpu.matmul %398, %395, %cst_294 {dimension_numbers = #tpu.dot_dimension_numbers<[2], [1], [1], [2], [0, 0, 0, 1, 1, 2], [0], [0]>} : vector<1x10x10xf32>, vector<1x10x125xf32>, vector<1x10x125xf32> -> vector<1x10x125xf32>
    "tpu.trace_stop"() : () -> ()
    %400 = arith.addf %394, %399 : vector<1x10x125xf32>
    %401 = vector.extract_strided_slice %385 {offsets = [0, 0, 4], sizes = [1, 10, 125], strides = [1, 1, 1]} : vector<1x10x249xf32> to vector<1x10x125xf32>
    %c0_295 = arith.constant 0 : index
    %c2_296 = arith.constant 2 : index
    %c0_297 = arith.constant 0 : index
    %c0_298 = arith.constant 0 : index
    %402 = vector.load %arg15[%c0_295, %c2_296, %c0_297, %c0_298] : memref<3x3x10x10xf32, #tpu.memory_space<vmem>>, vector<1x1x10x10xf32>
    %403 = vector.shape_cast %402 : vector<1x1x10x10xf32> to vector<10x10xf32>
    %404 = vector.shape_cast %403 : vector<10x10xf32> to vector<1x10x10xf32>
    "tpu.trace_start"() <{level = 10 : i32, message = "bdc,bcl->bdl"}> : () -> ()
    %cst_299 = arith.constant dense<0.000000e+00> : vector<1x10x125xf32>
    %405 = tpu.matmul %404, %401, %cst_299 {dimension_numbers = #tpu.dot_dimension_numbers<[2], [1], [1], [2], [0, 0, 0, 1, 1, 2], [0], [0]>} : vector<1x10x10xf32>, vector<1x10x125xf32>, vector<1x10x125xf32> -> vector<1x10x125xf32>
    "tpu.trace_stop"() : () -> ()
    %406 = arith.addf %400, %405 : vector<1x10x125xf32>
    %407 = vector.extract_strided_slice %385 {offsets = [0, 0, 60], sizes = [1, 10, 125], strides = [1, 1, 1]} : vector<1x10x249xf32> to vector<1x10x125xf32>
    %c1_300 = arith.constant 1 : index
    %c0_301 = arith.constant 0 : index
    %c0_302 = arith.constant 0 : index
    %c0_303 = arith.constant 0 : index
    %408 = vector.load %arg15[%c1_300, %c0_301, %c0_302, %c0_303] : memref<3x3x10x10xf32, #tpu.memory_space<vmem>>, vector<1x1x10x10xf32>
    %409 = vector.shape_cast %408 : vector<1x1x10x10xf32> to vector<10x10xf32>
    %410 = vector.shape_cast %409 : vector<10x10xf32> to vector<1x10x10xf32>
    "tpu.trace_start"() <{level = 10 : i32, message = "bdc,bcl->bdl"}> : () -> ()
    %cst_304 = arith.constant dense<0.000000e+00> : vector<1x10x125xf32>
    %411 = tpu.matmul %410, %407, %cst_304 {dimension_numbers = #tpu.dot_dimension_numbers<[2], [1], [1], [2], [0, 0, 0, 1, 1, 2], [0], [0]>} : vector<1x10x10xf32>, vector<1x10x125xf32>, vector<1x10x125xf32> -> vector<1x10x125xf32>
    "tpu.trace_stop"() : () -> ()
    %412 = arith.addf %406, %411 : vector<1x10x125xf32>
    %413 = vector.extract_strided_slice %385 {offsets = [0, 0, 62], sizes = [1, 10, 125], strides = [1, 1, 1]} : vector<1x10x249xf32> to vector<1x10x125xf32>
    %c1_305 = arith.constant 1 : index
    %c1_306 = arith.constant 1 : index
    %c0_307 = arith.constant 0 : index
    %c0_308 = arith.constant 0 : index
    %414 = vector.load %arg15[%c1_305, %c1_306, %c0_307, %c0_308] : memref<3x3x10x10xf32, #tpu.memory_space<vmem>>, vector<1x1x10x10xf32>
    %415 = vector.shape_cast %414 : vector<1x1x10x10xf32> to vector<10x10xf32>
    %416 = vector.shape_cast %415 : vector<10x10xf32> to vector<1x10x10xf32>
    "tpu.trace_start"() <{level = 10 : i32, message = "bdc,bcl->bdl"}> : () -> ()
    %cst_309 = arith.constant dense<0.000000e+00> : vector<1x10x125xf32>
    %417 = tpu.matmul %416, %413, %cst_309 {dimension_numbers = #tpu.dot_dimension_numbers<[2], [1], [1], [2], [0, 0, 0, 1, 1, 2], [0], [0]>} : vector<1x10x10xf32>, vector<1x10x125xf32>, vector<1x10x125xf32> -> vector<1x10x125xf32>
    "tpu.trace_stop"() : () -> ()
    %418 = arith.addf %412, %417 : vector<1x10x125xf32>
    %419 = vector.extract_strided_slice %385 {offsets = [0, 0, 64], sizes = [1, 10, 125], strides = [1, 1, 1]} : vector<1x10x249xf32> to vector<1x10x125xf32>
    %c1_310 = arith.constant 1 : index
    %c2_311 = arith.constant 2 : index
    %c0_312 = arith.constant 0 : index
    %c0_313 = arith.constant 0 : index
    %420 = vector.load %arg15[%c1_310, %c2_311, %c0_312, %c0_313] : memref<3x3x10x10xf32, #tpu.memory_space<vmem>>, vector<1x1x10x10xf32>
    %421 = vector.shape_cast %420 : vector<1x1x10x10xf32> to vector<10x10xf32>
    %422 = vector.shape_cast %421 : vector<10x10xf32> to vector<1x10x10xf32>
    "tpu.trace_start"() <{level = 10 : i32, message = "bdc,bcl->bdl"}> : () -> ()
    %cst_314 = arith.constant dense<0.000000e+00> : vector<1x10x125xf32>
    %423 = tpu.matmul %422, %419, %cst_314 {dimension_numbers = #tpu.dot_dimension_numbers<[2], [1], [1], [2], [0, 0, 0, 1, 1, 2], [0], [0]>} : vector<1x10x10xf32>, vector<1x10x125xf32>, vector<1x10x125xf32> -> vector<1x10x125xf32>
    "tpu.trace_stop"() : () -> ()
    %424 = arith.addf %418, %423 : vector<1x10x125xf32>
    %425 = vector.extract_strided_slice %385 {offsets = [0, 0, 120], sizes = [1, 10, 125], strides = [1, 1, 1]} : vector<1x10x249xf32> to vector<1x10x125xf32>
    %c2_315 = arith.constant 2 : index
    %c0_316 = arith.constant 0 : index
    %c0_317 = arith.constant 0 : index
    %c0_318 = arith.constant 0 : index
    %426 = vector.load %arg15[%c2_315, %c0_316, %c0_317, %c0_318] : memref<3x3x10x10xf32, #tpu.memory_space<vmem>>, vector<1x1x10x10xf32>
    %427 = vector.shape_cast %426 : vector<1x1x10x10xf32> to vector<10x10xf32>
    %428 = vector.shape_cast %427 : vector<10x10xf32> to vector<1x10x10xf32>
    "tpu.trace_start"() <{level = 10 : i32, message = "bdc,bcl->bdl"}> : () -> ()
    %cst_319 = arith.constant dense<0.000000e+00> : vector<1x10x125xf32>
    %429 = tpu.matmul %428, %425, %cst_319 {dimension_numbers = #tpu.dot_dimension_numbers<[2], [1], [1], [2], [0, 0, 0, 1, 1, 2], [0], [0]>} : vector<1x10x10xf32>, vector<1x10x125xf32>, vector<1x10x125xf32> -> vector<1x10x125xf32>
    "tpu.trace_stop"() : () -> ()
    %430 = arith.addf %424, %429 : vector<1x10x125xf32>
    %431 = vector.extract_strided_slice %385 {offsets = [0, 0, 122], sizes = [1, 10, 125], strides = [1, 1, 1]} : vector<1x10x249xf32> to vector<1x10x125xf32>
    %c2_320 = arith.constant 2 : index
    %c1_321 = arith.constant 1 : index
    %c0_322 = arith.constant 0 : index
    %c0_323 = arith.constant 0 : index
    %432 = vector.load %arg15[%c2_320, %c1_321, %c0_322, %c0_323] : memref<3x3x10x10xf32, #tpu.memory_space<vmem>>, vector<1x1x10x10xf32>
    %433 = vector.shape_cast %432 : vector<1x1x10x10xf32> to vector<10x10xf32>
    %434 = vector.shape_cast %433 : vector<10x10xf32> to vector<1x10x10xf32>
    "tpu.trace_start"() <{level = 10 : i32, message = "bdc,bcl->bdl"}> : () -> ()
    %cst_324 = arith.constant dense<0.000000e+00> : vector<1x10x125xf32>
    %435 = tpu.matmul %434, %431, %cst_324 {dimension_numbers = #tpu.dot_dimension_numbers<[2], [1], [1], [2], [0, 0, 0, 1, 1, 2], [0], [0]>} : vector<1x10x10xf32>, vector<1x10x125xf32>, vector<1x10x125xf32> -> vector<1x10x125xf32>
    "tpu.trace_stop"() : () -> ()
    %436 = arith.addf %430, %435 : vector<1x10x125xf32>
    %437 = vector.extract_strided_slice %385 {offsets = [0, 0, 124], sizes = [1, 10, 125], strides = [1, 1, 1]} : vector<1x10x249xf32> to vector<1x10x125xf32>
    %c2_325 = arith.constant 2 : index
    %c2_326 = arith.constant 2 : index
    %c0_327 = arith.constant 0 : index
    %c0_328 = arith.constant 0 : index
    %438 = vector.load %arg15[%c2_325, %c2_326, %c0_327, %c0_328] : memref<3x3x10x10xf32, #tpu.memory_space<vmem>>, vector<1x1x10x10xf32>
    %439 = vector.shape_cast %438 : vector<1x1x10x10xf32> to vector<10x10xf32>
    %440 = vector.shape_cast %439 : vector<10x10xf32> to vector<1x10x10xf32>
    "tpu.trace_start"() <{level = 10 : i32, message = "bdc,bcl->bdl"}> : () -> ()
    %cst_329 = arith.constant dense<0.000000e+00> : vector<1x10x125xf32>
    %441 = tpu.matmul %440, %437, %cst_329 {dimension_numbers = #tpu.dot_dimension_numbers<[2], [1], [1], [2], [0, 0, 0, 1, 1, 2], [0], [0]>} : vector<1x10x10xf32>, vector<1x10x125xf32>, vector<1x10x125xf32> -> vector<1x10x125xf32>
    "tpu.trace_stop"() : () -> ()
    %442 = arith.addf %436, %441 : vector<1x10x125xf32>
    %c0_330 = arith.constant 0 : index
    %c0_331 = arith.constant 0 : index
    %c0_332 = arith.constant 0 : index
    %443 = vector.load %arg17[%c0_330, %c0_331, %c0_332] : memref<1x1x125xf32, #tpu.memory_space<vmem>>, vector<1x1x125xf32>
    %444 = vector.broadcast %443 : vector<1x1x125xf32> to vector<1x10x125xf32>
    %445 = arith.mulf %442, %444 : vector<1x10x125xf32>
    %cst_333 = arith.constant dense<0.000000e+00> : vector<1x10xf32>
    %446 = vector.multi_reduction <add>, %445, %cst_333 [2] : vector<1x10x125xf32> to vector<1x10xf32>
    %447 = vector.shape_cast %446 : vector<1x10xf32> to vector<1x10x1xf32>
    %cst_334 = arith.constant dense<0xFF800000> : vector<1x1xf32>
    %448 = vector.multi_reduction <maximumf>, %447, %cst_334 [1] : vector<1x10x1xf32> to vector<1x1xf32>
    %449 = vector.shape_cast %448 : vector<1x1xf32> to vector<1x1x1xf32>
    %450 = vector.broadcast %449 : vector<1x1x1xf32> to vector<1x10x1xf32>
    %451 = arith.subf %447, %450 : vector<1x10x1xf32>
    %452 = math.exp %451 : vector<1x10x1xf32>
    %cst_335 = arith.constant dense<0.000000e+00> : vector<1x1xf32>
    %453 = vector.multi_reduction <add>, %452, %cst_335 [1] : vector<1x10x1xf32> to vector<1x1xf32>
    %454 = vector.shape_cast %453 : vector<1x1xf32> to vector<1x1x1xf32>
    %455 = math.log %454 : vector<1x1x1xf32>
    %456 = arith.addf %455, %449 : vector<1x1x1xf32>
    %457 = vector.broadcast %456 : vector<1x1x1xf32> to vector<1x10x1xf32>
    %458 = arith.subf %447, %457 : vector<1x10x1xf32>
    %c0_336 = arith.constant 0 : index
    %c0_337 = arith.constant 0 : index
    %c0_338 = arith.constant 0 : index
    %459 = vector.load %arg18[%c0_336, %c0_337, %c0_338] : memref<1x10x1xf32, #tpu.memory_space<vmem>>, vector<1x10x1xf32>
    tpu.vector_store %arg18[%c0_336, %c0_337, %c0_338], %458 {strides = array<i32>} : memref<1x10x1xf32, #tpu.memory_space<vmem>>, vector<1x10x1xf32>,
    return
  }
  func.func @transform_0(%arg0: i32) -> (i32, i32, i32) {
    %c0_i32 = arith.constant 0 : i32
    %c0_i32_0 = arith.constant 0 : i32
    %c0_i32_1 = arith.constant 0 : i32
    return %arg0, %c0_i32, %c0_i32_0 : i32, i32, i32
  }
  func.func @transform_1(%arg0: i32) -> (i32, i32, i32, i32) {
    %c0_i32 = arith.constant 0 : i32
    %c0_i32_0 = arith.constant 0 : i32
    %c0_i32_1 = arith.constant 0 : i32
    %c0_i32_2 = arith.constant 0 : i32
    %c0_i32_3 = arith.constant 0 : i32
    return %c0_i32, %c0_i32_0, %c0_i32_1, %c0_i32_2 : i32, i32, i32, i32
  }
  func.func @transform_2(%arg0: i32) -> (i32, i32, i32, i32) {
    %c0_i32 = arith.constant 0 : i32
    %c0_i32_0 = arith.constant 0 : i32
    %c0_i32_1 = arith.constant 0 : i32
    %c0_i32_2 = arith.constant 0 : i32
    %c0_i32_3 = arith.constant 0 : i32
    return %c0_i32, %c0_i32_0, %c0_i32_1, %c0_i32_2 : i32, i32, i32, i32
  }
  func.func @transform_3(%arg0: i32) -> (i32, i32) {
    %c0_i32 = arith.constant 0 : i32
    %c0_i32_0 = arith.constant 0 : i32
    %c0_i32_1 = arith.constant 0 : i32
    return %c0_i32, %c0_i32_0 : i32, i32
  }
  func.func @transform_4(%arg0: i32) -> (i32, i32) {
    %c0_i32 = arith.constant 0 : i32
    %c0_i32_0 = arith.constant 0 : i32
    %c0_i32_1 = arith.constant 0 : i32
    return %c0_i32, %c0_i32_0 : i32, i32
  }
  func.func @transform_5(%arg0: i32) -> (i32, i32) {
    %c0_i32 = arith.constant 0 : i32
    %c0_i32_0 = arith.constant 0 : i32
    %c0_i32_1 = arith.constant 0 : i32
    return %c0_i32, %c0_i32_0 : i32, i32
  }
  func.func @transform_6(%arg0: i32) -> (i32, i32) {
    %c0_i32 = arith.constant 0 : i32
    %c0_i32_0 = arith.constant 0 : i32
    %c0_i32_1 = arith.constant 0 : i32
    return %c0_i32, %c0_i32_0 : i32, i32
  }
  func.func @transform_7(%arg0: i32) -> (i32, i32, i32, i32) {
    %c0_i32 = arith.constant 0 : i32
    %c0_i32_0 = arith.constant 0 : i32
    %c0_i32_1 = arith.constant 0 : i32
    %c0_i32_2 = arith.constant 0 : i32
    %c0_i32_3 = arith.constant 0 : i32
    return %c0_i32, %c0_i32_0, %c0_i32_1, %c0_i32_2 : i32, i32, i32, i32
  }
  func.func @transform_8(%arg0: i32) -> (i32, i32, i32, i32) {
    %c0_i32 = arith.constant 0 : i32
    %c0_i32_0 = arith.constant 0 : i32
    %c0_i32_1 = arith.constant 0 : i32
    %c0_i32_2 = arith.constant 0 : i32
    %c0_i32_3 = arith.constant 0 : i32
    return %c0_i32, %c0_i32_0, %c0_i32_1, %c0_i32_2 : i32, i32, i32, i32
  }
  func.func @transform_9(%arg0: i32) -> (i32, i32) {
    %c0_i32 = arith.constant 0 : i32
    %c0_i32_0 = arith.constant 0 : i32
    %c0_i32_1 = arith.constant 0 : i32
    return %c0_i32, %c0_i32_0 : i32, i32
  }
  func.func @transform_10(%arg0: i32) -> (i32, i32, i32, i32) {
    %c0_i32 = arith.constant 0 : i32
    %c0_i32_0 = arith.constant 0 : i32
    %c0_i32_1 = arith.constant 0 : i32
    %c0_i32_2 = arith.constant 0 : i32
    %c0_i32_3 = arith.constant 0 : i32
    return %c0_i32, %c0_i32_0, %c0_i32_1, %c0_i32_2 : i32, i32, i32, i32
  }
  func.func @transform_11(%arg0: i32) -> (i32, i32) {
    %c0_i32 = arith.constant 0 : i32
    %c0_i32_0 = arith.constant 0 : i32
    %c0_i32_1 = arith.constant 0 : i32
    return %c0_i32, %c0_i32_0 : i32, i32
  }
  func.func @transform_12(%arg0: i32) -> (i32, i32, i32, i32) {
    %c0_i32 = arith.constant 0 : i32
    %c0_i32_0 = arith.constant 0 : i32
    %c0_i32_1 = arith.constant 0 : i32
    %c0_i32_2 = arith.constant 0 : i32
    %c0_i32_3 = arith.constant 0 : i32
    return %c0_i32, %c0_i32_0, %c0_i32_1, %c0_i32_2 : i32, i32, i32, i32
  }
  func.func @transform_13(%arg0: i32) -> (i32, i32) {
    %c0_i32 = arith.constant 0 : i32
    %c0_i32_0 = arith.constant 0 : i32
    %c0_i32_1 = arith.constant 0 : i32
    return %c0_i32, %c0_i32_0 : i32, i32
  }
  func.func @transform_14(%arg0: i32) -> (i32, i32, i32, i32) {
    %c0_i32 = arith.constant 0 : i32
    %c0_i32_0 = arith.constant 0 : i32
    %c0_i32_1 = arith.constant 0 : i32
    %c0_i32_2 = arith.constant 0 : i32
    %c0_i32_3 = arith.constant 0 : i32
    return %c0_i32, %c0_i32_0, %c0_i32_1, %c0_i32_2 : i32, i32, i32, i32
  }
  func.func @transform_15(%arg0: i32) -> (i32, i32) {
    %c0_i32 = arith.constant 0 : i32
    %c0_i32_0 = arith.constant 0 : i32
    %c0_i32_1 = arith.constant 0 : i32
    return %c0_i32, %c0_i32_0 : i32, i32
  }
  func.func @transform_16(%arg0: i32) -> (i32, i32, i32) {
    %c0_i32 = arith.constant 0 : i32
    %c0_i32_0 = arith.constant 0 : i32
    %c0_i32_1 = arith.constant 0 : i32
    %c0_i32_2 = arith.constant 0 : i32
    return %c0_i32, %c0_i32_0, %c0_i32_1 : i32, i32, i32
  }
  func.func @transform_17(%arg0: i32) -> (i32, i32, i32) {
    %c0_i32 = arith.constant 0 : i32
    %c0_i32_0 = arith.constant 0 : i32
    %c0_i32_1 = arith.constant 0 : i32
    return %arg0, %c0_i32, %c0_i32_0 : i32, i32, i32
  }
}

</mosaic_0001>

<bundles_post_ra>
// kernel: net_forward.1
= control target key start
LH: loop header
LB: loop body
LE: loop exit
PB: predicated region body
PF: predicated region fallthrough
CT: control target
= control target key end

     0   :  { %s8606_s24 = smov 0   ;;  %s10882_s0 = inlined_call_operand.vmem [shape: f32[2,1,900], index: 0, kind: input, shape index: {}]   ;;  %s10883_s1 = inlined_call_operand.vmem [shape: f32[3,3,8,1], index: 1, kind: input, shape index: {}]   ;;  %s10884_s2 = inlined_call_operand.vmem [shape: f32[3,3,16,8], index: 2, kind: input, shape index: {}]   ;;  %s10885_s3 = inlined_call_operand.vmem [shape: f32[16,1], index: 3, kind: input, shape index: {}]   ;;  %s10886_s4 = inlined_call_operand.vmem [shape: f32[16,1], index: 4, kind: input, shape index: {}]   ;;  %s10887_s5 = inlined_call_operand.vmem [shape: f32[16,1], index: 5, kind: input, shape index: {}]   ;;  %s10888_s6 = inlined_call_operand.vmem [shape: f32[8,16], index: 6, kind: input, shape index: {}]   ;;  %s10889_s7 = inlined_call_operand.vmem [shape: f32[3,3,8,8], index: 7, kind: input, shape index: {}]   ;;  %s10890_s8 = inlined_call_operand.vmem [shape: f32[3,3,8,8], index: 8, kind: input, shape index: {}]   ;;  %s10891_s9 = inlined_call_operand.vmem [shape: f32[8,1], index: 9, kind: input, shape index: {}]   ;;  %s10892_s10 = inlined_call_operand.vmem [shape: f32[3,3,16,8], index: 10, kind: input, shape index: {}]   ;;  %s10893_s11 = inlined_call_operand.vmem [shape: f32[16,1], index: 11, kind: input, shape index: {}]   ;;  %s10894_s12 = inlined_call_operand.vmem [shape: f32[3,3,10,16], index: 12, kind: input, shape index: {}]   ;;  %s10895_s13 = inlined_call_operand.vmem [shape: f32[10,1], index: 13, kind: input, shape index: {}]   ;;  %s10896_s14 = inlined_call_operand.vmem [shape: f32[3,3,10,10], index: 14, kind: input, shape index: {}]   ;;  %s10897_s15 = inlined_call_operand.vmem [shape: f32[10,1], index: 15, kind: input, shape index: {}]   ;;  %s10898_s16 = inlined_call_operand.vmem [shape: f32[1,1,125], index: 16, kind: input, shape index: {}]   ;;  %s10899_s17 = inlined_call_operand.vmem [shape: f32[2,10,1], index: 17, kind: output, shape index: {}]  }
   0x1   :  { %10907 = sst [smem:[#allocation57_spill]] %s10882_s0 }
   0x2   :  { %10908 = sst [smem:[#allocation58_spill]] %s10883_s1 }
   0x3 LB: > { %s7507_s25 = sadd.s32 4294967295, %s8500_s24   ;;  %p7511_p0 = scmp.ge.s32.totalorder %s8500_s24, 1  ;;  %s8500_s24 = sphi %s8606_s24, %s27_s24  }
   0x4   : > { %p486_p1 = scmp.lt.s32.totalorder %s8500_s24, 3 }
   0x6   : > { %p487_p2 = pnand %p7511_p0, %p486_p1 }
   0x8   : > { %490 = sbr.rel (%p487_p2) target bundleno = 3044 (0xbe4), region = 88 }
   0xd   : > { %s10909_s28 = sld [smem:[#allocation58_spill]]  ;;  %v8502_v2 = vmov 0   ;;  %p537_p3 = scmp.lt.s32.totalorder %s7507_s25, 1  ;;  %vm617_vm0 = vcmask 1039360   ;;  %vm673_vm1 = vcmask 1031168   ;;  %vm729_vm2 = vcmask 801792  }
   0xe   : > { %7960 = vset.pattern.permute.xlu1 %v8502_v2  ;;  %7959 = vset.pattern.permute.xlu0 %v8502_v2  ;;  %s10910_s21 = sld [smem:[#allocation57_spill]]  ;;  %s8503_s23 = smov 127   ;;  %vm785_vm3 = vcmask 793600   ;;  %vm841_vm4 = vcmask 785408   ;;  %vm903_vm5 = vcmask 556032   ;;  %vm964_vm6 = vcmask 547840  }
   0xf   : > { %7961 = vset.pattern.permute.xlu2 %v8502_v2  ;;  %s11025_s25 = smov (!%p537_p3, %s7507_s25), 1  ;;  %s8504_s26 = smov 126   ;;  %vm1025_vm7 = vcmask 539648   ;;  %vm1068_vm8 = vcmask 64512   ;;  %vm3160_vm9 = vcmask 130048   ;;  %vm3529_vm10 = vcmask 1014784  }
  0x10   : > { %s7512_s19 = sshll.u32 %s11025_s25, 3  ;;  %s8505_s27 = smov 98   ;;  %vm3926_vm11 = vcmask 523264   ;;  %vm4191_vm12 = vcmask 48128   ;;  %vm4324_vm13 = vcmask 31744   ;;  %vm7005_vm14 = vcmask 1041408  }
  0x11   : > { %s8506_s29 = smov 97   ;;  %s8507_s0 = smov 96   ;;  %vm6998_vm15 = vcmask 80896  }
  0x12   : > { %s10901_s30 = smov 68   ;;  %s8509_s18 = smov 67  }
  0x13   : > { %v7517_v0 = vld [vmem:[%s10909_s28 + $0x18] sm:$0xff]  ;;  %v7515_v1 = vld [vmem:[%s10909_s28 + $0x8] sm:$0xff]  ;;  %v7518_v4 = vld [vmem:[%s10909_s28 + $0x20] sm:$0xff]  ;;  %s11021_s1 = smov 68   ;;  %s10903_s20 = smov 8  }
  0x14   : > { %698 = vperm.xlu1 %7960, %v7517_v0   ;;  %586 = vperm.xlu0 %7959, %v7515_v1   ;;  %v7519_v3 = vld [vmem:[%s10909_s28 + $0x28] sm:$0xff]  ;;  %v7516_v5 = vld [vmem:[%s10909_s28 + $0x10] sm:$0xff]  ;;  %v7522_v7 = vld [vmem:[%s10909_s28 + $0x40] sm:$0xff]  ;;  %s540_s22 = scalar_lea.vmem %s10910_s21, %s7512_s19  ;;  %s8510_s19 = smov 66  }
  0x15   : > { %810 = vperm.xlu2 %7961, %v7519_v3   ;;  %v7520_v6 = vld [vmem:[%s10909_s28 + $0x30] sm:$0xff]  ;;  %v7521_v8 = vld [vmem:[%s10909_s28 + $0x38] sm:$0xff]  ;;  %v547_v9 = vld [vmem:[%s10909_s28] sm:$0xff]  ;;  %s8515_s21 = smov 4  }
  0x16   : > { %v8647_v10 = vld [vmem:[%s540_s22] sm:$0xff]  ;;  %s11023_s22 = smov 8  }
  0x17   : > { %v8650_v11 = vperm.slane %v8647_v10, 5  ;;  %v8653_v12 = vperm.slane %v8647_v10, 4  ;;  %v8656_v13 = vperm.slane %v8647_v10, 3  ;;  %v8692_v26 = vperm.slane %v8647_v10, 2 }
  0x18   : > { %v8695_v27 = vperm.slane %v8647_v10, 1  ;;  %v8698_v28 = vperm.slane %v8647_v10, 0 }
  0x1c   : > { %754 = vperm.xlu1 %7960, %v7518_v4   ;;  %642 = vperm.xlu0 %7959, %v7516_v5  }
  0x1d   : > { %868 = vperm.xlu2 %7961, %v7520_v6  }
  0x24   : > { %990 = vperm.xlu1 %7960, %v7522_v7   ;;  %929 = vperm.xlu0 %7959, %v7521_v8  }
  0x25   : > { %565 = vperm.xlu2 %7961, %v547_v9  }
  0x6f   : > { %v8729_v39 = vpop.permute.xlu2 %810 }
  0x70   : > { %v818_v40 = vmul.f32 %v8729_v39, %v8650_v11  ;;  %v817_v41 = vmul.f32 %v8729_v39, %v8653_v12  ;;  %v816_v42 = vmul.f32 %v8729_v39, %v8656_v13  ;;  %v815_v58 = vmul.f32 %v8729_v39, %v8692_v26 }
  0x71   : > { %v814_v59 = vmul.f32 %v8729_v39, %v8695_v27  ;;  %v813_v60 = vmul.f32 %v8729_v39, %v8698_v28 }
  0x77   : > { %v8749_v46 = vpop.permute.xlu2 %868 }
  0x78   : > { %v876_v47 = vmul.f32 %v8749_v46, %v8650_v11  ;;  %v875_v48 = vmul.f32 %v8749_v46, %v8653_v12  ;;  %v874_v49 = vmul.f32 %v8749_v46, %v8656_v13  ;;  %v873_v3 = vmul.f32 %v8749_v46, %v8692_v26 }
  0x79   : > { %v872_v4 = vmul.f32 %v8749_v46, %v8695_v27  ;;  %v871_v5 = vmul.f32 %v8749_v46, %v8698_v28 }
  0x7f   : > { %v8780_v57 = vpop.permute.xlu2 %565 }
  0x86   : > { %v8658_v14 = vpop.permute.xlu0 %586  ;;  %v8680_v22 = vpop.permute.xlu1 %698 }
  0x87   : > { %v594_v15 = vmul.f32 %v8658_v14, %v8650_v11  ;;  %v593_v16 = vmul.f32 %v8658_v14, %v8653_v12  ;;  %v592_v17 = vmul.f32 %v8658_v14, %v8656_v13  ;;  %v706_v23 = vmul.f32 %v8680_v22, %v8650_v11 }
  0x88   : > { %v705_v24 = vmul.f32 %v8680_v22, %v8653_v12  ;;  %v704_v25 = vmul.f32 %v8680_v22, %v8656_v13  ;;  %v591_v29 = vmul.f32 %v8658_v14, %v8692_v26  ;;  %v590_v30 = vmul.f32 %v8658_v14, %v8695_v27 }
  0x89   : > { %613 = vrot.lane.b32.xlu2 %v594_v15, %s8503_s23  ;;  %611 = vrot.lane.b32.xlu1 %v593_v16, %s8503_s23  ;;  %v589_v31 = vmul.f32 %v8658_v14, %v8698_v28  ;;  %v703_v43 = vmul.f32 %v8680_v22, %v8692_v26  ;;  %v702_v44 = vmul.f32 %v8680_v22, %v8695_v27 }
  0x8a   : > { %609 = vrot.lane.b32.xlu0 %v592_v17, %s8503_s23  ;;  %v701_v45 = vmul.f32 %v8680_v22, %v8698_v28 }
  0x8e   : > { %v8669_v18 = vpop.permute.xlu0 %642  ;;  %v8709_v32 = vpop.permute.xlu1 %754 }
  0x8f   : > { %v650_v19 = vmul.f32 %v8669_v18, %v8650_v11  ;;  %v649_v20 = vmul.f32 %v8669_v18, %v8653_v12  ;;  %v648_v21 = vmul.f32 %v8669_v18, %v8656_v13  ;;  %v762_v33 = vmul.f32 %v8709_v32, %v8650_v11 }
  0x90   : > { %v761_v34 = vmul.f32 %v8709_v32, %v8653_v12  ;;  %v760_v35 = vmul.f32 %v8709_v32, %v8656_v13  ;;  %v647_v36 = vmul.f32 %v8669_v18, %v8692_v26  ;;  %v646_v37 = vmul.f32 %v8669_v18, %v8695_v27 }
  0x91   : > { %669 = vrot.lane.b32.xlu2 %v650_v19, %s8504_s26  ;;  %667 = vrot.lane.b32.xlu1 %v649_v20, %s8504_s26  ;;  %v645_v38 = vmul.f32 %v8669_v18, %v8698_v28  ;;  %v759_v50 = vmul.f32 %v8709_v32, %v8692_v26  ;;  %v758_v51 = vmul.f32 %v8709_v32, %v8695_v27 }
  0x92   : > { %665 = vrot.lane.b32.xlu0 %v648_v21, %s8504_s26  ;;  %v757_v52 = vmul.f32 %v8709_v32, %v8698_v28 }
  0x96   : > { %v8769_v53 = vpop.permute.xlu0 %929  ;;  %v8793_v62 = vpop.permute.xlu1 %990 }
  0x97   : > { %v937_v54 = vmul.f32 %v8769_v53, %v8650_v11  ;;  %v936_v55 = vmul.f32 %v8769_v53, %v8653_v12  ;;  %v935_v56 = vmul.f32 %v8769_v53, %v8656_v13  ;;  %v998_v63 = vmul.f32 %v8793_v62, %v8650_v11 }
  0x98   : > { %v997_v0 = vmul.f32 %v8793_v62, %v8653_v12  ;;  %v996_v1 = vmul.f32 %v8793_v62, %v8656_v13  ;;  %v934_v7 = vmul.f32 %v8769_v53, %v8692_v26  ;;  %v933_v8 = vmul.f32 %v8769_v53, %v8695_v27 }
  0x99   : > { %725 = vrot.lane.b32.xlu2 %v706_v23, %s8505_s27  ;;  %723 = vrot.lane.b32.xlu1 %v705_v24, %s8505_s27  ;;  %v932_v9 = vmul.f32 %v8769_v53, %v8698_v28  ;;  %v995_v19 = vmul.f32 %v8793_v62, %v8692_v26  ;;  %v994_v20 = vmul.f32 %v8793_v62, %v8695_v27 }
  0x9a   : > { %721 = vrot.lane.b32.xlu0 %v704_v25, %s8505_s27  ;;  %v993_v21 = vmul.f32 %v8793_v62, %v8698_v28 }
  0xa1   : > { %607 = vrot.lane.b32.xlu2 %v591_v29, %s8503_s23  ;;  %605 = vrot.lane.b32.xlu1 %v590_v30, %s8503_s23  ;;  %v8848_v29 = vperm.slane %v8647_v10, 6 }
  0xa2   : > { %603 = vrot.lane.b32.xlu0 %v589_v31, %s8503_s23 }
  0xa3   : > { %v707_v30 = vmul.f32 %v8680_v22, %v8848_v29  ;;  %v651_v31 = vmul.f32 %v8669_v18, %v8848_v29  ;;  %v877_v22 = vmul.f32 %v8749_v46, %v8848_v29  ;;  %v819_v18 = vmul.f32 %v8729_v39, %v8848_v29 }
  0xa4   : > { %v938_v39 = vmul.f32 %v8769_v53, %v8848_v29 }
  0xa9   : > { %781 = vrot.lane.b32.xlu2 %v762_v33, %s8506_s29  ;;  %779 = vrot.lane.b32.xlu1 %v761_v34, %s8506_s29  ;;  %v595_v33 = vmul.f32 %v8658_v14, %v8848_v29  ;;  %v763_v14 = vmul.f32 %v8709_v32, %v8848_v29 }
  0xaa   : > { %777 = vrot.lane.b32.xlu0 %v760_v35, %s8506_s29 }
  0xb1   : > { %663 = vrot.lane.b32.xlu2 %v647_v36, %s8504_s26  ;;  %661 = vrot.lane.b32.xlu1 %v646_v37, %s8504_s26 }
  0xb2   : > { %659 = vrot.lane.b32.xlu0 %v645_v38, %s8504_s26 }
  0xb9   : > { %837 = vrot.lane.b32.xlu2 %v818_v40, %s8507_s0  ;;  %835 = vrot.lane.b32.xlu1 %v817_v41, %s8507_s0  ;;  %v864_v40 = vperm.slane %v8647_v10, 7 }
  0xba   : > { %833 = vrot.lane.b32.xlu0 %v816_v42, %s8507_s0 }
  0xbb   : > { %v939_v42 = vmul.f32 %v8769_v53, %v864_v40  ;;  %v878_v32 = vmul.f32 %v8749_v46, %v864_v40  ;;  %v1000_v10 = vmul.f32 %v8793_v62, %v864_v40 }
  0xc1   : > { %719 = vrot.lane.b32.xlu2 %v703_v43, %s8505_s27  ;;  %717 = vrot.lane.b32.xlu1 %v702_v44, %s8505_s27 }
  0xc2   : > { %715 = vrot.lane.b32.xlu0 %v701_v45, %s8505_s27 }
  0xc9   : > { %897 = vrot.lane.b32.xlu2 %v876_v47, %s10901_s30  ;;  %895 = vrot.lane.b32.xlu1 %v875_v48, %s10901_s30  ;;  %v999_v47 = vmul.f32 %v8793_v62, %v8848_v29 }
  0xca   : > { %893 = vrot.lane.b32.xlu0 %v874_v49, %s10901_s30 }
  0xd1   : > { %775 = vrot.lane.b32.xlu2 %v759_v50, %s8506_s29  ;;  %773 = vrot.lane.b32.xlu1 %v758_v51, %s8506_s29 }
  0xd2   : > { %771 = vrot.lane.b32.xlu0 %v757_v52, %s8506_s29 }
  0xd9   : > { %958 = vrot.lane.b32.xlu2 %v937_v54, %s8509_s18  ;;  %956 = vrot.lane.b32.xlu1 %v936_v55, %s8509_s18 }
  0xda   : > { %954 = vrot.lane.b32.xlu0 %v935_v56, %s8509_s18 }
  0xe1   : > { %831 = vrot.lane.b32.xlu2 %v815_v58, %s8507_s0  ;;  %829 = vrot.lane.b32.xlu1 %v814_v59, %s8507_s0 }
  0xe2   : > { %827 = vrot.lane.b32.xlu0 %v813_v60, %s8507_s0 }
  0xe3   : > { %v8791_v61 = vpop.permute.xlu2 %613 }
  0xe9   : > { %1019 = vrot.lane.b32.xlu2 %v998_v63, %s8510_s19  ;;  %1017 = vrot.lane.b32.xlu1 %v997_v0, %s8510_s19 }
  0xea   : > { %1015 = vrot.lane.b32.xlu0 %v996_v1, %s8510_s19 }
  0xeb   : > { %v8804_v2 = vpop.permute.xlu2 %669 }
  0xf1   : > { %891 = vrot.lane.b32.xlu2 %v873_v3, %s10901_s30  ;;  %889 = vrot.lane.b32.xlu1 %v872_v4, %s10901_s30 }
  0xf2   : > { %887 = vrot.lane.b32.xlu0 %v871_v5, %s10901_s30  ;;  %v572_v5 = vmul.f32 %v8780_v57, %v8653_v12 }
  0xf3   : > { %v8815_v6 = vpop.permute.xlu2 %725 }
  0xf9   : > { %952 = vrot.lane.b32.xlu2 %v934_v7, %s8509_s18  ;;  %950 = vrot.lane.b32.xlu1 %v933_v8, %s8509_s18 }
  0xfa   : > { %948 = vrot.lane.b32.xlu0 %v932_v9, %s8509_s18  ;;  %v571_v9 = vmul.f32 %v8780_v57, %v8656_v13 }
  0xfb   : > { %v8826_v15 = vpop.permute.xlu1 %611  ;;  %v8828_v16 = vpop.permute.xlu2 %607 }
  0xfc   : > { %v8830_v17 = vpop.permute.xlu0 %609  ;;  %v622_v3 = vsel %vm617_vm0, %v8826_v15, %v8791_v61 }
  0xfd   : > { %v621_v7 = vsel %vm617_vm0, %v8830_v17, %v8826_v15  ;;  %v620_v8 = vsel %vm617_vm0, %v8828_v16, %v8830_v17  ;;  %v635_v12 = vadd.f32 %v622_v3, %v572_v5 }
 0x101   : > { %1013 = vrot.lane.b32.xlu2 %v995_v19, %s8510_s19  ;;  %1011 = vrot.lane.b32.xlu1 %v994_v20, %s8510_s19  ;;  %v570_v19 = vmul.f32 %v8780_v57, %v8692_v26 }
 0x102   : > { %1009 = vrot.lane.b32.xlu0 %v993_v21, %s8510_s19  ;;  %v634_v21 = vadd.f32 %v621_v7, %v571_v9 }
 0x103   : > { %v8841_v23 = vpop.permute.xlu1 %667  ;;  %v8843_v24 = vpop.permute.xlu2 %781 }
 0x104   : > { %v8845_v25 = vpop.permute.xlu0 %665  ;;  %v678_v20 = vsel %vm673_vm1, %v8841_v23, %v8804_v2 }
 0x105   : > { %v677_v15 = vsel %vm673_vm1, %v8845_v25, %v8841_v23  ;;  %v691_v26 = vadd.f32 %v678_v20, %v635_v12 }
 0x106   : > { %v690_v23 = vadd.f32 %v677_v15, %v634_v21 }
 0x109   : > { %727 = vrot.lane.b32.xlu2 %v707_v30, %s8505_s27  ;;  %671 = vrot.lane.b32.xlu1 %v651_v31, %s8504_s26  ;;  %v633_v30 = vadd.f32 %v620_v8, %v570_v19 }
 0x10a   : > { %615 = vrot.lane.b32.xlu0 %v595_v33, %s8503_s23 }
 0x10b   : > { %v8859_v34 = vpop.permute.xlu1 %723  ;;  %v8861_v35 = vpop.permute.xlu2 %663 }
 0x10c   : > { %v722_v36 = vpop.permute.xlu0 %721  ;;  %v676_v17 = vsel %vm673_vm1, %v8861_v35, %v8845_v25  ;;  %v734_v13 = vsel %vm729_vm2, %v8859_v34, %v8815_v6 }
 0x10d   : > { %v733_v31 = vsel %vm729_vm2, %v722_v36, %v8859_v34 }
 0x10e   : > { %v746_v34 = vadd.f32 %v733_v31, %v690_v23 }
 0x111   : > { %899 = vrot.lane.b32.xlu2 %v877_v22, %s10901_s30  ;;  %839 = vrot.lane.b32.xlu1 %v819_v18, %s8507_s0  ;;  %v689_v22 = vadd.f32 %v676_v17, %v633_v30  ;;  %v747_v18 = vadd.f32 %v734_v13, %v691_v26 }
 0x112   : > { %783 = vrot.lane.b32.xlu0 %v763_v14, %s8506_s29 }
 0x113   : > { %v8872_v37 = vpop.permute.xlu2 %837  ;;  %v8874_v38 = vpop.permute.xlu1 %605 }
 0x114   : > { %v8877_v41 = vpop.permute.xlu0 %603 }
 0x119   : > { %962 = vrot.lane.b32.xlu2 %v939_v42, %s8509_s18  ;;  %960 = vrot.lane.b32.xlu1 %v938_v39, %s8509_s18 }
 0x11a   : > { %901 = vrot.lane.b32.xlu0 %v878_v32, %s10901_s30 }
 0x11b   : > { %v8886_v43 = vpop.permute.xlu2 %719  ;;  %v780_v44 = vpop.permute.xlu1 %779 }
 0x11c   : > { %v778_v45 = vpop.permute.xlu0 %777  ;;  %v732_v33 = vsel %vm729_vm2, %v8886_v43, %v722_v36  ;;  %v790_v25 = vsel %vm785_vm3, %v780_v44, %v8843_v24 }
 0x11d   : > { %v789_v14 = vsel %vm785_vm3, %v778_v45, %v780_v44  ;;  %v745_v32 = vadd.f32 %v732_v33, %v689_v22 }
 0x11e   : > { %v802_v5 = vadd.f32 %v789_v14, %v746_v34 }
 0x121   : > { %1023 = vrot.lane.b32.xlu1 %v1000_v10, %s8510_s19 }
 0x122   : > { %1021 = vrot.lane.b32.xlu0 %v999_v47, %s8510_s19  ;;  %v803_v47 = vadd.f32 %v790_v25, %v747_v18 }
 0x123   : > { %v8893_v46 = vpop.permute.xlu2 %897  ;;  %v8895_v48 = vpop.permute.xlu1 %661 }
 0x124   : > { %v8897_v49 = vpop.permute.xlu0 %659 }
 0x12b   : > { %v8899_v50 = vpop.permute.xlu2 %775  ;;  %v836_v51 = vpop.permute.xlu1 %835 }
 0x12c   : > { %v834_v52 = vpop.permute.xlu0 %833  ;;  %v788_v40 = vsel %vm785_vm3, %v8899_v50, %v778_v45  ;;  %v846_v36 = vsel %vm841_vm4, %v836_v51, %v8872_v37 }
 0x12d   : > { %v845_v3 = vsel %vm841_vm4, %v834_v52, %v836_v51  ;;  %v801_v45 = vadd.f32 %v788_v40, %v745_v32  ;;  %v859_v8 = vadd.f32 %v846_v36, %v803_v47  ;;  %v619_v47 = vsel %vm617_vm0, %v8874_v38, %v8828_v16 }
 0x12e   : > { %v858_v20 = vadd.f32 %v845_v3, %v802_v5  ;;  %v618_v5 = vsel %vm617_vm0, %v8877_v41, %v8874_v38  ;;  %v674_v16 = vsel %vm673_vm1, %v8897_v49, %v8895_v48 }
 0x133   : > { %v8901_v53 = vpop.permute.xlu2 %958  ;;  %v8903_v54 = vpop.permute.xlu1 %717 }
 0x134   : > { %v8905_v55 = vpop.permute.xlu0 %715 }
 0x135   : > { %v730_v38 = vsel %vm729_vm2, %v8905_v55, %v8903_v54 }
 0x13b   : > { %v8907_v56 = vpop.permute.xlu2 %831  ;;  %v896_v58 = vpop.permute.xlu1 %895 }
 0x13c   : > { %v894_v59 = vpop.permute.xlu0 %893  ;;  %v844_v44 = vsel %vm841_vm4, %v8907_v56, %v834_v52  ;;  %v908_v7 = vsel %vm903_vm5, %v896_v58, %v8893_v46 }
 0x13d   : > { %v907_v9 = vsel %vm903_vm5, %v894_v59, %v896_v58  ;;  %v857_v12 = vadd.f32 %v844_v44, %v801_v45  ;;  %v922_v15 = vadd.f32 %v908_v7, %v859_v8  ;;  %v569_v44 = vmul.f32 %v8780_v57, %v8695_v27 }
 0x13e   : > { %v921_v21 = vadd.f32 %v907_v9, %v858_v20  ;;  %v568_v45 = vmul.f32 %v8780_v57, %v8698_v28  ;;  %v675_v7 = vsel %vm673_vm1, %v8895_v48, %v8861_v35  ;;  %v731_v27 = vsel %vm729_vm2, %v8903_v54, %v8886_v43 }
 0x13f   : > { %v632_v8 = vadd.f32 %v619_v47, %v569_v44  ;;  %v574_v47 = vmul.f32 %v8780_v57, %v8848_v29 }
 0x140   : > { %v631_v9 = vadd.f32 %v618_v5, %v568_v45 }
 0x142   : > { %v687_v28 = vadd.f32 %v674_v16, %v631_v9 }
 0x143   : > { %v8909_v60 = vpop.permute.xlu2 %1019  ;;  %v8911_v62 = vpop.permute.xlu1 %773 }
 0x144   : > { %v8913_v63 = vpop.permute.xlu0 %771  ;;  %v787_v35 = vsel %vm785_vm3, %v8911_v62, %v8899_v50  ;;  %v743_v20 = vadd.f32 %v730_v38, %v687_v28 }
 0x145   : > { %v786_v48 = vsel %vm785_vm3, %v8913_v63, %v8911_v62 }
 0x146   : > { %v799_v55 = vadd.f32 %v786_v48, %v743_v20 }
 0x14b   : > { %v8915_v0 = vpop.permute.xlu2 %891  ;;  %v957_v1 = vpop.permute.xlu1 %956 }
 0x14c   : > { %v955_v4 = vpop.permute.xlu0 %954  ;;  %v906_v19 = vsel %vm903_vm5, %v8915_v0, %v894_v59  ;;  %v969_v51 = vsel %vm964_vm6, %v957_v1, %v8901_v53 }
 0x14d   : > { %v968_v52 = vsel %vm964_vm6, %v955_v4, %v957_v1  ;;  %v920_v30 = vadd.f32 %v906_v19, %v857_v12  ;;  %v983_v13 = vadd.f32 %v969_v51, %v922_v15  ;;  %v688_v19 = vadd.f32 %v675_v7, %v632_v8 }
 0x14e   : > { %v982_v31 = vadd.f32 %v968_v52, %v921_v21 }
 0x14f   : > { %v744_v41 = vadd.f32 %v731_v27, %v688_v19 }
 0x151   : > { %v800_v51 = vadd.f32 %v787_v35, %v744_v41 }
 0x153   : > { %v8953_v42 = vpop.permute.xlu2 %952  ;;  %v8955_v39 = vpop.permute.xlu1 %829 }
 0x154   : > { %v828_v10 = vpop.permute.xlu0 %827  ;;  %v967_v17 = vsel %vm964_vm6, %v8953_v42, %v955_v4  ;;  %v843_v43 = vsel %vm841_vm4, %v8955_v39, %v8907_v56  ;;  %v9032_v56 = vld [vmem:[%s10884_s2] sm:$0xff] }
 0x155   : > { %v981_v33 = vadd.f32 %v967_v17, %v920_v30  ;;  %v842_v54 = vsel %vm841_vm4, %v828_v10, %v8955_v39  ;;  %v856_v15 = vadd.f32 %v843_v43, %v800_v51 }
 0x156   : > { %v855_v17 = vadd.f32 %v842_v54, %v799_v55 }
 0x15b   : > { %v1014_v26 = vpop.permute.xlu2 %1013  ;;  %v1018_v58 = vpop.permute.xlu1 %1017 }
 0x15c   : > { %v1030_v59 = vsel %vm1025_vm7, %v1018_v58, %v8909_v60  ;;  %v1016_v23 = vpop.permute.xlu0 %1015 }
 0x15d   : > { %v1044_v22 = vadd.f32 %v1030_v59, %v983_v13  ;;  %v1028_v25 = vsel %vm1025_vm7, %v1014_v26, %v1016_v23  ;;  %v1029_v1 = vsel %vm1025_vm7, %v1016_v23, %v1018_v58 }
 0x15e   : > { %v1042_v18 = vadd.f32 %v1028_v25, %v981_v33  ;;  %v1043_v14 = vadd.f32 %v1029_v1, %v982_v31 }
 0x15f   : > { %v8976_v4 = vmax.f32 %v1044_v22, 0.0  ;;  %v9054_v22 = vld [vmem:[%s10884_s2 + $0x8] sm:$0xff] }
 0x160   : > { %v8978_v40 = vmax.f32 %v1042_v18, 0.0  ;;  %v8980_v34 = vmax.f32 %v1043_v14, 0.0 }
 0x162   : > { %1264 = vrot.lane.b32.xlu1 %v8978_v40, %s8503_s23  ;;  %1136 = vmatpush.msra.mxu2 %v8978_v40  ;;  %v8987_v32 = vpack.i.bf16 %v8976_v4, %v8980_v34 }
 0x163   : > { %v890_v36 = vpop.permute.xlu1 %889  ;;  %7527 = vmatmul.msk.f32.vlgmr.msra.gmra.mxu2 %vm1068_vm8, %v9032_v56  ;;  %v728_v14 = vpop.permute.xlu2 %727 }
 0x164   : > { %7963 = vrot.lane.b32.xlu2 %v8987_v32, %s8503_s23  ;;  %v888_v3 = vpop.permute.xlu0 %887  ;;  %v905_v50 = vsel %vm903_vm5, %v890_v36, %v8915_v0 }
 0x165   : > { %v904_v52 = vsel %vm903_vm5, %v888_v3, %v890_v36  ;;  %v919_v63 = vadd.f32 %v905_v50, %v856_v15  ;;  %v573_v36 = vmul.f32 %v8780_v57, %v8650_v11  ;;  %v735_v57 = vsel %vm729_vm2, %v8815_v6, %v728_v14 }
 0x166   : > { %v918_v0 = vadd.f32 %v904_v52, %v855_v17 }
 0x16b   : > { %v951_v49 = vpop.permute.xlu1 %950  ;;  %7528 = vmatmul.msk.f32.gmra.mxu2 %vm1068_vm8, %v9054_v22 }
 0x16c   : > { %v949_v12 = vpop.permute.xlu0 %948  ;;  %v966_v62 = vsel %vm964_vm6, %v951_v49, %v8953_v42 }
 0x16d   : > { %v965_v39 = vsel %vm964_vm6, %v949_v12, %v951_v49  ;;  %v980_v10 = vadd.f32 %v966_v62, %v919_v63 }
 0x16e   : > { %v979_v30 = vadd.f32 %v965_v39, %v918_v0  ;;  %v9158_v0 = vld [vmem:[%s10884_s2 + $0x10] sm:$0xff] }
 0x173   : > { %v1012_v21 = vpop.permute.xlu1 %1011 }
 0x174   : > { %v1027_v13 = vsel %vm1025_vm7, %v1012_v21, %v1014_v26  ;;  %v1010_v58 = vpop.permute.xlu0 %1009 }
 0x175   : > { %v1041_v42 = vadd.f32 %v1027_v13, %v980_v10  ;;  %v1026_v31 = vsel %vm1025_vm7, %v1010_v58, %v1012_v21  ;;  %v1054_v21 = vld [vmem:[%s10885_s3] sm:$0xff] }
 0x176   : > { %v1040_v33 = vadd.f32 %v1026_v31, %v979_v30  ;;  %v2986_v30 = vld [vmem:[%s10887_s5 + $0x8] sm:$0xff] }
 0x177   : > { %v9039_v59 = vmax.f32 %v1041_v42, 0.0 }
 0x178   : > { %v9041_v23 = vmax.f32 %v1040_v33, 0.0 }
 0x179   : > { %1113 = vmatpush.msra.mxu1 %v9039_v59  ;;  %7936 = vmatpush.msra.mxu3 %v9039_v59  ;;  %v7992_v39 = vpack.i.bf16 %v8978_v40, %v9039_v59 }
 0x17a   : > { %1090 = vmatpush.msra.mxu0 %v9041_v23  ;;  %v9049_v26 = vpack.i.bf16 %v9039_v59, %v9041_v23  ;;  %7526 = vmatmul.msk.f32.vlgmr.msra.gmra.mxu3 %vm1068_vm8, %v9054_v22  ;;  %v9194_v59 = vld [vmem:[%s10884_s2 + $0x20] sm:$0xff] }
 0x17b   : > { %1159 = vmatpush.msrb.mxu3 %v8980_v34  ;;  %v672_v25 = vpop.permute.xlu1 %671  ;;  %7523 = vmatmul.msk.f32.vlgmr.msra.gmra.mxu0 %vm1068_vm8, %v9032_v56 }
 0x17c   : > { %1182 = vmatpush.msrb.mxu0 %v8976_v4  ;;  %v616_v1 = vpop.permute.xlu0 %615  ;;  %7973 = vrot.lane.b32.xlu2 %v9049_v26, %s8504_s26  ;;  %v679_v5 = vsel %vm673_vm1, %v8804_v2, %v672_v25  ;;  %v900_v2 = vpop.permute.xlu2 %899 }
 0x17d   : > { %7968 = vrot.lane.b32.xlu0 %v9049_v26, %s8503_s23  ;;  %v623_v18 = vsel %vm617_vm0, %v8791_v61, %v616_v1  ;;  %7525 = vmatmul.msk.f32.vlgmr.msra.gmra.mxu1 %vm1068_vm8, %v9032_v56  ;;  %v637_v44 = vadd.f32 %v616_v1, %v574_v47  ;;  %v9077_v61 = vpack.i.bf16 %v8980_v34, %v8978_v40  ;;  %v2960_v1 = vld [vmem:[%s10886_s4 + $0x8] sm:$0xff] }
 0x17e   : > { %v636_v3 = vadd.f32 %v623_v18, %v573_v36  ;;  %v909_v48 = vsel %vm903_vm5, %v8893_v46, %v900_v2 }
 0x17f   : > { %v693_v7 = vadd.f32 %v672_v25, %v637_v44  ;;  %v1055_v25 = vld [vmem:[%s10885_s3 + $0x8] sm:$0xff]  ;;  %v2985_v44 = vld [vmem:[%s10887_s5] sm:$0xff] }
 0x180   : > { %v692_v11 = vadd.f32 %v679_v5, %v636_v3 }
 0x181   : > { %v749_v16 = vadd.f32 %v728_v14, %v693_v7 }
 0x182   : > { %7529 = vmatmul.msk.f32.vlgmr.msrb.gmra.mxu3 %vm1068_vm8, %v9032_v56  ;;  %v748_v34 = vadd.f32 %v735_v57, %v692_v11 }
 0x183   : > { %v840_v45 = vpop.permute.xlu1 %839  ;;  %7524 = vmatmul.msk.f32.gmra.mxu0 %vm1068_vm8, %v9054_v22 }
 0x184   : > { %v784_v8 = vpop.permute.xlu0 %783  ;;  %7988 = vrot.lane.b32.xlu2 %v9077_v61, %s8504_s26  ;;  %v847_v28 = vsel %vm841_vm4, %v8872_v37, %v840_v45  ;;  %v963_v20 = vpop.permute.xlu2 %962 }
 0x185   : > { %v791_v29 = vsel %vm785_vm3, %v8843_v24, %v784_v8  ;;  %v805_v27 = vadd.f32 %v784_v8, %v749_v16 }
 0x186   : > { %v804_v9 = vadd.f32 %v791_v29, %v748_v34 }
 0x187   : > { %v861_v35 = vadd.f32 %v840_v45, %v805_v27 }
 0x188   : > { %v860_v24 = vadd.f32 %v847_v28, %v804_v9 }
 0x18a   : > { %7530 = vmatmul.msk.f32.gmra.mxu3 %vm1068_vm8, %v9054_v22  ;;  %v923_v43 = vadd.f32 %v909_v48, %v860_v24 }
 0x18b   : > { %v961_v19 = vpop.permute.xlu1 %960  ;;  %7531 = vmatmul.msk.f32.vlgmr.msrb.gmra.mxu0 %vm1068_vm8, %v9032_v56 }
 0x18c   : > { %v902_v38 = vpop.permute.xlu0 %901  ;;  %1682 = vrot.lane.b32.xlu2 %v9041_v23, %s8505_s27  ;;  %v970_v49 = vsel %vm964_vm6, %v8901_v53, %v961_v19  ;;  %v971_v12 = vsel %vm964_vm6, %v961_v19, %v963_v20 }
 0x18d   : > { %v910_v6 = vsel %vm903_vm5, %v900_v2, %v902_v38  ;;  %v984_v37 = vadd.f32 %v970_v49, %v923_v43 }
 0x18e   : > { %v924_v41 = vadd.f32 %v910_v6, %v861_v35 }
 0x190   : > { %v985_v54 = vadd.f32 %v971_v12, %v924_v41 }
 0x193   : > { %v1024_v51 = vpop.permute.xlu1 %1023  ;;  %7532 = vmatmul.msk.f32.gmra.mxu0 %vm1068_vm8, %v9054_v22 }
 0x194   : > { %v1022_v55 = vpop.permute.xlu0 %1021  ;;  %8008 = vrot.lane.b32.xlu2 %v9077_v61, %s8506_s29 }
 0x195   : > { %v1031_v50 = vsel %vm1025_vm7, %v8909_v60, %v1022_v55  ;;  %v1032_v15 = vsel %vm1025_vm7, %v1022_v55, %v1024_v51 }
 0x196   : > { %v1045_v46 = vadd.f32 %v1031_v50, %v984_v37  ;;  %v1046_v53 = vadd.f32 %v1032_v15, %v985_v54 }
 0x198   : > { %v9112_v52 = vmax.f32 %v1045_v46, 0.0  ;;  %v1053_v17 = vmax.f32 %v1046_v53, 0.0 }
 0x19a   : > { %1205 = vmatpush.msrb.mxu1 %v9112_v52  ;;  %1228 = vmatpush.msrb.mxu2 %v1053_v17  ;;  %v7982_v62 = vpack.i.bf16 %v9112_v52, %v8976_v4  ;;  %v7977_v63 = vpack.i.bf16 %v1053_v17, %v9112_v52  ;;  %v8017_v60 = vpack.i.bf16 %v8976_v4, %v1053_v17 }
 0x19b   : > { %7535 = vmatmul.msk.f32.vlgmr.msrb.gmra.mxu2 %vm1068_vm8, %v9032_v56  ;;  %7533 = vmatmul.msk.f32.vlgmr.msrb.gmra.mxu1 %vm1068_vm8, %v9032_v56 }
 0x19c   : > { %7983 = vrot.lane.b32.xlu1 %v7982_v62, %s8504_s26  ;;  %1903 = vrot.lane.b32.xlu2 %v9112_v52, %s8506_s29 }
 0x19d   : > { %7978 = vrot.lane.b32.xlu0 %v7977_v63, %s8503_s23 }
 0x1a3   : > { %7536 = vmatmul.msk.f32.gmra.mxu2 %vm1068_vm8, %v9054_v22  ;;  %7534 = vmatmul.msk.f32.gmra.mxu1 %vm1068_vm8, %v9054_v22 }
 0x1a4   : > { %1483 = vrot.lane.b32.xlu1 %v1053_v17, %s8504_s26  ;;  %2108 = vrot.lane.b32.xlu2 %v8978_v40, %s8507_s0 }
 0x1a5   : > { %7993 = vrot.lane.b32.xlu0 %v7992_v39, %s8505_s27 }
 0x1ac   : > { %8003 = vrot.lane.b32.xlu1 %v8987_v32, %s8505_s27  ;;  %8043 = vrot.lane.b32.xlu2 %v7982_v62, %s10901_s30 }
 0x1ad   : > { %7998 = vrot.lane.b32.xlu0 %v7977_v63, %s8505_s27 }
 0x1b4   : > { %8018 = vrot.lane.b32.xlu1 %v8017_v60, %s8506_s29  ;;  %2327 = vrot.lane.b32.xlu2 %v1053_v17, %s10901_s30 }
 0x1b5   : > { %8013 = vrot.lane.b32.xlu0 %v9049_v26, %s8506_s29  ;;  %s8514_s29 = smov 6  }
 0x1bc   : > { %8028 = vrot.lane.b32.xlu1 %v9049_v26, %s8507_s0  ;;  %8063 = vrot.lane.b32.xlu2 %v8987_v32, %s8509_s18 }
 0x1bd   : > { %8023 = vrot.lane.b32.xlu0 %v8987_v32, %s8507_s0  ;;  %v9172_v32 = vld [vmem:[%s10884_s2 + $0x18] sm:$0xff] }
 0x1be   : > { %v9151_v4 = vpop.permute.xlu2 %7963 }
 0x1bf   : > { %v7966_v40 = vunpack.i.h.bf16 %v9151_v4  ;;  %v7965_v56 = vunpack.i.l.bf16 %v9151_v4 }
 0x1c1   : > { %v1277_v10 = vsel %vm617_vm0, %v7965_v56, %v7966_v40 }
 0x1c2   : > { %1377 = vmatpush.msra.mxu2 %v1277_v10 }
 0x1c3   : > { %7545 = vmatmul.msk.f32.vlgmr.msra.gmra.mxu2 %vm1068_vm8, %v9158_v0 }
 0x1c4   : > { %8038 = vrot.lane.b32.xlu1 %v7977_v63, %s8507_s0  ;;  %8078 = vrot.lane.b32.xlu2 %v8017_v60, %s8510_s19  ;;  %s10905_s0 = smov 64  }
 0x1c5   : > { %8033 = vrot.lane.b32.xlu0 %v9049_v26, %s10901_s30 }
 0x1cb   : > { %7546 = vmatmul.msk.f32.gmra.mxu2 %vm1068_vm8, %v9172_v32 }
 0x1cc   : > { %8053 = vrot.lane.b32.xlu1 %v7992_v39, %s8509_s18  ;;  %1058 = vperm.xlu2 %7961, %v1054_v21   ;;  %v9288_v39 = vld [vmem:[%s10884_s2 + $0x38] sm:$0xff] }
 0x1cd   : > { %8048 = vrot.lane.b32.xlu0 %v9077_v61, %s10901_s30  ;;  %s8511_s30 = smov 124  }
 0x1d4   : > { %v1265_v13 = vpop.permute.xlu1 %1264  ;;  %8058 = vrot.lane.b32.xlu1 %v7977_v63, %s8509_s18  ;;  %2994 = vperm.xlu2 %7961, %v2986_v30   ;;  %v9274_v63 = vld [vmem:[%s10884_s2 + $0x30] sm:$0xff] }
 0x1d5   : > { %2526 = vrot.lane.b32.xlu0 %v9041_v23, %s8509_s18  ;;  %v1276_v58 = vsel %vm617_vm0, %v1265_v13, %v7965_v56  ;;  %v9208_v23 = vld [vmem:[%s10884_s2 + $0x28] sm:$0xff]  ;;  %s11022_s18 = smov 64  }
 0x1d6   : > { %1354 = vmatpush.msra.mxu1 %v1276_v58  ;;  %v7974_v42 = vpop.permute.xlu2 %7973 }
 0x1d7   : > { %v7976_v31 = vunpack.i.h.bf16 %v7974_v42  ;;  %v7975_v33 = vunpack.i.l.bf16 %v7974_v42  ;;  %7543 = vmatmul.msk.f32.vlgmr.msra.gmra.mxu1 %vm1068_vm8, %v9158_v0 }
 0x1d9   : > { %v1485_v22 = vsel %vm673_vm1, %v7975_v33, %v7976_v31 }
 0x1da   : > { %1519 = vmatpush.msrb.mxu2 %v1485_v22 }
 0x1db   : > { %7555 = vmatmul.msk.f32.vlgmr.msrb.gmra.mxu2 %vm1068_vm8, %v9194_v59 }
 0x1dc   : > { %8073 = vrot.lane.b32.xlu1 %v9049_v26, %s8510_s19  ;;  %v2959_v26 = vld [vmem:[%s10886_s4] sm:$0xff] }
 0x1dd   : > { %8068 = vrot.lane.b32.xlu0 %v9077_v61, %s8510_s19 }
 0x1de   : > { %v7989_v61 = vpop.permute.xlu2 %7988 }
 0x1df   : > { %7544 = vmatmul.msk.f32.gmra.mxu1 %vm1068_vm8, %v9172_v32  ;;  %v7991_v8 = vunpack.i.h.bf16 %v7989_v61  ;;  %v7990_v2 = vunpack.i.l.bf16 %v7989_v61 }
 0x1e1   : > { %v1486_v19 = vsel %vm673_vm1, %v7976_v31, %v7990_v2  ;;  %v1487_v38 = vsel %vm673_vm1, %v7990_v2, %v7991_v8 }
 0x1e3   : > { %7556 = vmatmul.msk.f32.gmra.mxu2 %vm1068_vm8, %v9208_v23 }
 0x1e4   : > { %1063 = vperm.xlu1 %7960, %v1055_v25  }
 0x1e5   : > { %2747 = vrot.lane.b32.xlu0 %v9112_v52, %s8510_s19 }
 0x1e6   : > { %v1683_v28 = vpop.permute.xlu2 %1682 }
 0x1ec   : > { %2963 = vperm.xlu1 %7960, %v2959_v26   ;;  %v7586_v26 = vld [vmem:[%s10884_s2 + $0x48] sm:$0xff] }
 0x1ed   : > { %2968 = vperm.xlu0 %7959, %v2960_v1  }
 0x1ee   : > { %v8009_v54 = vpop.permute.xlu2 %8008 }
 0x1ef   : > { %v7969_v18 = vpop.permute.xlu0 %7968  ;;  %v8011_v53 = vunpack.i.h.bf16 %v8009_v54  ;;  %v8010_v52 = vunpack.i.l.bf16 %v8009_v54 }
 0x1f0   : > { %v7971_v14 = vunpack.i.h.bf16 %v7969_v18  ;;  %v7970_v36 = vunpack.i.l.bf16 %v7969_v18 }
 0x1f1   : > { %v1909_v60 = vsel %vm785_vm3, %v8010_v52, %v8011_v53 }
 0x1f2   : > { %v1274_v47 = vsel %vm617_vm0, %v7970_v36, %v7971_v14  ;;  %v1275_v3 = vsel %vm617_vm0, %v7971_v14, %v1265_v13 }
 0x1f3   : > { %1308 = vmatpush.msra.mxu3 %v1274_v47  ;;  %1331 = vmatpush.msra.mxu0 %v1275_v3  ;;  %v9342_v47 = vpop.f32.mrf.mxu2 }
 0x1f4   : > { %7539 = vmatmul.msk.f32.vlgmr.msra.gmra.mxu3 %vm1068_vm8, %v9158_v0  ;;  %7541 = vmatmul.msk.f32.vlgmr.msra.gmra.mxu0 %vm1068_vm8, %v9158_v0 }
 0x1f5   : > { %2989 = vperm.xlu0 %7959, %v2985_v44  }
 0x1f6   : > { %v1904_v58 = vpop.permute.xlu2 %1903 }
 0x1fc   : > { %7540 = vmatmul.msk.f32.gmra.mxu3 %vm1068_vm8, %v9172_v32  ;;  %7542 = vmatmul.msk.f32.gmra.mxu0 %vm1068_vm8, %v9172_v32 }
 0x1fe   : > { %v2109_v3 = vpop.permute.xlu2 %2108 }
 0x206   : > { %v9366_v2 = vpop.permute.xlu2 %8043 }
 0x20e   : > { %v7984_v5 = vpop.permute.xlu1 %7983 }
 0x20f   : > { %v7986_v45 = vunpack.i.h.bf16 %v7984_v5  ;;  %v7985_v11 = vunpack.i.l.bf16 %v7984_v5  ;;  %v7979_v7 = vpop.permute.xlu0 %7978 }
 0x210   : > { %v7981_v57 = vunpack.i.h.bf16 %v7979_v7  ;;  %v7980_v29 = vunpack.i.l.bf16 %v7979_v7 }
 0x211   : > { %v1489_v34 = vsel %vm673_vm1, %v7985_v11, %v7986_v45  ;;  %v1488_v27 = vsel %vm673_vm1, %v7991_v8, %v7985_v11  ;;  %v9357_v8 = vpop.f32.mrf.mxu0 }
 0x212   : > { %1446 = vmatpush.msrb.mxu1 %v7981_v57  ;;  %v1278_v16 = vsel %vm617_vm0, %v7966_v40, %v7980_v29  ;;  %v1279_v9 = vsel %vm617_vm0, %v7980_v29, %v7981_v57  ;;  %1611 = vmatpush.msra.mxu2 %v1489_v34  ;;  %v9359_v57 = vpop.f32.mrf.mxu2 }
 0x213   : > { %1400 = vmatpush.msrb.mxu3 %v1278_v16  ;;  %1423 = vmatpush.msrb.mxu0 %v1279_v9  ;;  %v8046_v9 = vunpack.i.h.bf16 %v9366_v2 }
 0x214   : > { %7551 = vmatmul.msk.f32.vlgmr.msrb.gmra.mxu1 %vm1068_vm8, %v9158_v0  ;;  %7547 = vmatmul.msk.f32.vlgmr.msrb.gmra.mxu3 %vm1068_vm8, %v9158_v0 }
 0x215   : > { %1588 = vmatpush.msra.mxu1 %v1488_v27  ;;  %7549 = vmatmul.msk.f32.vlgmr.msrb.gmra.mxu0 %vm1068_vm8, %v9158_v0  ;;  %v8045_v27 = vunpack.i.l.bf16 %v9366_v2 }
 0x216   : > { %1542 = vmatpush.msra.mxu3 %v1486_v19  ;;  %1565 = vmatpush.msra.mxu0 %v1487_v38  ;;  %v1484_v6 = vpop.permute.xlu1 %1483  ;;  %v9370_v19 = vpop.f32.mrf.mxu1  ;;  %v9377_v38 = vld [vmem:[%s10884_s2 + $0x50] sm:$0xff] }
 0x217   : > { %7563 = vmatmul.msk.f32.vlgmr.msra.gmra.mxu2 %vm1068_vm8, %v9194_v59  ;;  %v7994_v24 = vpop.permute.xlu0 %7993  ;;  %v1490_v35 = vsel %vm673_vm1, %v7986_v45, %v1484_v6 }
 0x218   : > { %1657 = vmatpush.msrb.mxu0 %v1484_v6  ;;  %v7996_v41 = vunpack.i.h.bf16 %v7994_v24  ;;  %v7995_v48 = vunpack.i.l.bf16 %v7994_v24  ;;  %1634 = vmatpush.msrb.mxu3 %v1490_v35 }
 0x219   : > { %v9382_v24 = vpop.f32.mrf.mxu0 }
 0x21a   : > { %v1696_v49 = vsel %vm729_vm2, %v1683_v28, %v7995_v48  ;;  %v1697_v20 = vsel %vm729_vm2, %v7995_v48, %v7996_v41  ;;  %v9391_v48 = vpop.f32.mrf.mxu3 }
 0x21b   : > { %1730 = vmatpush.msrb.mxu1 %v1696_v49  ;;  %1753 = vmatpush.msrb.mxu2 %v1697_v20  ;;  %v7602_v49 = vld [vmem:[%s10884_s2 + $0x58] sm:$0xff] }
 0x21c   : > { %7552 = vmatmul.msk.f32.gmra.mxu1 %vm1068_vm8, %v9172_v32  ;;  %7548 = vmatmul.msk.f32.gmra.mxu3 %vm1068_vm8, %v9172_v32 }
 0x21d   : > { %7550 = vmatmul.msk.f32.gmra.mxu0 %vm1068_vm8, %v9172_v32 }
 0x21e   : > { %v8004_v43 = vpop.permute.xlu1 %8003  ;;  %v9384_v35 = vpop.f32.mrf.mxu2 }
 0x21f   : > { %7564 = vmatmul.msk.f32.gmra.mxu2 %vm1068_vm8, %v9208_v23  ;;  %v8006_v12 = vunpack.i.h.bf16 %v8004_v43  ;;  %v8005_v51 = vunpack.i.l.bf16 %v8004_v43  ;;  %v7999_v37 = vpop.permute.xlu0 %7998  ;;  %v9398_v20 = vpop.f32.mrf.mxu1 }
 0x220   : > { %v8001_v55 = vunpack.i.h.bf16 %v7999_v37  ;;  %v8000_v50 = vunpack.i.l.bf16 %v7999_v37 }
 0x221   : > { %v1698_v17 = vsel %vm729_vm2, %v7996_v41, %v8005_v51  ;;  %v1699_v62 = vsel %vm729_vm2, %v8005_v51, %v8006_v12  ;;  %v2333_v41 = vsel %vm903_vm5, %v8045_v27, %v8046_v9  ;;  %v9404_v51 = vpop.f32.mrf.mxu0 }
 0x222   : > { %v1700_v15 = vsel %vm729_vm2, %v8006_v12, %v8000_v50  ;;  %v1701_v46 = vsel %vm729_vm2, %v8000_v50, %v8001_v55 }
 0x223   : > { %1845 = vmatpush.msra.mxu2 %v1701_v46 }
 0x224   : > { %7561 = vmatmul.msk.f32.vlgmr.msra.gmra.mxu1 %vm1068_vm8, %v9194_v59  ;;  %7557 = vmatmul.msk.f32.vlgmr.msra.gmra.mxu3 %vm1068_vm8, %v9194_v59 }
 0x225   : > { %1822 = vmatpush.msra.mxu1 %v1700_v15  ;;  %7559 = vmatmul.msk.f32.vlgmr.msra.gmra.mxu0 %vm1068_vm8, %v9194_v59 }
 0x226   : > { %1776 = vmatpush.msra.mxu3 %v1698_v17  ;;  %1799 = vmatpush.msra.mxu0 %v1699_v62  ;;  %v8019_v0 = vpop.permute.xlu1 %8018  ;;  %v9401_v12 = vpop.f32.mrf.mxu2 }
 0x227   : > { %7573 = vmatmul.msk.f32.vlgmr.msrb.gmra.mxu2 %vm1068_vm8, %v9274_v63  ;;  %v8014_v4 = vpop.permute.xlu0 %8013  ;;  %v8020_v21 = vunpack.i.l.bf16 %v8019_v0  ;;  %v8021_v13 = vunpack.i.h.bf16 %v8019_v0  ;;  %v9422_v17 = vpop.f32.mrf.mxu1 }
 0x228   : > { %1987 = vmatpush.msrb.mxu2 %v1909_v60  ;;  %v8016_v40 = vunpack.i.h.bf16 %v8014_v4  ;;  %v8015_v56 = vunpack.i.l.bf16 %v8014_v4 }
 0x229   : > { %v1912_v33 = vsel %vm785_vm3, %v1904_v58, %v8020_v21  ;;  %v1910_v22 = vsel %vm785_vm3, %v8011_v53, %v8021_v13  ;;  %v9418_v53 = vld [vmem:[%s10884_s2 + $0x60] sm:$0xff]  ;;  %v9437_v4 = vpop.f32.mrf.mxu0 }
 0x22a   : > { %v1908_v10 = vsel %vm785_vm3, %v8016_v40, %v8010_v52  ;;  %v1907_v32 = vsel %vm785_vm3, %v8015_v56, %v8016_v40  ;;  %v9420_v52 = vpop.f32.mrf.mxu3  ;;  %v9444_v40 = vld [vmem:[%s10884_s2 + $0x68] sm:$0xff] }
 0x22c   : > { %7562 = vmatmul.msk.f32.gmra.mxu1 %vm1068_vm8, %v9208_v23  ;;  %7558 = vmatmul.msk.f32.gmra.mxu3 %vm1068_vm8, %v9208_v23 }
 0x22d   : > { %7560 = vmatmul.msk.f32.gmra.mxu0 %vm1068_vm8, %v9208_v23 }
 0x22e   : > { %v8029_v1 = vpop.permute.xlu1 %8028 }
 0x22f   : > { %7574 = vmatmul.msk.f32.gmra.mxu2 %vm1068_vm8, %v9288_v39  ;;  %v9312_v30 = vpop.permute.xlu0 %8023  ;;  %v8031_v14 = vunpack.i.h.bf16 %v8029_v1  ;;  %v8030_v36 = vunpack.i.l.bf16 %v8029_v1 }
 0x230   : > { %v8026_v42 = vunpack.i.h.bf16 %v9312_v30  ;;  %v8025_v31 = vunpack.i.l.bf16 %v9312_v30 }
 0x231   : > { %v2118_v45 = vsel %vm841_vm4, %v8030_v36, %v8031_v14  ;;  %v2119_v11 = vsel %vm841_vm4, %v8031_v14, %v2109_v3 }
 0x232   : > { %v2121_v25 = vsel %vm841_vm4, %v8025_v31, %v8026_v42  ;;  %v2120_v5 = vsel %vm841_vm4, %v2109_v3, %v8025_v31  ;;  %v9446_v56 = vpop.f32.mrf.mxu3 }
 0x234   : > { %7571 = vmatmul.msk.f32.vlgmr.msrb.gmra.mxu1 %vm1068_vm8, %v9274_v63  ;;  %7565 = vmatmul.msk.f32.vlgmr.msrb.gmra.mxu3 %vm1068_vm8, %v9194_v59 }
 0x235   : > { %1964 = vmatpush.msrb.mxu1 %v1908_v10  ;;  %7567 = vmatmul.msk.f32.vlgmr.msrb.gmra.mxu0 %vm1068_vm8, %v9194_v59  ;;  %v7585_v59 = vld [vmem:[%s10884_s2 + $0x40] sm:$0xff] }
 0x236   : > { %1868 = vmatpush.msrb.mxu3 %v8001_v55  ;;  %1941 = vmatpush.msrb.mxu0 %v1907_v32  ;;  %v8039_v29 = vpop.permute.xlu1 %8038 }
 0x237   : > { %7581 = vmatmul.msk.f32.vlgmr.msra.gmra.mxu2 %vm1068_vm8, %v9274_v63  ;;  %v9340_v18 = vpop.permute.xlu0 %8033  ;;  %v8041_v34 = vunpack.i.h.bf16 %v8039_v29  ;;  %v8040_v16 = vunpack.i.l.bf16 %v8039_v29  ;;  %v9509_v29 = vld [vmem:[%s10884_s2 + $0x70] sm:$0xff] }
 0x238   : > { %2079 = vmatpush.msra.mxu2 %v8020_v21  ;;  %v8036_v44 = vunpack.i.h.bf16 %v9340_v18  ;;  %v8035_v61 = vunpack.i.l.bf16 %v9340_v18 }
 0x239   : > { %v2122_v28 = vsel %vm841_vm4, %v8026_v42, %v8040_v16  ;;  %v2123_v6 = vsel %vm841_vm4, %v8040_v16, %v8041_v34 }
 0x23a   : > { %v2329_v7 = vsel %vm903_vm5, %v8035_v61, %v8036_v44 }
 0x23c   : > { %7572 = vmatmul.msk.f32.gmra.mxu1 %vm1068_vm8, %v9288_v39  ;;  %7566 = vmatmul.msk.f32.gmra.mxu3 %vm1068_vm8, %v9208_v23 }
 0x23d   : > { %7568 = vmatmul.msk.f32.gmra.mxu0 %vm1068_vm8, %v9208_v23  ;;  %v1911_v23 = vsel %vm785_vm3, %v8021_v13, %v1904_v58  ;;  %v2328_v13 = vpop.permute.xlu2 %2327  ;;  %vm7450_vm3 = vcmask 1024  }
 0x23e   : > { %v9406_v37 = vpop.permute.xlu1 %8053 }
 0x23f   : > { %7582 = vmatmul.msk.f32.gmra.mxu2 %vm1068_vm8, %v9288_v39  ;;  %v8049_v43 = vpop.permute.xlu0 %8048  ;;  %v8056_v50 = vunpack.i.h.bf16 %v9406_v37  ;;  %v8055_v15 = vunpack.i.l.bf16 %v9406_v37 }
 0x240   : > { %v8051_v54 = vunpack.i.h.bf16 %v8049_v43  ;;  %v8050_v55 = vunpack.i.l.bf16 %v8049_v43 }
 0x241   : > { %v2541_v60 = vsel %vm964_vm6, %v8055_v15, %v8056_v50 }
 0x242   : > { %v2332_v46 = vsel %vm903_vm5, %v8051_v54, %v8045_v27  ;;  %v2330_v62 = vsel %vm903_vm5, %v8036_v44, %v8050_v55 }
 0x244   : > { %7579 = vmatmul.msk.f32.vlgmr.msra.gmra.mxu1 %vm1068_vm8, %v9274_v63  ;;  %7575 = vmatmul.msk.f32.vlgmr.msra.gmra.mxu3 %vm1068_vm8, %v9274_v63 }
 0x245   : > { %2056 = vmatpush.msra.mxu1 %v1912_v33  ;;  %7577 = vmatmul.msk.f32.vlgmr.msra.gmra.mxu0 %vm1068_vm8, %v9274_v63  ;;  %v8064_v1 = vpop.permute.xlu2 %8063 }
 0x246   : > { %2010 = vmatpush.msra.mxu3 %v1910_v22  ;;  %2033 = vmatpush.msra.mxu0 %v1911_v23  ;;  %v9449_v0 = vpop.permute.xlu1 %8058  ;;  %v8066_v36 = vunpack.i.h.bf16 %v8064_v1  ;;  %v8065_v3 = vunpack.i.l.bf16 %v8064_v1 }
 0x247   : > { %7591 = vmatmul.msk.f32.vlgmr.msrb.gmra.mxu2 %vm1068_vm8, %v7585_v59  ;;  %v2527_v30 = vpop.permute.xlu0 %2526  ;;  %v8061_v58 = vunpack.i.h.bf16 %v9449_v0  ;;  %v8060_v42 = vunpack.i.l.bf16 %v9449_v0 }
 0x248   : > { %2221 = vmatpush.msrb.mxu2 %v2121_v25  ;;  %v2540_v31 = vsel %vm964_vm6, %v2527_v30, %v8055_v15  ;;  %v2542_v2 = vsel %vm964_vm6, %v8056_v50, %v8065_v3 }
 0x249   : > { %v2545_v22 = vsel %vm964_vm6, %v8060_v42, %v8061_v58 }
 0x24c   : > { %7580 = vmatmul.msk.f32.gmra.mxu1 %vm1068_vm8, %v9288_v39  ;;  %7576 = vmatmul.msk.f32.gmra.mxu3 %vm1068_vm8, %v9288_v39 }
 0x24d   : > { %7578 = vmatmul.msk.f32.gmra.mxu0 %vm1068_vm8, %v9288_v39  ;;  %v8079_v15 = vpop.permute.xlu2 %8078 }
 0x24f   : > { %7592 = vmatmul.msk.f32.gmra.mxu2 %vm1068_vm8, %v7586_v26  ;;  %v9491_v14 = vpop.permute.xlu0 %8068 }
 0x254   : > { %7589 = vmatmul.msk.f32.vlgmr.msrb.gmra.mxu1 %vm1068_vm8, %v7585_v59  ;;  %7583 = vmatmul.msk.f32.vlgmr.msrb.gmra.mxu3 %vm1068_vm8, %v9274_v63  ;;  %v2331_v63 = vsel %vm903_vm5, %v8050_v55, %v8051_v54  ;;  %v9451_v10 = vpop.f32.mrf.mxu1 }
 0x255   : > { %2198 = vmatpush.msrb.mxu1 %v2120_v5  ;;  %7587 = vmatmul.msk.f32.vlgmr.msrb.gmra.mxu0 %vm1068_vm8, %v7585_v59 }
 0x256   : > { %2152 = vmatpush.msrb.mxu3 %v2118_v45  ;;  %2175 = vmatpush.msrb.mxu0 %v2119_v11  ;;  %v8071_v45 = vunpack.i.h.bf16 %v9491_v14  ;;  %v8070_v11 = vunpack.i.l.bf16 %v9491_v14  ;;  %v7650_v14 = vld [vmem:[%s10884_s2 + $0x88] sm:$0xff] }
 0x257   : > { %7599 = vmatmul.msk.f32.vlgmr.msra.gmra.mxu2 %vm1068_vm8, %v7585_v59  ;;  %v2748_v0 = vpop.permute.xlu0 %2747 }
 0x258   : > { %2363 = vmatpush.msra.mxu2 %v2329_v7  ;;  %v2544_v7 = vsel %vm964_vm6, %v8066_v36, %v8060_v42  ;;  %v2753_v16 = vsel %vm1025_vm7, %v8070_v11, %v8071_v45 }
 0x25c   : > { %7590 = vmatmul.msk.f32.gmra.mxu1 %vm1068_vm8, %v7586_v26  ;;  %7584 = vmatmul.msk.f32.gmra.mxu3 %vm1068_vm8, %v9288_v39  ;;  %v9435_v39 = vpop.f32.mrf.mxu2  ;;  %v9480_v25 = vpop.f32.mrf.mxu1 }
 0x25d   : > { %7588 = vmatmul.msk.f32.gmra.mxu0 %vm1068_vm8, %v7586_v26 }
 0x25f   : > { %7600 = vmatmul.msk.f32.gmra.mxu2 %vm1068_vm8, %v7586_v26 }
 0x264   : > { %7597 = vmatmul.msk.f32.vlgmr.msra.gmra.mxu1 %vm1068_vm8, %v7585_v59  ;;  %7593 = vmatmul.msk.f32.vlgmr.msra.gmra.mxu3 %vm1068_vm8, %v7585_v59  ;;  %v9455_v32 = vpop.f32.mrf.mxu2 }
 0x265   : > { %2290 = vmatpush.msra.mxu1 %v8041_v34  ;;  %7595 = vmatmul.msk.f32.vlgmr.msra.gmra.mxu0 %vm1068_vm8, %v7585_v59  ;;  %v2334_v59 = vsel %vm903_vm5, %v8046_v9, %v2328_v13  ;;  %v2543_v34 = vsel %vm964_vm6, %v8065_v3, %v8066_v36 }
 0x266   : > { %2244 = vmatpush.msra.mxu3 %v2122_v28  ;;  %2267 = vmatpush.msra.mxu0 %v2123_v6  ;;  %v9537_v6 = vld [vmem:[%s10884_s2 + $0x78] sm:$0xff] }
 0x267   : > { %7609 = vmatmul.msk.f32.vlgmr.msrb.gmra.mxu2 %vm1068_vm8, %v9377_v38 }
 0x268   : > { %2455 = vmatpush.msrb.mxu2 %v2333_v41  ;;  %v8074_v41 = vpop.permute.xlu1 %8073 }
 0x269   : > { %v8076_v43 = vunpack.i.h.bf16 %v8074_v41  ;;  %v8075_v37 = vunpack.i.l.bf16 %v8074_v41 }
 0x26c   : > { %7598 = vmatmul.msk.f32.gmra.mxu1 %vm1068_vm8, %v7586_v26  ;;  %7594 = vmatmul.msk.f32.gmra.mxu3 %vm1068_vm8, %v7586_v26  ;;  %v9478_v23 = vpop.f32.mrf.mxu2 }
 0x26d   : > { %7596 = vmatmul.msk.f32.gmra.mxu0 %vm1068_vm8, %v7586_v26 }
 0x26f   : > { %7610 = vmatmul.msk.f32.gmra.mxu2 %vm1068_vm8, %v7602_v49 }
 0x271   : > { %v9457_v21 = vpop.f32.mrf.mxu0 }
 0x274   : > { %7607 = vmatmul.msk.f32.vlgmr.msrb.gmra.mxu1 %vm1068_vm8, %v9377_v38  ;;  %7603 = vmatmul.msk.f32.vlgmr.msrb.gmra.mxu3 %vm1068_vm8, %v9377_v38  ;;  %v9495_v61 = vpop.f32.mrf.mxu2 }
 0x275   : > { %2432 = vmatpush.msrb.mxu1 %v2332_v46  ;;  %7605 = vmatmul.msk.f32.vlgmr.msrb.gmra.mxu0 %vm1068_vm8, %v9377_v38  ;;  %v2752_v46 = vsel %vm1025_vm7, %v8076_v43, %v8070_v11 }
 0x276   : > { %2386 = vmatpush.msrb.mxu3 %v2330_v62  ;;  %2409 = vmatpush.msrb.mxu0 %v2331_v63  ;;  %v2751_v62 = vsel %vm1025_vm7, %v8075_v37, %v8076_v43  ;;  %v8080_v63 = vunpack.i.l.bf16 %v8079_v15 }
 0x277   : > { %7619 = vmatmul.msk.f32.vlgmr.msra.gmra.mxu2 %vm1068_vm8, %v9418_v53  ;;  %v9466_v33 = vpop.f32.mrf.mxu3 }
 0x278   : > { %2597 = vmatpush.msra.mxu2 %v2541_v60  ;;  %v2756_v1 = vsel %vm1025_vm7, %v2748_v0, %v8080_v63 }
 0x279   : > { %v9482_v26 = vpop.f32.mrf.mxu0 }
 0x27c   : > { %7608 = vmatmul.msk.f32.gmra.mxu1 %vm1068_vm8, %v7602_v49  ;;  %7604 = vmatmul.msk.f32.gmra.mxu3 %vm1068_vm8, %v7602_v49 }
 0x27d   : > { %7606 = vmatmul.msk.f32.gmra.mxu0 %vm1068_vm8, %v7602_v49 }
 0x27f   : > { %7620 = vmatmul.msk.f32.gmra.mxu2 %vm1068_vm8, %v9444_v40  ;;  %v9487_v18 = vpop.f32.mrf.mxu3 }
 0x284   : > { %7615 = vmatmul.msk.f32.vlgmr.msra.gmra.mxu1 %vm1068_vm8, %v9377_v38  ;;  %7611 = vmatmul.msk.f32.vlgmr.msra.gmra.mxu3 %vm1068_vm8, %v9377_v38 }
 0x285   : > { %2574 = vmatpush.msra.mxu1 %v2540_v31  ;;  %7613 = vmatmul.msk.f32.vlgmr.msra.gmra.mxu0 %vm1068_vm8, %v9377_v38 }
 0x286   : > { %2478 = vmatpush.msra.mxu3 %v2334_v59  ;;  %2501 = vmatpush.msra.mxu0 %v2328_v13 }
 0x287   : > { %7627 = vmatmul.msk.f32.vlgmr.msrb.gmra.mxu2 %vm1068_vm8, %v9418_v53 }
 0x288   : > { %2689 = vmatpush.msrb.mxu2 %v2545_v22  ;;  %v8081_v22 = vunpack.i.h.bf16 %v8079_v15 }
 0x28a   : > { %v2754_v36 = vsel %vm1025_vm7, %v8071_v45, %v8081_v22  ;;  %v2755_v3 = vsel %vm1025_vm7, %v8081_v22, %v2748_v0 }
 0x28c   : > { %7616 = vmatmul.msk.f32.gmra.mxu1 %vm1068_vm8, %v7602_v49  ;;  %7612 = vmatmul.msk.f32.gmra.mxu3 %vm1068_vm8, %v7602_v49 }
 0x28d   : > { %7614 = vmatmul.msk.f32.gmra.mxu0 %vm1068_vm8, %v7602_v49 }
 0x28f   : > { %7628 = vmatmul.msk.f32.gmra.mxu2 %vm1068_vm8, %v9444_v40 }
 0x291   : > { %v9493_v44 = vpop.f32.mrf.mxu1 }
 0x292   : > { %v9497_v5 = vpop.f32.mrf.mxu0 }
 0x294   : > { %7625 = vmatmul.msk.f32.vlgmr.msrb.gmra.mxu1 %vm1068_vm8, %v9418_v53  ;;  %7621 = vmatmul.msk.f32.vlgmr.msrb.gmra.mxu3 %vm1068_vm8, %v9418_v53 }
 0x295   : > { %2666 = vmatpush.msrb.mxu1 %v2544_v7  ;;  %7623 = vmatmul.msk.f32.vlgmr.msrb.gmra.mxu0 %vm1068_vm8, %v9418_v53 }
 0x296   : > { %2620 = vmatpush.msrb.mxu3 %v2542_v2  ;;  %2643 = vmatpush.msrb.mxu0 %v2543_v34 }
 0x297   : > { %7637 = vmatmul.msk.f32.vlgmr.msra.gmra.mxu2 %vm1068_vm8, %v9509_v29  ;;  %v9522_v9 = vpop.f32.mrf.mxu3 }
 0x298   : > { %2831 = vmatpush.msra.mxu2 %v2753_v16 }
 0x299   : > { %v9524_v27 = vpop.f32.mrf.mxu1 }
 0x29a   : > { %v9526_v38 = vpop.f32.mrf.mxu0  ;;  %v9528_v28 = vpop.f32.mrf.mxu2 }
 0x29c   : > { %7626 = vmatmul.msk.f32.gmra.mxu1 %vm1068_vm8, %v9444_v40  ;;  %7622 = vmatmul.msk.f32.gmra.mxu3 %vm1068_vm8, %v9444_v40 }
 0x29d   : > { %7624 = vmatmul.msk.f32.gmra.mxu0 %vm1068_vm8, %v9444_v40 }
 0x29f   : > { %7638 = vmatmul.msk.f32.gmra.mxu2 %vm1068_vm8, %v9537_v6  ;;  %v9543_v49 = vpop.f32.mrf.mxu3 }
 0x2a1   : > { %v9545_v54 = vpop.f32.mrf.mxu1 }
 0x2a2   : > { %v9547_v55 = vpop.f32.mrf.mxu0  ;;  %v9549_v50 = vpop.f32.mrf.mxu2 }
 0x2a4   : > { %7635 = vmatmul.msk.f32.vlgmr.msra.gmra.mxu1 %vm1068_vm8, %v9509_v29  ;;  %7629 = vmatmul.msk.f32.vlgmr.msra.gmra.mxu3 %vm1068_vm8, %v9418_v53 }
 0x2a5   : > { %2808 = vmatpush.msra.mxu1 %v2752_v46  ;;  %7631 = vmatmul.msk.f32.vlgmr.msra.gmra.mxu0 %vm1068_vm8, %v9418_v53 }
 0x2a6   : > { %2712 = vmatpush.msra.mxu3 %v8061_v58  ;;  %2785 = vmatpush.msra.mxu0 %v2751_v62 }
 0x2a7   : > { %7645 = vmatmul.msk.f32.vlgmr.msrb.gmra.mxu2 %vm1068_vm8, %v9509_v29  ;;  %v9563_v60 = vpop.f32.mrf.mxu3 }
 0x2a8   : > { %2923 = vmatpush.msrb.mxu2 %v8080_v63 }
 0x2a9   : > { %v9565_v30 = vpop.f32.mrf.mxu1 }
 0x2aa   : > { %v9567_v13 = vpop.f32.mrf.mxu0  ;;  %v9569_v42 = vpop.f32.mrf.mxu2 }
 0x2ac   : > { %7636 = vmatmul.msk.f32.gmra.mxu1 %vm1068_vm8, %v9537_v6  ;;  %7630 = vmatmul.msk.f32.gmra.mxu3 %vm1068_vm8, %v9444_v40 }
 0x2ad   : > { %7632 = vmatmul.msk.f32.gmra.mxu0 %vm1068_vm8, %v9444_v40  ;;  %v7649_v40 = vld [vmem:[%s10884_s2 + $0x80] sm:$0xff] }
 0x2af   : > { %7646 = vmatmul.msk.f32.gmra.mxu2 %vm1068_vm8, %v9537_v6  ;;  %v9579_v53 = vpop.f32.mrf.mxu3 }
 0x2b1   : > { %v9581_v58 = vpop.f32.mrf.mxu1 }
 0x2b2   : > { %10911 = vst [vmem:[#allocation2_spill] sm:$0xff] %v9581_v58  ;;  %v9583_v31 = vpop.f32.mrf.mxu0  ;;  %v9585_v59 = vpop.f32.mrf.mxu2 }
 0x2b4   : > { %7643 = vmatmul.msk.f32.vlgmr.msrb.gmra.mxu1 %vm1068_vm8, %v9509_v29  ;;  %7639 = vmatmul.msk.f32.vlgmr.msrb.gmra.mxu3 %vm1068_vm8, %v9509_v29 }
 0x2b5   : > { %2900 = vmatpush.msrb.mxu1 %v2756_v1  ;;  %7641 = vmatmul.msk.f32.vlgmr.msrb.gmra.mxu0 %vm1068_vm8, %v9509_v29 }
 0x2b6   : > { %2854 = vmatpush.msrb.mxu3 %v2754_v36  ;;  %2877 = vmatpush.msrb.mxu0 %v2755_v3 }
 0x2b7   : > { %7655 = vmatmul.msk.f32.vlgmr.msra.gmra.mxu2 %vm1068_vm8, %v7649_v40  ;;  %v9602_v11 = vpop.f32.mrf.mxu3 }
 0x2b9   : > { %v9604_v7 = vpop.f32.mrf.mxu1 }
 0x2ba   : > { %v9606_v2 = vpop.f32.mrf.mxu0  ;;  %v9608_v34 = vpop.f32.mrf.mxu2 }
 0x2bb   : > { %10912 = vst [vmem:[#allocation3_spill] sm:$0xff] %v9608_v34 }
 0x2bc   : > { %7644 = vmatmul.msk.f32.gmra.mxu1 %vm1068_vm8, %v9537_v6  ;;  %7640 = vmatmul.msk.f32.gmra.mxu3 %vm1068_vm8, %v9537_v6 }
 0x2bd   : > { %7642 = vmatmul.msk.f32.gmra.mxu0 %vm1068_vm8, %v9537_v6 }
 0x2bf   : > { %7656 = vmatmul.msk.f32.gmra.mxu2 %vm1068_vm8, %v7650_v14  ;;  %v9620_v45 = vpop.f32.mrf.mxu3 }
 0x2c1   : > { %v9622_v16 = vpop.f32.mrf.mxu1 }
 0x2c2   : > { %10913 = vst [vmem:[#allocation4_spill] sm:$0xff] %v9622_v16  ;;  %v9624_v41 = vpop.f32.mrf.mxu0  ;;  %v9626_v43 = vpop.f32.mrf.mxu2 }
 0x2c3   : > { %10914 = vst [vmem:[#allocation5_spill] sm:$0xff] %v9624_v41 }
 0x2c4   : > { %10915 = vst [vmem:[#allocation6_spill] sm:$0xff] %v9626_v43  ;;  %7653 = vmatmul.msk.f32.vlgmr.msra.gmra.mxu1 %vm1068_vm8, %v7649_v40  ;;  %7647 = vmatmul.msk.f32.vlgmr.msra.gmra.mxu3 %vm1068_vm8, %v9509_v29 }
 0x2c5   : > { %7651 = vmatmul.msk.f32.vlgmr.msra.gmra.mxu0 %vm1068_vm8, %v7649_v40 }
 0x2c7   : > { %7663 = vmatmul.msk.f32.vlgmr.msrb.gmra.mxu2 %vm1068_vm8, %v7649_v40  ;;  %v9633_v37 = vpop.f32.mrf.mxu3 }
 0x2c9   : > { %v9635_v15 = vpop.f32.mrf.mxu1 }
 0x2ca   : > { %10916 = vst [vmem:[#allocation7_spill] sm:$0xff] %v9635_v15  ;;  %v9637_v46 = vpop.f32.mrf.mxu0  ;;  %v9639_v62 = vpop.f32.mrf.mxu2 }
 0x2cb   : > { %10917 = vst [vmem:[#allocation8_spill] sm:$0xff] %v9637_v46 }
 0x2cc   : > { %10918 = vst [vmem:[#allocation9_spill] sm:$0xff] %v9639_v62  ;;  %7654 = vmatmul.msk.f32.gmra.mxu1 %vm1068_vm8, %v7650_v14  ;;  %7648 = vmatmul.msk.f32.gmra.mxu3 %vm1068_vm8, %v9537_v6 }
 0x2cd   : > { %7652 = vmatmul.msk.f32.gmra.mxu0 %vm1068_vm8, %v7650_v14 }
 0x2cf   : > { %7664 = vmatmul.msk.f32.gmra.mxu2 %vm1068_vm8, %v7650_v14  ;;  %v9646_v29 = vpop.f32.mrf.mxu3 }
 0x2d0   : > { %10919 = vst [vmem:[#allocation10_spill] sm:$0xff] %v9646_v29 }
 0x2d1   : > { %v9648_v63 = vpop.f32.mrf.mxu1 }
 0x2d2   : > { %10920 = vst [vmem:[#allocation11_spill] sm:$0xff] %v9648_v63  ;;  %v9650_v0 = vpop.f32.mrf.mxu0  ;;  %v9652_v22 = vpop.f32.mrf.mxu2 }
 0x2d3   : > { %10921 = vst [vmem:[#allocation12_spill] sm:$0xff] %v9650_v0 }
 0x2d4   : > { %10922 = vst [vmem:[#allocation13_spill] sm:$0xff] %v9652_v22  ;;  %7661 = vmatmul.msk.f32.vlgmr.msrb.gmra.mxu1 %vm1068_vm8, %v7649_v40  ;;  %7657 = vmatmul.msk.f32.vlgmr.msrb.gmra.mxu3 %vm1068_vm8, %v7649_v40 }
 0x2d5   : > { %7659 = vmatmul.msk.f32.vlgmr.msrb.gmra.mxu0 %vm1068_vm8, %v7649_v40 }
 0x2d7   : > { %v9657_v1 = vpop.f32.mrf.mxu3 }
 0x2d9   : > { %v9659_v6 = vpop.f32.mrf.mxu1 }
 0x2da   : > { %v9661_v36 = vpop.f32.mrf.mxu0  ;;  %v9663_v3 = vpop.f32.mrf.mxu2 }
 0x2dc   : > { %7662 = vmatmul.msk.f32.gmra.mxu1 %vm1068_vm8, %v7650_v14  ;;  %7658 = vmatmul.msk.f32.gmra.mxu3 %vm1068_vm8, %v7650_v14 }
 0x2dd   : > { %7660 = vmatmul.msk.f32.gmra.mxu0 %vm1068_vm8, %v7650_v14 }
 0x2df   : > { %v9668_v22 = vpop.f32.mrf.mxu3 }
 0x2e0   : > { %10923 = vst [vmem:[#allocation14_spill] sm:$0xff] %v9668_v22 }
 0x2e1   : > { %v9670_v0 = vpop.f32.mrf.mxu1 }
 0x2e2   : > { %10924 = vst [vmem:[#allocation15_spill] sm:$0xff] %v9670_v0  ;;  %v9672_v63 = vpop.f32.mrf.mxu0  ;;  %v9674_v40 = vpop.f32.mrf.mxu2 }
 0x2e3   : > { %10925 = vst [vmem:[#allocation16_spill] sm:$0xff] %v9672_v63 }
 0x2e4   : > { %10926 = vst [vmem:[#allocation17_spill] sm:$0xff] %v9674_v40 }
 0x2e7   : > { %v9676_v62 = vpop.f32.mrf.mxu3 }
 0x2e8   : > { %10927 = vst [vmem:[#allocation18_spill] sm:$0xff] %v9676_v62 }
 0x2e9   : > { %v9678_v46 = vpop.f32.mrf.mxu1 }
 0x2ea   : > { %10928 = vst [vmem:[#allocation19_spill] sm:$0xff] %v9678_v46  ;;  %v9680_v15 = vpop.f32.mrf.mxu0  ;;  %v9682_v43 = vpop.f32.mrf.mxu2 }
 0x2eb   : > { %10929 = vst [vmem:[#allocation20_spill] sm:$0xff] %v9680_v15 }
 0x2ec   : > { %10930 = vst [vmem:[#allocation21_spill] sm:$0xff] %v9682_v43 }
 0x2ef   : > { %v9684_v41 = vpop.f32.mrf.mxu3 }
 0x2f0   : > { %10931 = vst [vmem:[#allocation22_spill] sm:$0xff] %v9684_v41 }
 0x2f1   : > { %v9686_v16 = vpop.f32.mrf.mxu1 }
 0x2f2   : > { %10932 = vst [vmem:[#allocation23_spill] sm:$0xff] %v9686_v16  ;;  %v9688_v14 = vpop.f32.mrf.mxu0  ;;  %v9690_v22 = vpop.f32.mrf.mxu2 }
 0x2f3   : > { %10933 = vst [vmem:[#allocation24_spill] sm:$0xff] %v9688_v14 }
 0x2f4   : > { %10934 = vst [vmem:[#allocation25_spill] sm:$0xff] %v9690_v22 }
 0x2f7   : > { %v9692_v0 = vpop.f32.mrf.mxu3 }
 0x2f8   : > { %10935 = vst [vmem:[#allocation26_spill] sm:$0xff] %v9692_v0 }
 0x2f9   : > { %v9694_v63 = vpop.f32.mrf.mxu1 }
 0x2fa   : > { %10936 = vst [vmem:[#allocation27_spill] sm:$0xff] %v9694_v63  ;;  %v9696_v40 = vpop.f32.mrf.mxu0  ;;  %v9698_v62 = vpop.f32.mrf.mxu2 }
 0x2fb   : > { %10937 = vst [vmem:[#allocation28_spill] sm:$0xff] %v9698_v62 }
 0x2ff   : > { %v9700_v46 = vpop.f32.mrf.mxu3 }
 0x300   : > { %10938 = vst [vmem:[#allocation29_spill] sm:$0xff] %v9700_v46 }
 0x301   : > { %v9702_v15 = vpop.f32.mrf.mxu1 }
 0x302   : > { %10939 = vst [vmem:[#allocation30_spill] sm:$0xff] %v9702_v15  ;;  %v9704_v43 = vpop.f32.mrf.mxu0  ;;  %v9706_v41 = vpop.f32.mrf.mxu2 }
 0x303   : > { %10940 = vst [vmem:[#allocation31_spill] sm:$0xff] %v9704_v43 }
 0x304   : > { %10941 = vst [vmem:[#allocation32_spill] sm:$0xff] %v9706_v41 }
 0x307   : > { %v9708_v16 = vpop.f32.mrf.mxu3 }
 0x308   : > { %10942 = vst [vmem:[#allocation33_spill] sm:$0xff] %v9708_v16 }
 0x309   : > { %v9710_v14 = vpop.f32.mrf.mxu1 }
 0x30a   : > { %10943 = vst [vmem:[#allocation34_spill] sm:$0xff] %v9710_v14  ;;  %v9712_v22 = vpop.f32.mrf.mxu0  ;;  %v9714_v0 = vpop.f32.mrf.mxu2 }
 0x30b   : > { %10944 = vst [vmem:[#allocation35_spill] sm:$0xff] %v9712_v22 }
 0x30c   : > { %10945 = vst [vmem:[#allocation36_spill] sm:$0xff] %v9714_v0 }
 0x30f   : > { %v9716_v63 = vpop.f32.mrf.mxu3 }
 0x310   : > { %10946 = vst [vmem:[#allocation37_spill] sm:$0xff] %v9716_v63 }
 0x311   : > { %v9718_v29 = vpop.f32.mrf.mxu1 }
 0x312   : > { %10947 = vst [vmem:[#allocation38_spill] sm:$0xff] %v9718_v29  ;;  %v9720_v62 = vpop.f32.mrf.mxu0  ;;  %v9722_v46 = vpop.f32.mrf.mxu2 }
 0x313   : > { %10948 = vst [vmem:[#allocation39_spill] sm:$0xff] %v9720_v62 }
 0x314   : > { %10949 = vst [vmem:[#allocation40_spill] sm:$0xff] %v9722_v46 }
 0x317   : > { %v9724_v15 = vpop.f32.mrf.mxu3 }
 0x318   : > { %10950 = vst [vmem:[#allocation41_spill] sm:$0xff] %v9724_v15 }
 0x319   : > { %v9726_v43 = vpop.f32.mrf.mxu1 }
 0x31a   : > { %10951 = vst [vmem:[#allocation42_spill] sm:$0xff] %v9726_v43  ;;  %v9728_v41 = vpop.f32.mrf.mxu0  ;;  %v9730_v16 = vpop.f32.mrf.mxu2 }
 0x31b   : > { %10952 = vst [vmem:[#allocation43_spill] sm:$0xff] %v9728_v41 }
 0x31c   : > { %10953 = vst [vmem:[#allocation44_spill] sm:$0xff] %v9730_v16 }
 0x31f   : > { %v9732_v14 = vpop.f32.mrf.mxu3 }
 0x320   : > { %10954 = vst [vmem:[#allocation45_spill] sm:$0xff] %v9732_v14 }
 0x321   : > { %v9734_v22 = vpop.f32.mrf.mxu1 }
 0x322   : > { %10955 = vst [vmem:[#allocation46_spill] sm:$0xff] %v9734_v22  ;;  %v9736_v0 = vpop.f32.mrf.mxu0  ;;  %v9738_v63 = vpop.f32.mrf.mxu2 }
 0x323   : > { %10956 = vst [vmem:[#allocation47_spill] sm:$0xff] %v9736_v0  ;;  %v1059_v22 = vpop.permute.xlu2 %1058  ;;  %v1064_v0 = vpop.permute.xlu1 %1063 }
 0x324   : > { %10957 = vst [vmem:[#allocation48_spill] sm:$0xff] %v9738_v63  ;;  %v1240_v63 = vadd.f32 %v9404_v51, %v1059_v22  ;;  %v1242_v51 = vadd.f32 %v9384_v35, %v1059_v22 }
 0x327   : > { %v9740_v29 = vpop.f32.mrf.mxu3 }
 0x328   : > { %10958 = vst [vmem:[#allocation49_spill] sm:$0xff] %v9740_v29  ;;  %v1239_v29 = vadd.f32 %v9420_v52, %v1059_v22  ;;  %v1241_v52 = vadd.f32 %v9398_v20, %v1059_v22 }
 0x329   : > { %v9742_v62 = vpop.f32.mrf.mxu1 }
 0x32a   : > { %10959 = vst [vmem:[#allocation50_spill] sm:$0xff] %v9742_v62  ;;  %v9744_v46 = vpop.f32.mrf.mxu0  ;;  %v9746_v15 = vpop.f32.mrf.mxu2  ;;  %v1244_v62 = vadd.f32 %v9391_v48, %v1064_v0  ;;  %v1457_v48 = vadd.f32 %v9435_v39, %v1239_v29 }
 0x32b   : > { %10960 = vst [vmem:[#allocation51_spill] sm:$0xff] %v9744_v46  ;;  %v1238_v46 = vadd.f32 %v9342_v47, %v1059_v22 }
 0x32c   : > { %10961 = vst [vmem:[#allocation52_spill] sm:$0xff] %v9746_v15  ;;  %v1237_v15 = vadd.f32 %v9370_v19, %v1059_v22 }
 0x32d   : > { %v1456_v47 = vadd.f32 %v9451_v10, %v1238_v46  ;;  %v1458_v10 = vadd.f32 %v9522_v9, %v1240_v63  ;;  %v10967_v63 = vld [vmem:[#allocation3_spill] sm:$0xff] }
 0x32e   : > { %v1455_v39 = vadd.f32 %v9457_v21, %v1237_v15  ;;  %v1459_v21 = vadd.f32 %v9497_v5, %v1241_v52  ;;  %v10973_v52 = vld [vmem:[#allocation45_spill] sm:$0xff] }
 0x32f   : > { %v9748_v43 = vpop.f32.mrf.mxu3  ;;  %v1667_v5 = vadd.f32 %v9547_v55, %v1456_v47 }
 0x330   : > { %10962 = vst [vmem:[#allocation53_spill] sm:$0xff] %v9748_v43  ;;  %v1236_v43 = vadd.f32 %v9357_v8, %v1059_v22  ;;  %v1666_v9 = vadd.f32 %v9563_v60, %v1455_v39  ;;  %v10978_v39 = vld [vmem:[#allocation9_spill] sm:$0xff] }
 0x331   : > { %v9750_v41 = vpop.f32.mrf.mxu1  ;;  %v1878_v55 = vadd.f32 %v9633_v37, %v1667_v5 }
 0x332   : > { %10963 = vst [vmem:[#allocation54_spill] sm:$0xff] %v9750_v41  ;;  %v9752_v16 = vpop.f32.mrf.mxu0  ;;  %v9754_v14 = vpop.f32.mrf.mxu2  ;;  %v1243_v41 = vadd.f32 %v9382_v24, %v1064_v0  ;;  %v1454_v19 = vadd.f32 %v9466_v33, %v1236_v43  ;;  %v1247_v24 = vadd.f32 %v9437_v4, %v1064_v0  ;;  %v1249_v33 = vadd.f32 %v9401_v12, %v1064_v0 }
 0x333   : > { %10964 = vst [vmem:[#allocation55_spill] sm:$0xff] %v9752_v16  ;;  %v1246_v16 = vadd.f32 %v9446_v56, %v1064_v0  ;;  %v1245_v56 = vadd.f32 %v9359_v57, %v1064_v0 }
 0x334   : > { %10965 = vst [vmem:[#allocation56_spill] sm:$0xff] %v9754_v14  ;;  %v1462_v14 = vadd.f32 %v9482_v26, %v1244_v62  ;;  %v1461_v8 = vadd.f32 %v9487_v18, %v1243_v41  ;;  %v1460_v26 = vadd.f32 %v9493_v44, %v1242_v51  ;;  %v1248_v18 = vadd.f32 %v9422_v17, %v1064_v0  ;;  %v10968_v0 = vld [vmem:[#allocation10_spill] sm:$0xff] }
 0x335   : > { %v1464_v4 = vadd.f32 %v9455_v32, %v1246_v16  ;;  %v1463_v57 = vadd.f32 %v9480_v25, %v1245_v56  ;;  %v1465_v44 = vadd.f32 %v9543_v49, %v1247_v24  ;;  %v1665_v41 = vadd.f32 %v9478_v23, %v1454_v19  ;;  %v10972_v51 = vld [vmem:[#allocation30_spill] sm:$0xff]  ;;  %v10976_v24 = vld [vmem:[#allocation7_spill] sm:$0xff] }
 0x336   : > { %v1673_v35 = vadd.f32 %v9579_v53, %v1462_v14  ;;  %v1671_v53 = vadd.f32 %v9583_v31, %v1460_v26  ;;  %v1672_v43 = vadd.f32 %v9495_v61, %v1461_v8  ;;  %v1467_v12 = vadd.f32 %v9524_v27, %v1249_v33  ;;  %v10971_v14 = vld [vmem:[#allocation14_spill] sm:$0xff]  ;;  %v10977_v26 = vld [vmem:[#allocation8_spill] sm:$0xff]  ;;  %v10979_v33 = vld [vmem:[#allocation11_spill] sm:$0xff] }
 0x337   : > { %v9763_v34 = vpop.f32.mrf.mxu3  ;;  %v1466_v17 = vadd.f32 %v9526_v38, %v1248_v18  ;;  %v1669_v49 = vadd.f32 %v9528_v28, %v1458_v10  ;;  %v1668_v31 = vadd.f32 %v9545_v54, %v1457_v48  ;;  %v1670_v23 = vadd.f32 %v9602_v11, %v1459_v21  ;;  %v10974_v48 = vld [vmem:[#allocation5_spill] sm:$0xff]  ;;  %v10975_v19 = vld [vmem:[#allocation6_spill] sm:$0xff]  ;;  %v10983_v21 = vld [vmem:[#allocation15_spill] sm:$0xff] }
 0x338   : > { %v1884_v32 = vadd.f32 %v9585_v59, %v1673_v35  ;;  %v1882_v25 = vadd.f32 %v9657_v1, %v1671_v53  ;;  %v1883_v61 = vadd.f32 %v9604_v7, %v1672_v43  ;;  %v1676_v27 = vadd.f32 %v9549_v50, %v1465_v44  ;;  %v10969_v1 = vld [vmem:[#allocation29_spill] sm:$0xff]  ;;  %v10981_v44 = vld [vmem:[#allocation47_spill] sm:$0xff] }
 0x339   : > { %v9773_v58 = vpop.f32.mrf.mxu1  ;;  %v1675_v38 = vadd.f32 %v9565_v30, %v1464_v4  ;;  %v1674_v59 = vadd.f32 %v9567_v13, %v1463_v57  ;;  %v1877_v28 = vadd.f32 %v9569_v42, %v1666_v9  ;;  %v1677_v54 = vadd.f32 %v9620_v45, %v1466_v17  ;;  %v10966_v13 = vld [vmem:[#allocation2_spill] sm:$0xff]  ;;  %v10980_v4 = vld [vmem:[#allocation12_spill] sm:$0xff] }
 0x33a   : > { %v9779_v62 = vpop.f32.mrf.mxu0  ;;  %v9781_v20 = vpop.f32.mrf.mxu2  ;;  %v2095_v60 = vadd.f32 %v9659_v6, %v1884_v32  ;;  %v2094_v11 = vadd.f32 %v9661_v36, %v1883_v61  ;;  %v1678_v7 = vadd.f32 %v9606_v2, %v1467_v12  ;;  %v2093_v50 = vadd.f32 %v9663_v3, %v1882_v25  ;;  %v10970_v36 = vld [vmem:[#allocation4_spill] sm:$0xff] }
 0x33b   : > { %v1876_v42 = vadd.f32 %v10966_v13, %v1665_v41  ;;  %v1881_v45 = vadd.f32 %v10967_v63, %v1670_v23  ;;  %v1885_v22 = vadd.f32 %v10968_v0, %v1674_v59  ;;  %v1880_v2 = vadd.f32 %v10970_v36, %v1669_v49  ;;  %v10982_v41 = vld [vmem:[#allocation13_spill] sm:$0xff]  ;;  %v10984_v12 = vld [vmem:[#allocation16_spill] sm:$0xff]  ;;  %v10989_v59 = vld [vmem:[#allocation26_spill] sm:$0xff] }
 0x33c   : > { %v2306_v30 = vadd.f32 %v9696_v40, %v2095_v60  ;;  %v2305_v6 = vadd.f32 %v10969_v1, %v2094_v11  ;;  %v1889_v37 = vadd.f32 %v10971_v14, %v1678_v7  ;;  %v2304_v3 = vadd.f32 %v10972_v51, %v2093_v50  ;;  %v10985_v32 = vld [vmem:[#allocation32_spill] sm:$0xff]  ;;  %v10991_v7 = vld [vmem:[#allocation33_spill] sm:$0xff]  ;;  %v10992_v50 = vld [vmem:[#allocation50_spill] sm:$0xff] }
 0x33d   : > { %v1879_v47 = vadd.f32 %v10974_v48, %v1668_v31  ;;  %v1888_v8 = vadd.f32 %v10975_v19, %v1677_v54  ;;  %v1887_v56 = vadd.f32 %v10976_v24, %v1676_v27  ;;  %v9835_v35 = vadd.f32 %v10977_v26, %v1675_v38  ;;  %v10986_v31 = vld [vmem:[#allocation17_spill] sm:$0xff]  ;;  %v10987_v61 = vld [vmem:[#allocation24_spill] sm:$0xff]  ;;  %v10990_v54 = vld [vmem:[#allocation31_spill] sm:$0xff] }
 0x33e   : > { %v2517_v40 = vadd.f32 %v10973_v52, %v2306_v30  ;;  %v2089_v10 = vadd.f32 %v10978_v39, %v1878_v55  ;;  %v2088_v18 = vadd.f32 %v10979_v33, %v1877_v28  ;;  %v2087_v57 = vadd.f32 %v10980_v4, %v1876_v42  ;;  %v10988_v27 = vld [vmem:[#allocation48_spill] sm:$0xff]  ;;  %v10993_v42 = vld [vmem:[#allocation18_spill] sm:$0xff]  ;;  %v10997_v51 = vld [vmem:[#allocation27_spill] sm:$0xff] }
 0x33f   : > { %v9803_v16 = vpop.f32.mrf.mxu3  ;;  %v2515_v53 = vadd.f32 %v10981_v44, %v2304_v3  ;;  %v2096_v43 = vadd.f32 %v10982_v41, %v1885_v22  ;;  %v2092_v9 = vadd.f32 %v10983_v21, %v1881_v45  ;;  %v2091_v17 = vadd.f32 %v10984_v12, %v1880_v2  ;;  %v10994_v45 = vld [vmem:[#allocation19_spill] sm:$0xff]  ;;  %v10995_v22 = vld [vmem:[#allocation41_spill] sm:$0xff]  ;;  %v10996_v14 = vld [vmem:[#allocation20_spill] sm:$0xff] }
 0x340   : > { %v2516_v25 = vadd.f32 %v10985_v32, %v2305_v6  ;;  %v2100_v23 = vadd.f32 %v10986_v31, %v1889_v37  ;;  %v2299_v5 = vadd.f32 %v10987_v61, %v2088_v18  ;;  %v2728_v38 = vadd.f32 %v10988_v27, %v2517_v40  ;;  %v10998_v52 = vld [vmem:[#allocation49_spill] sm:$0xff]  ;;  %v10999_v19 = vld [vmem:[#allocation23_spill] sm:$0xff]  ;;  %v11000_v26 = vld [vmem:[#allocation34_spill] sm:$0xff]  ;;  %v9860_v18 = vpop.permute.xlu0 %2968 }
 0x341   : > { %v9813_v15 = vpop.f32.mrf.mxu1  ;;  %v2298_v28 = vadd.f32 %v10989_v59, %v2087_v57  ;;  %v2303_v11 = vadd.f32 %v10990_v54, %v2092_v9  ;;  %v2302_v55 = vadd.f32 %v10991_v7, %v2091_v17  ;;  %v2090_v63 = vadd.f32 %v10993_v42, %v1879_v47  ;;  %v11002_v57 = vld [vmem:[#allocation36_spill] sm:$0xff]  ;;  %v11004_v21 = vld [vmem:[#allocation39_spill] sm:$0xff] }
 0x342   : > { %v9819_v46 = vpop.f32.mrf.mxu0  ;;  %v9821_v29 = vpop.f32.mrf.mxu2  ;;  %v2727_v30 = vadd.f32 %v10992_v50, %v2516_v25  ;;  %v2099_v0 = vadd.f32 %v10994_v45, %v1888_v8  ;;  %v2510_v1 = vadd.f32 %v10995_v22, %v2299_v5  ;;  %v2098_v37 = vadd.f32 %v10996_v14, %v1887_v56  ;;  %v11001_v8 = vld [vmem:[#allocation28_spill] sm:$0xff]  ;;  %v11006_v17 = vld [vmem:[#allocation51_spill] sm:$0xff] }
 0x343   : > { %v2307_v3 = vadd.f32 %v10997_v51, %v2096_v43  ;;  %v2514_v40 = vadd.f32 %v10998_v52, %v2303_v11  ;;  %v2300_v24 = vadd.f32 %v10999_v19, %v2089_v10  ;;  %v2311_v39 = vadd.f32 %v11000_v26, %v2100_v23  ;;  %v11005_v9 = vld [vmem:[#allocation44_spill] sm:$0xff]  ;;  %v9869_v25 = vpop.permute.xlu2 %2994  ;;  %v11009_v11 = vld [vmem:[#allocation21_spill] sm:$0xff]  ;;  %v9888_v14 = vpop.permute.xlu1 %2963 }
 0x344   : > { %v2509_v4 = vadd.f32 %v11001_v8, %v2298_v28  ;;  %v2513_v44 = vadd.f32 %v11002_v57, %v2302_v55  ;;  %v2721_v12 = vadd.f32 %v11005_v9, %v2510_v1  ;;  %v11008_v23 = vld [vmem:[#allocation52_spill] sm:$0xff]  ;;  %v2301_v7 = vadd.f32 %v11009_v11, %v2090_v63  ;;  %v11010_v55 = vld [vmem:[#allocation35_spill] sm:$0xff]  ;;  %v11013_v52 = vld [vmem:[#allocation53_spill] sm:$0xff] }
 0x345   : > { %v2511_v43 = vadd.f32 %v11004_v21, %v2300_v24  ;;  %v2522_v32 = vadd.f32 %v11006_v17, %v2311_v39  ;;  %v2725_v61 = vadd.f32 %v11008_v23, %v2514_v40  ;;  %v2310_v50 = vadd.f32 %v11010_v55, %v2099_v0  ;;  %v11018_v17 = vld [vmem:[#allocation25_spill] sm:$0xff] }
 0x346   : > { %v2932_v1 = vadd.f32 %v9813_v15, %v2721_v12 }
 0x347   : > { %v2714_v49 = vpop.f32.mrf.mxu3  ;;  %v2521_v40 = vadd.f32 %v11013_v52, %v2310_v50  ;;  %v11020_v50 = vld [vmem:[#allocation42_spill] sm:$0xff] }
 0x348   : > { %v2726_v60 = vadd.f32 %v2714_v49, %v2515_v53  ;;  %v11003_v53 = vld [vmem:[#allocation43_spill] sm:$0xff]  ;;  %v11007_v49 = vld [vmem:[#allocation46_spill] sm:$0xff]  ;;  %v2946_v8 = vmax.f32 %v2932_v1, 0.0  ;;  %v2990_v57 = vpop.permute.xlu0 %2989 }
 0x349   : > { %v2813_v13 = vpop.f32.mrf.mxu1  ;;  %v2518_v41 = vadd.f32 %v11003_v53, %v2307_v3  ;;  %v2720_v31 = vadd.f32 %v11007_v49, %v2509_v4 }
 0x34a   : > { %v2939_v6 = vadd.f32 %v2813_v13, %v2728_v38  ;;  %v2790_v36 = vpop.f32.mrf.mxu0  ;;  %v2925_v2 = vpop.f32.mrf.mxu2 }
 0x34b   : > { %v2938_v48 = vadd.f32 %v2790_v36, %v2727_v30  ;;  %v2937_v47 = vadd.f32 %v2925_v2, %v2726_v60  ;;  %v2729_v5 = vadd.f32 %v9803_v16, %v2518_v41  ;;  %v2722_v60 = vadd.f32 %v9763_v34, %v2511_v43  ;;  %v11011_v30 = vld [vmem:[#allocation54_spill] sm:$0xff]  ;;  %v11012_v16 = vld [vmem:[#allocation37_spill] sm:$0xff] }
 0x34c   : > { %v2953_v33 = vmax.f32 %v2939_v6, 0.0  ;;  %v2724_v13 = vadd.f32 %v11011_v30, %v2513_v44  ;;  %v2309_v22 = vadd.f32 %v11012_v16, %v2098_v37  ;;  %v2931_v34 = vadd.f32 %v9819_v46, %v2720_v31  ;;  %v11014_v46 = vld [vmem:[#allocation22_spill] sm:$0xff] }
 0x34d   : > { %v2952_v56 = vmax.f32 %v2938_v48, 0.0  ;;  %v2951_v59 = vmax.f32 %v2937_v47, 0.0  ;;  %v2940_v63 = vadd.f32 %v9821_v29, %v2729_v5  ;;  %v2933_v37 = vadd.f32 %v9781_v20, %v2722_v60  ;;  %v11015_v29 = vld [vmem:[#allocation38_spill] sm:$0xff] }
 0x34e   : > { %v2979_v10 = vmul.f32 %v9860_v18, %v2953_v33  ;;  %v2097_v19 = vadd.f32 %v11014_v46, %v9835_v35  ;;  %v2512_v39 = vadd.f32 %v11015_v29, %v2301_v7  ;;  %v11016_v33 = vld [vmem:[#allocation40_spill] sm:$0xff]  ;;  %v2945_v44 = vmax.f32 %v2931_v34, 0.0 }
 0x34f   : > { %v2978_v27 = vmul.f32 %v9860_v18, %v2952_v56  ;;  %v2717_v38 = vpop.f32.mrf.mxu3  ;;  %v2977_v15 = vmul.f32 %v9888_v14, %v2951_v59  ;;  %v2520_v47 = vadd.f32 %v11016_v33, %v2309_v22  ;;  %v2954_v20 = vmax.f32 %v2940_v63, 0.0  ;;  %v11017_v35 = vld [vmem:[#allocation56_spill] sm:$0xff] }
 0x350   : > { %v2733_v28 = vadd.f32 %v2717_v38, %v2522_v32  ;;  %v9877_v54 = vadd.f32 %v9869_v25, %v2979_v10  ;;  %v2732_v21 = vadd.f32 %v11017_v35, %v2521_v40  ;;  %v2947_v43 = vmax.f32 %v2933_v37, 0.0 }
 0x351   : > { %v2902_v42 = vpop.f32.mrf.mxu1  ;;  %v9883_v45 = vadd.f32 %v9869_v25, %v2978_v27  ;;  %v3003_v12 = vadd.f32 %v2990_v57, %v2977_v15  ;;  %v2308_v32 = vadd.f32 %v11018_v17, %v2097_v19  ;;  %v2731_v10 = vadd.f32 %v9773_v58, %v2520_v47 }
 0x352   : > { %v2936_v6 = vadd.f32 %v2902_v42, %v2725_v61  ;;  %v2879_v36 = vpop.f32.mrf.mxu0  ;;  %v2928_v2 = vpop.f32.mrf.mxu2  ;;  %v11019_v61 = vld [vmem:[#allocation55_spill] sm:$0xff]  ;;  %v2972_v27 = vmul.f32 %v9888_v14, %v2946_v8  ;;  %v2980_v11 = vmul.f32 %v9860_v18, %v2954_v20  ;;  %v2973_v30 = vmul.f32 %v9888_v14, %v2947_v43 }
 0x353   : > { %v2935_v0 = vadd.f32 %v2879_v36, %v2724_v13  ;;  %v2944_v51 = vadd.f32 %v2928_v2, %v2733_v28  ;;  %v8082_v3 = vpack.i.bf16 %v9877_v54, %v9883_v45  ;;  %v2723_v5 = vadd.f32 %v11019_v61, %v2512_v39 }
 0x354   : > { %v2950_v48 = vmax.f32 %v2936_v6, 0.0  ;;  %v2971_v28 = vmul.f32 %v9888_v14, %v2945_v44  ;;  %v2519_v58 = vadd.f32 %v11020_v50, %v2308_v32  ;;  %v9921_v34 = vadd.f32 %v2990_v57, %v2972_v27 }
 0x355   : > { %v2949_v24 = vmax.f32 %v2935_v0, 0.0  ;;  %v2958_v26 = vmax.f32 %v2944_v51, 0.0  ;;  %8083 = vrot.lane.b32.xlu1 %v8082_v3, %s8505_s27  ;;  %v9925_v63 = vadd.f32 %v9869_v25, %v2980_v11  ;;  %v9927_v51 = vadd.f32 %v2990_v57, %v2973_v30 }
 0x356   : > { %v2976_v4 = vmul.f32 %v9888_v14, %v2950_v48  ;;  %v2730_v22 = vadd.f32 %v9779_v62, %v2519_v58  ;;  %v2997_v2 = vadd.f32 %v2990_v57, %v2971_v28 }
 0x357   : > { %v2975_v53 = vmul.f32 %v9888_v14, %v2949_v24  ;;  %v2984_v41 = vmul.f32 %v9860_v18, %v2958_v26  ;;  %v2856_v56 = vpop.f32.mrf.mxu3  ;;  %v8107_v37 = vpack.i.bf16 %v9927_v51, %v9921_v34 }
 0x358   : > { %v9905_v9 = vadd.f32 %v2990_v57, %v2976_v4  ;;  %v2934_v42 = vadd.f32 %v2856_v56, %v2723_v5  ;;  %v8102_v15 = vpack.i.bf16 %v2997_v2, %v9925_v63 }
 0x359   : > { %v2905_v49 = vpop.f32.mrf.mxu1  ;;  %v3001_v31 = vadd.f32 %v2990_v57, %v2975_v53  ;;  %v3010_v23 = vadd.f32 %v9869_v25, %v2984_v41 }
 0x35a   : > { %v2943_v38 = vadd.f32 %v2905_v49, %v2732_v21  ;;  %v2882_v60 = vpop.f32.mrf.mxu0  ;;  %v8087_v59 = vpack.i.bf16 %v3003_v12, %v9905_v9  ;;  %v2948_v52 = vmax.f32 %v2934_v42, 0.0 }
 0x35b   : > { %v2942_v7 = vadd.f32 %v2882_v60, %v2731_v10  ;;  %v8097_v55 = vpack.i.bf16 %v3001_v31, %v3010_v23 }
 0x35c   : > { %v2957_v13 = vmax.f32 %v2943_v38, 0.0  ;;  %8088 = vrot.lane.b32.xlu0 %v8087_v59, %s8505_s27  ;;  %v2974_v19 = vmul.f32 %v9888_v14, %v2948_v52 }
 0x35d   : > { %v2956_v16 = vmax.f32 %v2942_v7, 0.0  ;;  %8098 = vrot.lane.b32.xlu2 %v8097_v55, %s8505_s27 }
 0x35e   : > { %v2983_v1 = vmul.f32 %v9860_v18, %v2957_v13  ;;  %v3000_v26 = vadd.f32 %v2990_v57, %v2974_v19 }
 0x35f   : > { %v2982_v6 = vmul.f32 %v9860_v18, %v2956_v16  ;;  %v2859_v36 = vpop.f32.mrf.mxu3 }
 0x360   : > { %v2941_v0 = vadd.f32 %v2859_v36, %v2730_v22  ;;  %v3009_v3 = vadd.f32 %v9869_v25, %v2983_v1 }
 0x361   : > { %v3008_v40 = vadd.f32 %v9869_v25, %v2982_v6 }
 0x362   : > { %v2955_v62 = vmax.f32 %v2941_v0, 0.0 }
 0x363   : > { %v8092_v48 = vpack.i.bf16 %v3009_v3, %v3008_v40 }
 0x364   : > { %v2981_v46 = vmul.f32 %v9860_v18, %v2955_v62  ;;  %8108 = vrot.lane.b32.xlu0 %v8107_v37, %s8505_s27 }
 0x365   : > { %8103 = vrot.lane.b32.xlu2 %v8102_v15, %s8505_s27  ;;  %8093 = vrot.lane.b32.xlu1 %v8092_v48, %s8505_s27 }
 0x366   : > { %v3007_v24 = vadd.f32 %v9869_v25, %v2981_v46 }
 0x368   : > { %v8112_v29 = vpack.i.bf16 %v3000_v26, %v3007_v24 }
 0x36d   : > { %8113 = vrot.lane.b32.xlu1 %v8112_v29, %s8505_s27 }
 0x3b7   : > { %v8099_v39 = vpop.permute.xlu2 %8098 }
 0x3b8   : > { %v8101_v41 = vunpack.i.h.bf16 %v8099_v39  ;;  %v8100_v10 = vunpack.i.l.bf16 %v8099_v39 }
 0x3bf   : > { %v8104_v33 = vpop.permute.xlu2 %8103 }
 0x3c0   : > { %v8105_v8 = vunpack.i.l.bf16 %v8104_v33 }
 0x3c7   : > { %v8084_v47 = vpop.permute.xlu1 %8083 }
 0x3c8   : > { %v8086_v4 = vunpack.i.h.bf16 %v8084_v47  ;;  %v8085_v18 = vunpack.i.l.bf16 %v8084_v47  ;;  %v3159_v47 = vld [vmem:[%s10888_s6] sm:$0xff] }
 0x3ca   : > { %v3059_v44 = vsel %vm729_vm2, %v8085_v18, %v8086_v4  ;;  %v3060_v14 = vsel %vm729_vm2, %v8086_v4, %v8105_v8 }
 0x3cb   : > { %v9944_v20 = vmax.f32 %v9883_v45, %v3059_v44  ;;  %v9947_v53 = vmax.f32 %v9877_v54, %v3060_v14 }
 0x3cd   : > { %v8117_v25 = vpack.i.bf16 %v9947_v53, %v9944_v20 }
 0x3ce   : > { %v8089_v57 = vpop.permute.xlu0 %8088 }
 0x3cf   : > { %v8091_v56 = vunpack.i.h.bf16 %v8089_v57  ;;  %v8090_v35 = vunpack.i.l.bf16 %v8089_v57  ;;  %8118 = vrot.lane.b32.xlu1 %v8117_v25, %s8503_s23 }
 0x3d1   : > { %v3057_v21 = vsel %vm729_vm2, %v8101_v41, %v8090_v35  ;;  %v3058_v43 = vsel %vm729_vm2, %v8090_v35, %v8091_v56 }
 0x3d2   : > { %v9954_v12 = vmax.f32 %v3001_v31, %v3057_v21  ;;  %v9957_v45 = vmax.f32 %v9905_v9, %v3058_v43  ;;  %v8106_v9 = vunpack.i.h.bf16 %v8104_v33 }
 0x3d4   : > { %v8122_v54 = vpack.i.bf16 %v9957_v45, %v9954_v12 }
 0x3d6   : > { %8123 = vrot.lane.b32.xlu0 %v8122_v54, %s8503_s23  ;;  %v8109_v17 = vpop.permute.xlu0 %8108 }
 0x3d7   : > { %v8094_v32 = vpop.permute.xlu1 %8093  ;;  %v8111_v61 = vunpack.i.h.bf16 %v8109_v17  ;;  %v8110_v5 = vunpack.i.l.bf16 %v8109_v17 }
 0x3d8   : > { %v8096_v49 = vunpack.i.h.bf16 %v8094_v32  ;;  %v8095_v23 = vunpack.i.l.bf16 %v8094_v32 }
 0x3d9   : > { %v3053_v28 = vsel %vm729_vm2, %v8106_v9, %v8110_v5  ;;  %v3054_v11 = vsel %vm729_vm2, %v8110_v5, %v8111_v61 }
 0x3da   : > { %v3064_v27 = vsel %vm729_vm2, %v8096_v49, %v8100_v10  ;;  %v3063_v31 = vsel %vm729_vm2, %v8095_v23, %v8096_v49  ;;  %v3077_v58 = vmax.f32 %v2997_v2, %v3053_v28  ;;  %v9971_v30 = vmax.f32 %v9921_v34, %v3054_v11 }
 0x3db   : > { %v3087_v38 = vmax.f32 %v3008_v40, %v3063_v31  ;;  %v9964_v60 = vmax.f32 %v3009_v3, %v3064_v27 }
 0x3dc   : > { %v8132_v2 = vpack.i.bf16 %v9971_v30, %v3077_v58 }
 0x3dd   : > { %v8127_v59 = vpack.i.bf16 %v9964_v60, %v3087_v38 }
 0x3df   : > { %v8114_v7 = vpop.permute.xlu1 %8113  ;;  %8128 = vrot.lane.b32.xlu2 %v8127_v59, %s8503_s23 }
 0x3e0   : > { %v8116_v55 = vunpack.i.h.bf16 %v8114_v7  ;;  %v8115_v50 = vunpack.i.l.bf16 %v8114_v7 }
 0x3e2   : > { %v3055_v13 = vsel %vm729_vm2, %v8111_v61, %v8116_v55  ;;  %v3056_v42 = vsel %vm729_vm2, %v8116_v55, %v8101_v41  ;;  %v3061_v16 = vsel %vm729_vm2, %v8105_v8, %v8115_v50  ;;  %v3062_v22 = vsel %vm729_vm2, %v8115_v50, %v8095_v23 }
 0x3e3   : > { %v3079_v1 = vmax.f32 %v9927_v51, %v3055_v13  ;;  %v3080_v6 = vmax.f32 %v3000_v26, %v3056_v42  ;;  %v3085_v36 = vmax.f32 %v9925_v63, %v3061_v16  ;;  %v3086_v0 = vmax.f32 %v3007_v24, %v3062_v22 }
 0x3e4   : > { %vm7448_vm2 = vcmask 7168  }
 0x3e5   : > { %v8142_v3 = vpack.i.bf16 %v3080_v6, %v3079_v1  ;;  %v8137_v52 = vpack.i.bf16 %v3086_v0, %v3085_v36 }
 0x3e7   : > { %8143 = vrot.lane.b32.xlu1 %v8142_v3, %s8503_s23  ;;  %8133 = vrot.lane.b32.xlu2 %v8132_v2, %s8503_s23  ;;  %v10068_v3 = vld [vmem:[%s10889_s7 + $0x8] sm:$0xff]  ;;  %v10075_v2 = vld [vmem:[%s10889_s7] sm:$0xff] }
 0x3e8   : > { %8138 = vrot.lane.b32.xlu0 %v8137_v52, %s8503_s23 }
 0x439   : > { %v8129_v34 = vpop.permute.xlu2 %8128 }
 0x43a   : > { %v8131_v40 = vunpack.i.h.bf16 %v8129_v34  ;;  %v8130_v62 = vunpack.i.l.bf16 %v8129_v34 }
 0x43c   : > { %v3134_v37 = vsel %vm617_vm0, %v8130_v62, %v8131_v40  ;;  %v3158_v31 = vmax.f32 %v9964_v60, %v8131_v40 }
 0x43d   : > { %v3157_v51 = vmax.f32 %v3087_v38, %v3134_v37 }
 0x43f   : > { %3258 = vmatpush.msra.mxu2 %v3157_v51 }
 0x441   : > { %v8119_v15 = vpop.permute.xlu1 %8118  ;;  %v8134_v63 = vpop.permute.xlu2 %8133 }
 0x442   : > { %v8121_v48 = vunpack.i.h.bf16 %v8119_v15  ;;  %v8120_v46 = vunpack.i.l.bf16 %v8119_v15  ;;  %v8136_v19 = vunpack.i.h.bf16 %v8134_v63  ;;  %v8135_v24 = vunpack.i.l.bf16 %v8134_v63 }
 0x444   : > { %v3130_v26 = vsel %vm617_vm0, %v8120_v46, %v8121_v48  ;;  %v3125_v29 = vsel %vm617_vm0, %v8135_v24, %v8136_v19 }
 0x445   : > { %v3153_v39 = vmax.f32 %v9944_v20, %v3130_v26  ;;  %v3147_v33 = vmax.f32 %v3077_v58, %v3125_v29  ;;  %v10085_v29 = vld [vmem:[%s10889_s7 + $0x10] sm:$0xff] }
 0x447   : > { %3178 = vmatpush.msra.mxu3 %v3153_v39 }
 0x448   : > { %v8124_v8 = vpop.permute.xlu0 %8123 }
 0x449   : > { %v8126_v4 = vunpack.i.h.bf16 %v8124_v8  ;;  %v8125_v18 = vunpack.i.l.bf16 %v8124_v8  ;;  %3179 = vmatpush.msra.mxu3 %v3147_v33 }
 0x44a   : > { %7665 = vmatmul.msk.f32.vlgmr.msra.gmra.mxu3 %vm3160_vm9, %v3159_v47 }
 0x44b   : > { %v3129_v44 = vsel %vm617_vm0, %v8125_v18, %v8126_v4 }
 0x44c   : > { %v3151_v14 = vmax.f32 %v9954_v12, %v3129_v44 }
 0x44e   : > { %3259 = vmatpush.msra.mxu2 %v3151_v14 }
 0x44f   : > { %7669 = vmatmul.msk.f32.vlgmr.msra.gmra.mxu2 %vm3160_vm9, %v3159_v47 }
 0x459   : > { %v8144_v20 = vpop.permute.xlu1 %8143 }
 0x45a   : > { %v8146_v25 = vunpack.i.h.bf16 %v8144_v20  ;;  %v8145_v57 = vunpack.i.l.bf16 %v8144_v20  ;;  %v8139_v41 = vpop.permute.xlu0 %8138 }
 0x45b   : > { %v8141_v56 = vunpack.i.h.bf16 %v8139_v41  ;;  %v8140_v35 = vunpack.i.l.bf16 %v8139_v41 }
 0x45c   : > { %v3126_v21 = vsel %vm617_vm0, %v8136_v19, %v8145_v57  ;;  %v3127_v32 = vsel %vm617_vm0, %v8145_v57, %v8146_v25  ;;  %v3128_v23 = vsel %vm617_vm0, %v8146_v25, %v8125_v18 }
 0x45d   : > { %v3133_v43 = vsel %vm617_vm0, %v8141_v56, %v8130_v62  ;;  %v3131_v54 = vsel %vm617_vm0, %v8121_v48, %v8140_v35  ;;  %v3132_v17 = vsel %vm617_vm0, %v8140_v35, %v8141_v56  ;;  %v3148_v61 = vmax.f32 %v9971_v30, %v3126_v21 }
 0x45e   : > { %v3156_v12 = vmax.f32 %v3086_v0, %v3133_v43  ;;  %v3154_v10 = vmax.f32 %v9947_v53, %v3131_v54  ;;  %v3155_v49 = vmax.f32 %v3085_v36, %v3132_v17  ;;  %v3149_v5 = vmax.f32 %v3079_v1, %v3127_v32 }
 0x45f   : > { %v3150_v27 = vmax.f32 %v3080_v6, %v3128_v23  ;;  %v3152_v53 = vmax.f32 %v9957_v45, %v8126_v4  ;;  %vm7413_vm0 = vcmask 1022976  }
 0x460   : > { %3198 = vmatpush.msrb.mxu3 %v3154_v10  ;;  %3218 = vmatpush.msra.mxu0 %v3155_v49 }
 0x461   : > { %3238 = vmatpush.msra.mxu1 %v3156_v12 }
 0x462   : > { %3199 = vmatpush.msrb.mxu3 %v3148_v61  ;;  %3219 = vmatpush.msra.mxu0 %v3149_v5  ;;  %v7688_v61 = vld [vmem:[%s10889_s7 + $0x18] sm:$0xff] }
 0x463   : > { %3239 = vmatpush.msra.mxu1 %v3150_v27  ;;  %7666 = vmatmul.msk.f32.vlgmr.msrb.gmra.mxu3 %vm3160_vm9, %v3159_v47 }
 0x464   : > { %7667 = vmatmul.msk.f32.vlgmr.msra.gmra.mxu0 %vm3160_vm9, %v3159_v47  ;;  %7668 = vmatmul.msk.f32.vlgmr.msra.gmra.mxu1 %vm3160_vm9, %v3159_v47 }
 0x465   : > { %3278 = vmatpush.msra.mxu3 %v3158_v31 }
 0x467   : > { %3279 = vmatpush.msra.mxu3 %v3152_v53 }
 0x46b   : > { %7670 = vmatmul.msk.f32.vlgmr.msra.gmra.mxu3 %vm3160_vm9, %v3159_v47 }
 0x4cd   : > { %v10008_v38 = vpop.f32.mrf.mxu3 }
 0x4d2   : > { %v10017_v28 = vpop.f32.mrf.mxu2 }
 0x4e1   : > { %v10010_v9 = vpop.f32.mrf.mxu0  ;;  %v10012_v59 = vpop.f32.mrf.mxu1 }
 0x4e2   : > { %v8147_v60 = vpack.i.bf16 %v10012_v59, %v10010_v9  ;;  %v8162_v55 = vpack.i.bf16 %v10017_v28, %v10010_v9  ;;  %v8172_v50 = vpack.i.bf16 %v10017_v28, %v10012_v59  ;;  %v8197_v42 = vpack.i.bf16 %v10008_v38, %v10012_v59 }
 0x4e4   : > { %8148 = vrot.lane.b32.xlu2 %v8147_v60, %s8504_s26 }
 0x4e6   : > { %v3201_v11 = vpop.f32.mrf.mxu3 }
 0x4e7   : > { %v8157_v45 = vpack.i.bf16 %v3201_v11, %v10008_v38  ;;  %v8152_v7 = vpack.i.bf16 %v3201_v11, %v10017_v28  ;;  %v8192_v13 = vpack.i.bf16 %v10010_v9, %v3201_v11 }
 0x4e9   : > { %8158 = vrot.lane.b32.xlu1 %v8157_v45, %s8511_s30  ;;  %8153 = vrot.lane.b32.xlu0 %v8152_v7, %s8504_s26 }
 0x4ec   : > { %8163 = vrot.lane.b32.xlu2 %v8162_v55, %s8511_s30 }
 0x4ee   : > { %v3281_v58 = vpop.f32.mrf.mxu3 }
 0x4ef   : > { %v8182_v30 = vpack.i.bf16 %v10010_v9, %v3281_v58  ;;  %v8212_v16 = vpack.i.bf16 %v3281_v58, %v10008_v38  ;;  %v8227_v22 = vpack.i.bf16 %v3281_v58, %v10017_v28 }
 0x4f1   : > { %8168 = vrot.lane.b32.xlu1 %v8157_v45, %s11021_s1  ;;  %3292 = vrot.lane.b32.xlu0 %v10008_v38, %s8504_s26 }
 0x4f4   : > { %8173 = vrot.lane.b32.xlu2 %v8172_v50, %s11021_s1 }
 0x4f9   : > { %3525 = vrot.lane.b32.xlu1 %v10012_v59, %s8511_s30  ;;  %8183 = vrot.lane.b32.xlu0 %v8182_v30, %s11021_s1 }
 0x4fc   : > { %8178 = vrot.lane.b32.xlu2 %v8147_v60, %s8510_s19 }
 0x501   : > { %8193 = vrot.lane.b32.xlu1 %v8192_v13, %s10905_s0  ;;  %8188 = vrot.lane.b32.xlu0 %v8152_v7, %s8510_s19  ;;  %v10135_v7 = vld [vmem:[%s10889_s7 + $0x20] sm:$0xff] }
 0x504   : > { %8198 = vrot.lane.b32.xlu2 %v8197_v42, %s10905_s0 }
 0x509   : > { %8208 = vrot.lane.b32.xlu1 %v8162_v55, %s10903_s20  ;;  %8203 = vrot.lane.b32.xlu0 %v8157_v45, %s10903_s20 }
 0x50c   : > { %8213 = vrot.lane.b32.xlu2 %v8212_v16, %s8510_s19 }
 0x511   : > { %8218 = vrot.lane.b32.xlu1 %v8157_v45, %s8514_s29  ;;  %4057 = vrot.lane.b32.xlu0 %v3281_v58, %s10903_s20 }
 0x514   : > { %8228 = vrot.lane.b32.xlu2 %v8227_v22, %s10905_s0 }
 0x519   : > { %4189 = vrot.lane.b32.xlu1 %v3281_v58, %s8514_s29  ;;  %8223 = vrot.lane.b32.xlu0 %v8172_v50, %s8514_s29 }
 0x51c   : > { %4053 = vrot.lane.b32.xlu2 %v10012_v59, %s10903_s20 }
 0x521   : > { %4320 = vrot.lane.b32.xlu1 %v10017_v28, %s8515_s21  ;;  %8233 = vrot.lane.b32.xlu0 %v8147_v60, %s8515_s21 }
 0x524   : > { %4183 = vrot.lane.b32.xlu2 %v10010_v9, %s8514_s29 }
 0x529   : > { %4312 = vrot.lane.b32.xlu1 %v10008_v38, %s8515_s21  ;;  %4314 = vrot.lane.b32.xlu0 %v3201_v11, %s8515_s21 }
 0x52c   : > { %4322 = vrot.lane.b32.xlu2 %v3281_v58, %s8515_s21 }
 0x53e   : > { %v8149_v1 = vpop.permute.xlu2 %8148 }
 0x53f   : > { %v8151_v6 = vunpack.i.h.bf16 %v8149_v1  ;;  %v8150_v36 = vunpack.i.l.bf16 %v8149_v1 }
 0x541   : > { %v3304_v0 = vsel %vm673_vm1, %v8150_v36, %v8151_v6 }
 0x542   : > { %3369 = vmatpush.msrb.mxu2 %v3304_v0 }
 0x543   : > { %7674 = vmatmul.msk.f32.vlgmr.msrb.gmra.mxu2 %vm1068_vm8, %v10068_v3 }
 0x544   : > { %3452 = vmatpush.msra.mxu2 %v3201_v11 }
 0x546   : > { %v8164_v52 = vpop.permute.xlu2 %8163 }
 0x547   : > { %v8166_v39 = vunpack.i.h.bf16 %v8164_v52  ;;  %v8165_v33 = vunpack.i.l.bf16 %v8164_v52 }
 0x54b   : > { %7678 = vmatmul.msk.f32.vlgmr.msra.gmra.mxu2 %vm1068_vm8, %v10075_v2 }
 0x54e   : > { %v8174_v34 = vpop.permute.xlu2 %8173 }
 0x54f   : > { %v8176_v24 = vunpack.i.h.bf16 %v8174_v34  ;;  %v8175_v26 = vunpack.i.l.bf16 %v8174_v34 }
 0x551   : > { %v3665_v4 = vsel %vm903_vm5, %v8175_v26, %v8176_v24 }
 0x556   : > { %v8179_v47 = vpop.permute.xlu2 %8178 }
 0x557   : > { %v8181_v57 = vunpack.i.h.bf16 %v8179_v47  ;;  %v8180_v41 = vunpack.i.l.bf16 %v8179_v47 }
 0x559   : > { %v3796_v35 = vsel %vm1025_vm7, %v8180_v41, %v8181_v57 }
 0x55b   : > { %v8159_v40 = vpop.permute.xlu1 %8158  ;;  %v8154_v62 = vpop.permute.xlu0 %8153 }
 0x55c   : > { %v8161_v37 = vunpack.i.h.bf16 %v8159_v40  ;;  %v8160_v51 = vunpack.i.l.bf16 %v8159_v40  ;;  %v8156_v15 = vunpack.i.h.bf16 %v8154_v62  ;;  %v8155_v63 = vunpack.i.l.bf16 %v8154_v62 }
 0x55e   : > { %v3303_v48 = vsel %vm673_vm1, %v8156_v15, %v8150_v36  ;;  %v3305_v46 = vsel %vm673_vm1, %v8151_v6, %v8155_v63  ;;  %v3530_v19 = vsel %vm3529_vm10, %v8160_v51, %v8161_v37  ;;  %v3531_v8 = vsel %vm3529_vm10, %v8161_v37, %v8165_v33  ;;  %v10112_v10 = vpop.permute.xlu2 %8198  ;;  %v10153_v6 = vld [vmem:[%s10889_s7 + $0x28] sm:$0xff] }
 0x55f   : > { %3349 = vmatpush.msrb.mxu1 %v3303_v48  ;;  %3389 = vmatpush.msrb.mxu3 %v3305_v46  ;;  %v8201_v42 = vunpack.i.h.bf16 %v10112_v10  ;;  %v8200_v1 = vunpack.i.l.bf16 %v10112_v10  ;;  %v7706_v48 = vld [vmem:[%s10889_s7 + $0x30] sm:$0xff]  ;;  %v7718_v10 = vld [vmem:[%s10889_s7 + $0x40] sm:$0xff] }
 0x560   : > { %3557 = vmatpush.msrb.mxu2 %v3530_v19  ;;  %7673 = vmatmul.msk.f32.vlgmr.msrb.gmra.mxu1 %vm1068_vm8, %v10068_v3 }
 0x561   : > { %7675 = vmatmul.msk.f32.vlgmr.msrb.gmra.mxu3 %vm1068_vm8, %v10068_v3  ;;  %3432 = vmatpush.msra.mxu1 %v10008_v38 }
 0x562   : > { %3472 = vmatpush.msra.mxu3 %v10010_v9  ;;  %7683 = vmatmul.msk.f32.vlgmr.msrb.gmra.mxu2 %vm1068_vm8, %v10085_v29 }
 0x563   : > { %3637 = vmatpush.msra.mxu2 %v8166_v39  ;;  %3512 = vmatpush.msrb.mxu1 %v10017_v28  ;;  %v8169_v18 = vpop.permute.xlu1 %8168  ;;  %v3293_v44 = vpop.permute.xlu0 %3292 }
 0x564   : > { %3577 = vmatpush.msrb.mxu3 %v3531_v8  ;;  %v8171_v14 = vunpack.i.h.bf16 %v8169_v18  ;;  %v8170_v20 = vunpack.i.l.bf16 %v8169_v18  ;;  %v3302_v25 = vsel %vm673_vm1, %v3293_v44, %v8156_v15 }
 0x565   : > { %3750 = vmatpush.msrb.mxu2 %v3665_v4  ;;  %3329 = vmatpush.msrb.mxu0 %v3302_v25 }
 0x566   : > { %7672 = vmatmul.msk.f32.vlgmr.msrb.gmra.mxu0 %vm1068_vm8, %v10068_v3  ;;  %v3662_v56 = vsel %vm903_vm5, %v8170_v20, %v8171_v14  ;;  %v8214_v11 = vpop.permute.xlu2 %8213 }
 0x567   : > { %3409 = vmatpush.msra.mxu0 %v8155_v63  ;;  %v8215_v58 = vunpack.i.l.bf16 %v8214_v11  ;;  %v8216_v34 = vunpack.i.h.bf16 %v8214_v11 }
 0x568   : > { %7677 = vmatmul.msk.f32.vlgmr.msra.gmra.mxu1 %vm1068_vm8, %v10075_v2 }
 0x569   : > { %3492 = vmatpush.msrb.mxu0 %v10012_v59  ;;  %7679 = vmatmul.msk.f32.vlgmr.msra.gmra.mxu3 %vm1068_vm8, %v10075_v2 }
 0x56a   : > { %7687 = vmatmul.msk.f32.vlgmr.msra.gmra.mxu2 %vm1068_vm8, %v10085_v29  ;;  %3690 = vmatpush.msra.mxu3 %v3662_v56 }
 0x56b   : > { %3862 = vmatpush.msra.mxu2 %v3796_v35  ;;  %v3526_v21 = vpop.permute.xlu1 %3525  ;;  %v8184_v43 = vpop.permute.xlu0 %8183 }
 0x56c   : > { %v3532_v54 = vsel %vm3529_vm10, %v8165_v33, %v3526_v21  ;;  %v3533_v17 = vsel %vm3529_vm10, %v3526_v21, %v8166_v39  ;;  %v8186_v32 = vunpack.i.h.bf16 %v8184_v43  ;;  %v8185_v12 = vunpack.i.l.bf16 %v8184_v43  ;;  %v7712_v21 = vld [vmem:[%s10889_s7 + $0x38] sm:$0xff] }
 0x56d   : > { %3617 = vmatpush.msra.mxu1 %v3533_v17 }
 0x56e   : > { %7676 = vmatmul.msk.f32.vlgmr.msra.gmra.mxu0 %vm1068_vm8, %v10068_v3  ;;  %v3664_v49 = vsel %vm903_vm5, %v8186_v32, %v8175_v26  ;;  %v3666_v23 = vsel %vm903_vm5, %v8176_v24, %v8185_v12  ;;  %v3663_v59 = vsel %vm903_vm5, %v8171_v14, %v8186_v32  ;;  %v8229_v0 = vpop.permute.xlu2 %8228 }
 0x56f   : > { %3597 = vmatpush.msra.mxu0 %v3532_v54  ;;  %v8231_v40 = vunpack.i.h.bf16 %v8229_v0  ;;  %v8230_v62 = vunpack.i.l.bf16 %v8229_v0 }
 0x570   : > { %7681 = vmatmul.msk.f32.vlgmr.msrb.gmra.mxu1 %vm1068_vm8, %v10075_v2 }
 0x571   : > { %7684 = vmatmul.msk.f32.vlgmr.msrb.gmra.mxu3 %vm1068_vm8, %v10085_v29  ;;  %3730 = vmatpush.msrb.mxu1 %v3664_v49  ;;  %v3931_v46 = vsel %vm3926_vm11, %v8230_v62, %v8231_v40  ;;  %v3930_v8 = vsel %vm3926_vm11, %v8200_v1, %v8230_v62 }
 0x572   : > { %3770 = vmatpush.msrb.mxu3 %v3666_v23  ;;  %7692 = vmatmul.msk.f32.vlgmr.msrb.gmra.mxu2 %vm1068_vm8, %v7688_v61 }
 0x573   : > { %v8194_v5 = vpop.permute.xlu1 %8193  ;;  %v8189_v27 = vpop.permute.xlu0 %8188 }
 0x574   : > { %v8196_v31 = vunpack.i.h.bf16 %v8194_v5  ;;  %v8195_v53 = vunpack.i.l.bf16 %v8194_v5  ;;  %v8191_v38 = vunpack.i.h.bf16 %v8189_v27  ;;  %v8190_v9 = vunpack.i.l.bf16 %v8189_v27 }
 0x576   : > { %7680 = vmatmul.msk.f32.vlgmr.msrb.gmra.mxu0 %vm1068_vm8, %v10075_v2  ;;  %v3928_v60 = vsel %vm3926_vm11, %v8195_v53, %v8196_v31  ;;  %v3795_v28 = vsel %vm1025_vm7, %v8191_v38, %v8180_v41  ;;  %v3797_v45 = vsel %vm1025_vm7, %v8181_v57, %v8190_v9  ;;  %v3794_v16 = vsel %vm1025_vm7, %v8215_v58, %v8191_v38  ;;  %v4054_v39 = vpop.permute.xlu2 %4053 }
 0x577   : > { %3710 = vmatpush.msrb.mxu0 %v3663_v59  ;;  %3975 = vmatpush.msrb.mxu2 %v3928_v60  ;;  %v3927_v36 = vsel %vm3926_vm11, %v8201_v42, %v8195_v53  ;;  %v3929_v3 = vsel %vm3926_vm11, %v8196_v31, %v8200_v1  ;;  %v3798_v63 = vsel %vm1025_vm7, %v8190_v9, %v8216_v34 }
 0x578   : > { %7686 = vmatmul.msk.f32.vlgmr.msra.gmra.mxu1 %vm1068_vm8, %v10085_v29 }
 0x579   : > { %7689 = vmatmul.msk.f32.vlgmr.msra.gmra.mxu3 %vm1068_vm8, %v7688_v61  ;;  %3842 = vmatpush.msra.mxu1 %v3795_v28 }
 0x57a   : > { %3882 = vmatpush.msra.mxu3 %v3797_v45  ;;  %7697 = vmatmul.msk.f32.vlgmr.msra.gmra.mxu2 %vm1068_vm8, %v10135_v7 }
 0x57b   : > { %v10142_v55 = vpop.permute.xlu1 %8208  ;;  %v8204_v50 = vpop.permute.xlu0 %8203 }
 0x57c   : > { %v8206_v30 = vunpack.i.h.bf16 %v8204_v50  ;;  %v8205_v13 = vunpack.i.l.bf16 %v8204_v50  ;;  %v8211_v2 = vunpack.i.h.bf16 %v10142_v55  ;;  %v8210_v51 = vunpack.i.l.bf16 %v10142_v55 }
 0x57e   : > { %7685 = vmatmul.msk.f32.vlgmr.msra.gmra.mxu0 %vm1068_vm8, %v10085_v29  ;;  %v4059_v22 = vsel %vm1068_vm8, %v8205_v13, %v8206_v30  ;;  %v4060_v19 = vsel %vm1068_vm8, %v8206_v30, %v8210_v51  ;;  %v4062_v44 = vsel %vm1068_vm8, %v4054_v39, %v8211_v2  ;;  %v4061_v41 = vsel %vm1068_vm8, %v8210_v51, %v4054_v39  ;;  %v4184_v35 = vpop.permute.xlu2 %4183 }
 0x57f   : > { %3822 = vmatpush.msra.mxu0 %v3794_v16  ;;  %4087 = vmatpush.msra.mxu2 %v4059_v22 }
 0x580   : > { %7691 = vmatmul.msk.f32.vlgmr.msrb.gmra.mxu1 %vm1068_vm8, %v7688_v61 }
 0x581   : > { %7693 = vmatmul.msk.f32.vlgmr.msrb.gmra.mxu3 %vm1068_vm8, %v7688_v61  ;;  %3955 = vmatpush.msrb.mxu1 %v3927_v36 }
 0x582   : > { %3995 = vmatpush.msrb.mxu3 %v3929_v3  ;;  %7702 = vmatmul.msk.f32.vlgmr.msrb.gmra.mxu2 %vm1068_vm8, %v10153_v6 }
 0x583   : > { %v4058_v52 = vpop.permute.xlu0 %4057  ;;  %v8219_v15 = vpop.permute.xlu1 %8218 }
 0x584   : > { %v4063_v37 = vsel %vm1068_vm8, %v8211_v2, %v4058_v52  ;;  %v8221_v33 = vunpack.i.h.bf16 %v8219_v15  ;;  %v8220_v47 = vunpack.i.l.bf16 %v8219_v15 }
 0x585   : > { %4167 = vmatpush.msrb.mxu2 %v4063_v37 }
 0x586   : > { %7690 = vmatmul.msk.f32.vlgmr.msrb.gmra.mxu0 %vm1068_vm8, %v7688_v61  ;;  %v4192_v14 = vsel %vm4191_vm12, %v8220_v47, %v8221_v33  ;;  %v4193_v12 = vsel %vm4191_vm12, %v8221_v33, %v4184_v35  ;;  %v4323_v27 = vpop.permute.xlu2 %4322 }
 0x587   : > { %3902 = vmatpush.msrb.mxu0 %v3798_v63 }
 0x588   : > { %7696 = vmatmul.msk.f32.vlgmr.msra.gmra.mxu1 %vm1068_vm8, %v10135_v7 }
 0x589   : > { %7698 = vmatmul.msk.f32.vlgmr.msra.gmra.mxu3 %vm1068_vm8, %v10135_v7  ;;  %4035 = vmatpush.msra.mxu1 %v3931_v46 }
 0x58a   : > { %4107 = vmatpush.msra.mxu3 %v4060_v19  ;;  %7707 = vmatmul.msk.f32.vlgmr.msra.gmra.mxu2 %vm1068_vm8, %v7706_v48 }
 0x58b   : > { %v8224_v24 = vpop.permute.xlu0 %8223  ;;  %v4190_v18 = vpop.permute.xlu1 %4189 }
 0x58c   : > { %v8226_v26 = vunpack.i.h.bf16 %v8224_v24  ;;  %v8225_v29 = vunpack.i.l.bf16 %v8224_v24 }
 0x58e   : > { %7695 = vmatmul.msk.f32.vlgmr.msra.gmra.mxu0 %vm1068_vm8, %v10135_v7  ;;  %v4195_v4 = vsel %vm4191_vm12, %v8225_v29, %v8226_v26  ;;  %v4194_v43 = vsel %vm4191_vm12, %v4184_v35, %v8225_v29  ;;  %v4196_v17 = vsel %vm4191_vm12, %v8226_v26, %v4190_v18 }
 0x58f   : > { %4015 = vmatpush.msra.mxu0 %v3930_v8  ;;  %4280 = vmatpush.msra.mxu2 %v4195_v4 }
 0x590   : > { %7701 = vmatmul.msk.f32.vlgmr.msrb.gmra.mxu1 %vm1068_vm8, %v10153_v6 }
 0x591   : > { %7703 = vmatmul.msk.f32.vlgmr.msrb.gmra.mxu3 %vm1068_vm8, %v10153_v6  ;;  %4147 = vmatpush.msrb.mxu1 %v4062_v44 }
 0x592   : > { %4220 = vmatpush.msrb.mxu3 %v4192_v14  ;;  %7711 = vmatmul.msk.f32.vlgmr.msrb.gmra.mxu2 %vm1068_vm8, %v7706_v48 }
 0x593   : > { %v8234_v20 = vpop.permute.xlu0 %8233  ;;  %v4321_v54 = vpop.permute.xlu1 %4320 }
 0x594   : > { %v8236_v25 = vunpack.i.h.bf16 %v8234_v20  ;;  %v8235_v57 = vunpack.i.l.bf16 %v8234_v20  ;;  %v4329_v31 = vsel %vm4324_vm13, %v4321_v54, %v4323_v27 }
 0x596   : > { %7699 = vmatmul.msk.f32.vlgmr.msrb.gmra.mxu0 %vm1068_vm8, %v10135_v7  ;;  %v4327_v56 = vsel %vm4324_vm13, %v8235_v57, %v8236_v25  ;;  %v4328_v23 = vsel %vm4324_vm13, %v8236_v25, %v4321_v54 }
 0x597   : > { %4127 = vmatpush.msrb.mxu0 %v4061_v41  ;;  %4393 = vmatpush.msrb.mxu2 %v4327_v56 }
 0x598   : > { %7705 = vmatmul.msk.f32.vlgmr.msra.gmra.mxu1 %vm1068_vm8, %v10153_v6 }
 0x599   : > { %7708 = vmatmul.msk.f32.vlgmr.msra.gmra.mxu3 %vm1068_vm8, %v7706_v48  ;;  %4260 = vmatpush.msra.mxu1 %v4194_v43 }
 0x59a   : > { %4300 = vmatpush.msra.mxu3 %v4196_v17  ;;  %7716 = vmatmul.msk.f32.vlgmr.msra.gmra.mxu2 %vm1068_vm8, %v7712_v21 }
 0x59b   : > { %v4315_v32 = vpop.permute.xlu0 %4314  ;;  %v4313_v61 = vpop.permute.xlu1 %4312 }
 0x59c   : > { %v4326_v49 = vsel %vm4324_vm13, %v4315_v32, %v8235_v57  ;;  %v4325_v5 = vsel %vm4324_vm13, %v4313_v61, %v4315_v32 }
 0x59e   : > { %7704 = vmatmul.msk.f32.vlgmr.msra.gmra.mxu0 %vm1068_vm8, %v10153_v6 }
 0x59f   : > { %4240 = vmatpush.msra.mxu0 %v4193_v12 }
 0x5a0   : > { %7710 = vmatmul.msk.f32.vlgmr.msrb.gmra.mxu1 %vm1068_vm8, %v7706_v48 }
 0x5a1   : > { %7713 = vmatmul.msk.f32.vlgmr.msrb.gmra.mxu3 %vm1068_vm8, %v7712_v21  ;;  %4373 = vmatpush.msrb.mxu1 %v4326_v49 }
 0x5a2   : > { %4413 = vmatpush.msrb.mxu3 %v4328_v23  ;;  %7721 = vmatmul.msk.f32.vlgmr.msrb.gmra.mxu2 %vm1068_vm8, %v7718_v10 }
 0x5a6   : > { %7709 = vmatmul.msk.f32.vlgmr.msrb.gmra.mxu0 %vm1068_vm8, %v7706_v48 }
 0x5a7   : > { %4353 = vmatpush.msrb.mxu0 %v4325_v5 }
 0x5a8   : > { %7715 = vmatmul.msk.f32.vlgmr.msra.gmra.mxu1 %vm1068_vm8, %v7712_v21 }
 0x5a9   : > { %7717 = vmatmul.msk.f32.vlgmr.msra.gmra.mxu3 %vm1068_vm8, %v7712_v21 }
 0x5ae   : > { %7714 = vmatmul.msk.f32.vlgmr.msra.gmra.mxu0 %vm1068_vm8, %v7712_v21 }
 0x5af   : > { %4433 = vmatpush.msra.mxu0 %v4329_v31 }
 0x5b0   : > { %7720 = vmatmul.msk.f32.vlgmr.msrb.gmra.mxu1 %vm1068_vm8, %v7718_v10 }
 0x5b1   : > { %7722 = vmatmul.msk.f32.vlgmr.msrb.gmra.mxu3 %vm1068_vm8, %v7718_v10 }
 0x5b6   : > { %7719 = vmatmul.msk.f32.vlgmr.msrb.gmra.mxu0 %vm1068_vm8, %v7718_v10 }
 0x5be   : > { %7723 = vmatmul.msk.f32.vlgmr.msra.gmra.mxu0 %vm1068_vm8, %v7718_v10 }
 0x5c6   : > { %v3371_v53 = vpop.f32.mrf.mxu2 }
 0x5ce   : > { %v3454_v38 = vpop.f32.mrf.mxu2 }
 0x5dd   : > { %v3351_v9 = vpop.f32.mrf.mxu1 }
 0x5de   : > { %v3455_v24 = vadd.f32 %v3454_v38, %v3351_v9 }
 0x5e3   : > { %v3331_v59 = vpop.f32.mrf.mxu0 }
 0x5e4   : > { %v3391_v60 = vpop.f32.mrf.mxu3 }
 0x5e5   : > { %v3434_v28 = vpop.f32.mrf.mxu1  ;;  %v3559_v11 = vpop.f32.mrf.mxu2 }
 0x5e6   : > { %v3435_v4 = vadd.f32 %v3434_v28, %v3331_v59 }
 0x5e8   : > { %v3642_v57 = vadd.f32 %v3559_v11, %v3435_v4 }
 0x5eb   : > { %v10221_v45 = vpop.f32.mrf.mxu0 }
 0x5ec   : > { %v3474_v7 = vpop.f32.mrf.mxu3 }
 0x5ed   : > { %v10223_v55 = vpop.f32.mrf.mxu1  ;;  %v10225_v50 = vpop.f32.mrf.mxu2  ;;  %v3475_v48 = vadd.f32 %v3474_v7, %v3371_v53 }
 0x5f3   : > { %v3494_v58 = vpop.f32.mrf.mxu0 }
 0x5f4   : > { %v3579_v30 = vpop.f32.mrf.mxu3  ;;  %v3495_v8 = vadd.f32 %v3494_v58, %v3391_v60 }
 0x5f5   : > { %v3619_v13 = vpop.f32.mrf.mxu1  ;;  %v3752_v42 = vpop.f32.mrf.mxu2  ;;  %v3643_v47 = vadd.f32 %v3579_v30, %v3455_v24 }
 0x5f6   : > { %v3645_v20 = vadd.f32 %v3619_v13, %v3495_v8  ;;  %v7728_v8 = vld [vmem:[%s10890_s8 + $0x8] sm:$0xff] }
 0x5f8   : > { %v3778_v32 = vadd.f32 %v3752_v42, %v3645_v20 }
 0x5fb   : > { %v3599_v16 = vpop.f32.mrf.mxu0 }
 0x5fc   : > { %v3692_v22 = vpop.f32.mrf.mxu3  ;;  %v3644_v46 = vadd.f32 %v3599_v16, %v3475_v48 }
 0x5fd   : > { %v3732_v1 = vpop.f32.mrf.mxu1  ;;  %v3864_v6 = vpop.f32.mrf.mxu2  ;;  %v3775_v54 = vadd.f32 %v3692_v22, %v3642_v57 }
 0x5fe   : > { %v3777_v26 = vadd.f32 %v3732_v1, %v3644_v46 }
 0x600   : > { %v3909_v18 = vadd.f32 %v3864_v6, %v3777_v26 }
 0x603   : > { %v3712_v36 = vpop.f32.mrf.mxu0 }
 0x604   : > { %v10227_v0 = vpop.f32.mrf.mxu3  ;;  %v3776_v44 = vadd.f32 %v3712_v36, %v3643_v47 }
 0x605   : > { %v3844_v3 = vpop.f32.mrf.mxu1  ;;  %v3977_v2 = vpop.f32.mrf.mxu2 }
 0x606   : > { %v3908_v41 = vadd.f32 %v3844_v3, %v3776_v44 }
 0x608   : > { %v4041_v12 = vadd.f32 %v3977_v2, %v3908_v41  ;;  %v4454_v2 = vld [vmem:[%s10890_s8] sm:$0xff] }
 0x60b   : > { %v3824_v52 = vpop.f32.mrf.mxu0 }
 0x60c   : > { %v3884_v34 = vpop.f32.mrf.mxu3  ;;  %v3907_v10 = vadd.f32 %v3824_v52, %v3775_v54  ;;  %v3515_v52 = vadd.f32 %v10223_v55, %v10221_v45 }
 0x60d   : > { %v3957_v40 = vpop.f32.mrf.mxu1  ;;  %v4089_v62 = vpop.f32.mrf.mxu2  ;;  %v3910_v23 = vadd.f32 %v3884_v34, %v3778_v32  ;;  %v7733_v32 = vld [vmem:[%s10890_s8 + $0x10] sm:$0xff] }
 0x60e   : > { %v4040_v53 = vadd.f32 %v3957_v40, %v3907_v10  ;;  %v3646_v34 = vadd.f32 %v10225_v50, %v3515_v52 }
 0x610   : > { %v4172_v11 = vadd.f32 %v4089_v62, %v4040_v53  ;;  %v3779_v40 = vadd.f32 %v10227_v0, %v3646_v34 }
 0x613   : > { %v10229_v37 = vpop.f32.mrf.mxu0 }
 0x614   : > { %v3997_v51 = vpop.f32.mrf.mxu3  ;;  %v3911_v62 = vadd.f32 %v10229_v37, %v3779_v40  ;;  %v4448_v37 = vld [vmem:[%s10891_s9] sm:$0xff] }
 0x615   : > { %v10231_v15 = vpop.f32.mrf.mxu1  ;;  %v10233_v63 = vpop.f32.mrf.mxu2  ;;  %v4042_v14 = vadd.f32 %v3997_v51, %v3909_v18 }
 0x616   : > { %v4044_v45 = vadd.f32 %v10231_v15, %v3911_v62 }
 0x618   : > { %v4176_v55 = vadd.f32 %v10233_v63, %v4044_v45 }
 0x61b   : > { %v4017_v19 = vpop.f32.mrf.mxu0 }
 0x61c   : > { %v4109_v29 = vpop.f32.mrf.mxu3  ;;  %v4043_v27 = vadd.f32 %v4017_v19, %v3910_v23 }
 0x61d   : > { %v4149_v39 = vpop.f32.mrf.mxu1  ;;  %v4282_v33 = vpop.f32.mrf.mxu2  ;;  %v4173_v61 = vadd.f32 %v4109_v29, %v4041_v12 }
 0x61e   : > { %v4175_v28 = vadd.f32 %v4149_v39, %v4043_v27 }
 0x620   : > { %v4308_v30 = vadd.f32 %v4282_v33, %v4175_v28 }
 0x623   : > { %v4129_v25 = vpop.f32.mrf.mxu0 }
 0x624   : > { %v4174_v56 = vadd.f32 %v4129_v25, %v4042_v14  ;;  %v4222_v35 = vpop.f32.mrf.mxu3 }
 0x625   : > { %v4262_v21 = vpop.f32.mrf.mxu1  ;;  %v4395_v43 = vpop.f32.mrf.mxu2  ;;  %v4305_v58 = vadd.f32 %v4222_v35, %v4172_v11 }
 0x626   : > { %v4307_v17 = vadd.f32 %v4262_v21, %v4174_v56 }
 0x628   : > { %v4440_v49 = vadd.f32 %v4395_v43, %v4307_v17 }
 0x62a   : > { %v4445_v5 = vmax.f32 %v4440_v49, 0.0 }
 0x62b   : > { %v4242_v31 = vpop.f32.mrf.mxu0 }
 0x62c   : > { %v4306_v38 = vadd.f32 %v4242_v31, %v4173_v61  ;;  %v4302_v9 = vpop.f32.mrf.mxu3  ;;  %4513 = vmatpush.msra.mxu3 %v4445_v5 }
 0x62d   : > { %v4375_v59 = vpop.f32.mrf.mxu1  ;;  %7726 = vmatmul.msk.f32.vlgmr.msra.gmra.mxu3 %vm1068_vm8, %v4454_v2  ;;  %v4309_v48 = vadd.f32 %v4302_v9, %v4176_v55  ;;  %v10318_v9 = vld [vmem:[%s10890_s8 + $0x18] sm:$0xff]  ;;  %v7748_v55 = vld [vmem:[%s10890_s8 + $0x28] sm:$0xff] }
 0x62e   : > { %v4439_v60 = vadd.f32 %v4375_v59, %v4306_v38 }
 0x630   : > { %v4444_v7 = vmax.f32 %v4439_v60, 0.0 }
 0x632   : > { %4493 = vmatpush.msra.mxu2 %v4444_v7 }
 0x633   : > { %v4355_v13 = vpop.f32.mrf.mxu0  ;;  %7725 = vmatmul.msk.f32.vlgmr.msra.gmra.mxu2 %vm1068_vm8, %v4454_v2 }
 0x634   : > { %v4438_v42 = vadd.f32 %v4355_v13, %v4305_v58  ;;  %v4415_v16 = vpop.f32.mrf.mxu3 }
 0x635   : > { %v4441_v22 = vadd.f32 %v4415_v16, %v4308_v30 }
 0x636   : > { %v4443_v1 = vmax.f32 %v4438_v42, 0.0 }
 0x637   : > { %v4446_v6 = vmax.f32 %v4441_v22, 0.0 }
 0x638   : > { %4473 = vmatpush.msra.mxu1 %v4443_v1  ;;  %v8242_v36 = vpack.i.bf16 %v4443_v1, %v4444_v7 }
 0x639   : > { %4533 = vmatpush.msrb.mxu0 %v4446_v6  ;;  %v8247_v3 = vpack.i.bf16 %v4446_v6, %v4445_v5  ;;  %7724 = vmatmul.msk.f32.vlgmr.msra.gmra.mxu1 %vm1068_vm8, %v4454_v2  ;;  %v7743_v6 = vld [vmem:[%s10890_s8 + $0x20] sm:$0xff] }
 0x63a   : > { %8243 = vrot.lane.b32.xlu1 %v8242_v36, %s8504_s26  ;;  %7727 = vmatmul.msk.f32.vlgmr.msrb.gmra.mxu0 %vm1068_vm8, %v4454_v2 }
 0x63b   : > { %8248 = vrot.lane.b32.xlu2 %v8247_v3, %s8511_s30  ;;  %8238 = vrot.lane.b32.xlu0 %v8247_v3, %s8504_s26  ;;  %v4435_v51 = vpop.f32.mrf.mxu0 }
 0x63c   : > { %v4442_v50 = vadd.f32 %v4435_v51, %v4309_v48 }
 0x63e   : > { %v4447_v0 = vmax.f32 %v4442_v50, 0.0 }
 0x642   : > { %8258 = vrot.lane.b32.xlu1 %v8247_v3, %s11021_s1 }
 0x643   : > { %8263 = vrot.lane.b32.xlu2 %v8242_v36, %s11021_s1  ;;  %8253 = vrot.lane.b32.xlu0 %v8242_v36, %s8511_s30 }
 0x64a   : > { %4866 = vrot.lane.b32.xlu1 %v4444_v7, %s8510_s19 }
 0x64b   : > { %8273 = vrot.lane.b32.xlu2 %v8247_v3, %s10905_s0  ;;  %8268 = vrot.lane.b32.xlu0 %v8247_v3, %s8510_s19 }
 0x652   : > { %8278 = vrot.lane.b32.xlu1 %v8247_v3, %s10903_s20 }
 0x653   : > { %4864 = vrot.lane.b32.xlu2 %v4443_v1, %s8510_s19  ;;  %4973 = vrot.lane.b32.xlu0 %v4444_v7, %s10905_s0 }
 0x65a   : > { %8283 = vrot.lane.b32.xlu1 %v8247_v3, %s8514_s29 }
 0x65b   : > { %4971 = vrot.lane.b32.xlu2 %v4443_v1, %s10905_s0  ;;  %5080 = vrot.lane.b32.xlu0 %v4444_v7, %s10903_s20 }
 0x662   : > { %8288 = vrot.lane.b32.xlu1 %v8247_v3, %s8515_s21 }
 0x663   : > { %5078 = vrot.lane.b32.xlu2 %v4443_v1, %s10903_s20  ;;  %5187 = vrot.lane.b32.xlu0 %v4444_v7, %s8514_s29 }
 0x66a   : > { %4765 = vrot.lane.b32.xlu1 %v4447_v0, %s11021_s1 }
 0x66b   : > { %5185 = vrot.lane.b32.xlu2 %v4443_v1, %s8514_s29  ;;  %5294 = vrot.lane.b32.xlu0 %v4444_v7, %s8515_s21 }
 0x672   : > { %5292 = vrot.lane.b32.xlu1 %v4443_v1, %s8515_s21 }
 0x673   : > { %4979 = vrot.lane.b32.xlu2 %v4447_v0, %s10905_s0  ;;  %4872 = vrot.lane.b32.xlu0 %v4447_v0, %s8510_s19 }
 0x67a   : > { %5193 = vrot.lane.b32.xlu1 %v4447_v0, %s8514_s29 }
 0x67b   : > { %5300 = vrot.lane.b32.xlu2 %v4447_v0, %s8515_s21  ;;  %5086 = vrot.lane.b32.xlu0 %v4447_v0, %s10903_s20 }
 0x683   : > { %4451 = vperm.xlu0 %7959, %v4448_v37  }
 0x695   : > { %v8249_v15 = vpop.permute.xlu2 %8248 }
 0x696   : > { %v8251_v4 = vunpack.i.h.bf16 %v8249_v15  ;;  %v8250_v18 = vunpack.i.l.bf16 %v8249_v15 }
 0x698   : > { %v4662_v20 = vsel %vm3529_vm10, %v8250_v18, %v8251_v4 }
 0x69d   : > { %v8264_v63 = vpop.permute.xlu2 %8263 }
 0x69e   : > { %v8266_v35 = vunpack.i.h.bf16 %v8264_v63  ;;  %v8265_v21 = vunpack.i.l.bf16 %v8264_v63 }
 0x6a0   : > { %v4767_v61 = vsel %vm903_vm5, %v8266_v35, %v8265_v21 }
 0x6a5   : > { %v10279_v19 = vpop.permute.xlu2 %8273 }
 0x6a6   : > { %v8276_v59 = vunpack.i.h.bf16 %v10279_v19  ;;  %v8275_v60 = vunpack.i.l.bf16 %v10279_v19 }
 0x6a8   : > { %v4983_v58 = vsel %vm3926_vm11, %v8275_v60, %v8276_v59 }
 0x6ac   : > { %v8244_v46 = vpop.permute.xlu1 %8243 }
 0x6ad   : > { %v8246_v24 = vunpack.i.h.bf16 %v8244_v46  ;;  %v8245_v26 = vunpack.i.l.bf16 %v8244_v46  ;;  %v8239_v29 = vpop.permute.xlu0 %8238  ;;  %v4865_v17 = vpop.permute.xlu2 %4864 }
 0x6ae   : > { %v8241_v39 = vunpack.i.h.bf16 %v8239_v29  ;;  %v8240_v33 = vunpack.i.l.bf16 %v8239_v29 }
 0x6af   : > { %v4556_v47 = vsel %vm673_vm1, %v8246_v24, %v8245_v26  ;;  %v7753_v24 = vld [vmem:[%s10890_s8 + $0x30] sm:$0xff] }
 0x6b0   : > { %4641 = vmatpush.msra.mxu0 %v8241_v39  ;;  %4581 = vmatpush.msrb.mxu1 %v4556_v47  ;;  %v4557_v44 = vsel %vm673_vm1, %v8245_v26, %v8240_v33  ;;  %v4558_v14 = vsel %vm673_vm1, %v8240_v33, %v8241_v39 }
 0x6b1   : > { %4601 = vmatpush.msrb.mxu2 %v4557_v44  ;;  %4621 = vmatpush.msrb.mxu3 %v4558_v14 }
 0x6b2   : > { %7732 = vmatmul.msk.f32.vlgmr.msra.gmra.mxu0 %vm1068_vm8, %v7728_v8  ;;  %7729 = vmatmul.msk.f32.vlgmr.msrb.gmra.mxu1 %vm1068_vm8, %v7728_v8 }
 0x6b3   : > { %4745 = vmatpush.msrb.mxu0 %v8251_v4  ;;  %7730 = vmatmul.msk.f32.vlgmr.msrb.gmra.mxu2 %vm1068_vm8, %v7728_v8 }
 0x6b4   : > { %7731 = vmatmul.msk.f32.vlgmr.msrb.gmra.mxu3 %vm1068_vm8, %v7728_v8  ;;  %v10292_v25 = vpop.permute.xlu1 %8258  ;;  %v7758_v8 = vld [vmem:[%s10890_s8 + $0x38] sm:$0xff] }
 0x6b5   : > { %4725 = vmatpush.msra.mxu3 %v4662_v20  ;;  %v8261_v57 = vunpack.i.h.bf16 %v10292_v25  ;;  %v8260_v41 = vunpack.i.l.bf16 %v10292_v25  ;;  %v8254_v56 = vpop.permute.xlu0 %8253  ;;  %v4972_v7 = vpop.permute.xlu2 %4971  ;;  %v7763_v25 = vld [vmem:[%s10890_s8 + $0x40] sm:$0xff] }
 0x6b6   : > { %v8256_v43 = vunpack.i.h.bf16 %v8254_v56  ;;  %v8255_v54 = vunpack.i.l.bf16 %v8254_v56 }
 0x6b7   : > { %v4769_v12 = vsel %vm903_vm5, %v8260_v41, %v8261_v57  ;;  %v4768_v23 = vsel %vm903_vm5, %v8265_v21, %v8260_v41 }
 0x6b8   : > { %v4660_v10 = vsel %vm3529_vm10, %v8256_v43, %v8255_v54  ;;  %v4661_v49 = vsel %vm3529_vm10, %v8255_v54, %v8250_v18  ;;  %4833 = vmatpush.msrb.mxu3 %v4769_v12  ;;  %v4475_v54 = vpop.f32.mrf.mxu1 }
 0x6b9   : > { %4685 = vmatpush.msra.mxu1 %v4660_v10  ;;  %4705 = vmatpush.msra.mxu2 %v4661_v49 }
 0x6ba   : > { %7737 = vmatmul.msk.f32.vlgmr.msrb.gmra.mxu0 %vm1068_vm8, %v7733_v32  ;;  %7734 = vmatmul.msk.f32.vlgmr.msra.gmra.mxu1 %vm1068_vm8, %v7733_v32 }
 0x6bb   : > { %7735 = vmatmul.msk.f32.vlgmr.msra.gmra.mxu2 %vm1068_vm8, %v7733_v32  ;;  %4793 = vmatpush.msrb.mxu1 %v4767_v61 }
 0x6bc   : > { %7736 = vmatmul.msk.f32.vlgmr.msra.gmra.mxu3 %vm1068_vm8, %v7733_v32  ;;  %4813 = vmatpush.msrb.mxu2 %v4768_v23  ;;  %v4867_v5 = vpop.permute.xlu1 %4866  ;;  %v4515_v32 = vpop.f32.mrf.mxu3 }
 0x6bd   : > { %v4874_v27 = vsel %vm1025_vm7, %v4865_v17, %v4867_v5  ;;  %v10311_v31 = vpop.permute.xlu0 %8268  ;;  %v5079_v3 = vpop.permute.xlu2 %5078 }
 0x6be   : > { %v8271_v53 = vunpack.i.h.bf16 %v10311_v31  ;;  %v8270_v38 = vunpack.i.l.bf16 %v10311_v31  ;;  %4900 = vmatpush.msra.mxu1 %v4874_v27  ;;  %v4495_v17 = vpop.f32.mrf.mxu2  ;;  %v10403_v31 = vpop.f32.mrf.mxu0 }
 0x6c0   : > { %v4875_v28 = vsel %vm1025_vm7, %v4867_v5, %v8270_v38  ;;  %v4876_v11 = vsel %vm1025_vm7, %v8270_v38, %v8271_v53 }
 0x6c1   : > { %4920 = vmatpush.msra.mxu2 %v4875_v28  ;;  %4940 = vmatpush.msra.mxu3 %v4876_v11 }
 0x6c2   : > { %7739 = vmatmul.msk.f32.vlgmr.msrb.gmra.mxu1 %vm1068_vm8, %v10318_v9 }
 0x6c3   : > { %7740 = vmatmul.msk.f32.vlgmr.msrb.gmra.mxu2 %vm1068_vm8, %v10318_v9 }
 0x6c4   : > { %7741 = vmatmul.msk.f32.vlgmr.msrb.gmra.mxu3 %vm1068_vm8, %v10318_v9  ;;  %v10335_v30 = vpop.permute.xlu1 %8278 }
 0x6c5   : > { %5047 = vmatpush.msrb.mxu3 %v4983_v58  ;;  %v4974_v13 = vpop.permute.xlu0 %4973  ;;  %v8281_v42 = vunpack.i.h.bf16 %v10335_v30  ;;  %v8280_v16 = vunpack.i.l.bf16 %v10335_v30  ;;  %v5186_v50 = vpop.permute.xlu2 %5185 }
 0x6c6   : > { %v4981_v22 = vsel %vm3926_vm11, %v4972_v7, %v4974_v13  ;;  %v4982_v1 = vsel %vm3926_vm11, %v4974_v13, %v8275_v60 }
 0x6c7   : > { %5007 = vmatpush.msrb.mxu1 %v4981_v22  ;;  %5027 = vmatpush.msrb.mxu2 %v4982_v1  ;;  %v5090_v36 = vsel %vm1068_vm8, %v8280_v16, %v8281_v42 }
 0x6ca   : > { %7744 = vmatmul.msk.f32.vlgmr.msra.gmra.mxu1 %vm1068_vm8, %v7743_v6 }
 0x6cb   : > { %7745 = vmatmul.msk.f32.vlgmr.msra.gmra.mxu2 %vm1068_vm8, %v7743_v6 }
 0x6cc   : > { %7746 = vmatmul.msk.f32.vlgmr.msra.gmra.mxu3 %vm1068_vm8, %v7743_v6  ;;  %v8284_v2 = vpop.permute.xlu1 %8283 }
 0x6cd   : > { %5154 = vmatpush.msra.mxu3 %v5090_v36  ;;  %v5081_v52 = vpop.permute.xlu0 %5080  ;;  %v8286_v34 = vunpack.i.h.bf16 %v8284_v2  ;;  %v8285_v40 = vunpack.i.l.bf16 %v8284_v2  ;;  %v4980_v18 = vpop.permute.xlu2 %4979 }
 0x6ce   : > { %v5088_v62 = vsel %vm1068_vm8, %v5079_v3, %v5081_v52  ;;  %v5089_v45 = vsel %vm1068_vm8, %v5081_v52, %v8280_v16 }
 0x6cf   : > { %5114 = vmatpush.msra.mxu1 %v5088_v62  ;;  %5134 = vmatpush.msra.mxu2 %v5089_v45  ;;  %v5197_v51 = vsel %vm4191_vm12, %v8285_v40, %v8286_v34 }
 0x6d2   : > { %7749 = vmatmul.msk.f32.vlgmr.msrb.gmra.mxu1 %vm1068_vm8, %v7748_v55 }
 0x6d3   : > { %7750 = vmatmul.msk.f32.vlgmr.msrb.gmra.mxu2 %vm1068_vm8, %v7748_v55 }
 0x6d4   : > { %7751 = vmatmul.msk.f32.vlgmr.msrb.gmra.mxu3 %vm1068_vm8, %v7748_v55  ;;  %v8289_v48 = vpop.permute.xlu1 %8288 }
 0x6d5   : > { %5261 = vmatpush.msrb.mxu3 %v5197_v51  ;;  %v5188_v0 = vpop.permute.xlu0 %5187  ;;  %v8291_v37 = vunpack.i.h.bf16 %v8289_v48  ;;  %v8290_v15 = vunpack.i.l.bf16 %v8289_v48  ;;  %v5301_v19 = vpop.permute.xlu2 %5300 }
 0x6d6   : > { %v5195_v63 = vsel %vm4191_vm12, %v5186_v50, %v5188_v0  ;;  %v5196_v46 = vsel %vm4191_vm12, %v5188_v0, %v8285_v40 }
 0x6d7   : > { %5221 = vmatpush.msrb.mxu1 %v5195_v63  ;;  %5241 = vmatpush.msrb.mxu2 %v5196_v46  ;;  %v5304_v26 = vsel %vm4324_vm13, %v8290_v15, %v8291_v37  ;;  %v5305_v43 = vsel %vm4324_vm13, %v8291_v37, %v5301_v19 }
 0x6da   : > { %7754 = vmatmul.msk.f32.vlgmr.msra.gmra.mxu1 %vm1068_vm8, %v7753_v24 }
 0x6db   : > { %7755 = vmatmul.msk.f32.vlgmr.msra.gmra.mxu2 %vm1068_vm8, %v7753_v24 }
 0x6dc   : > { %7756 = vmatmul.msk.f32.vlgmr.msra.gmra.mxu3 %vm1068_vm8, %v7753_v24  ;;  %v4766_v29 = vpop.permute.xlu1 %4765 }
 0x6dd   : > { %5368 = vmatpush.msra.mxu3 %v5304_v26  ;;  %v4770_v39 = vsel %vm903_vm5, %v8261_v57, %v4766_v29  ;;  %v5295_v33 = vpop.permute.xlu0 %5294  ;;  %v4984_v57 = vsel %vm3926_vm11, %v8276_v59, %v4980_v18 }
 0x6de   : > { %v5303_v47 = vsel %vm4324_vm13, %v5295_v33, %v8290_v15  ;;  %4853 = vmatpush.msra.mxu0 %v4770_v39 }
 0x6df   : > { %5348 = vmatpush.msra.mxu2 %v5303_v47  ;;  %7742 = vmatmul.msk.f32.vlgmr.msra.gmra.mxu0 %vm1068_vm8, %v10318_v9 }
 0x6e2   : > { %7759 = vmatmul.msk.f32.vlgmr.msrb.gmra.mxu1 %vm1068_vm8, %v7758_v8 }
 0x6e3   : > { %7760 = vmatmul.msk.f32.vlgmr.msrb.gmra.mxu2 %vm1068_vm8, %v7758_v8 }
 0x6e4   : > { %7761 = vmatmul.msk.f32.vlgmr.msrb.gmra.mxu3 %vm1068_vm8, %v7758_v8  ;;  %v5293_v4 = vpop.permute.xlu1 %5292 }
 0x6e5   : > { %v5302_v44 = vsel %vm4324_vm13, %v5293_v4, %v5295_v33  ;;  %v4873_v14 = vpop.permute.xlu0 %4872 }
 0x6e6   : > { %v4877_v20 = vsel %vm1025_vm7, %v8271_v53, %v4873_v14  ;;  %5328 = vmatpush.msra.mxu1 %v5302_v44 }
 0x6e7   : > { %4960 = vmatpush.msrb.mxu0 %v4877_v20 }
 0x6e8   : > { %7747 = vmatmul.msk.f32.vlgmr.msrb.gmra.mxu0 %vm1068_vm8, %v7743_v6 }
 0x6e9   : > { %5067 = vmatpush.msra.mxu0 %v4984_v57 }
 0x6ea   : > { %7764 = vmatmul.msk.f32.vlgmr.msra.gmra.mxu1 %vm1068_vm8, %v7763_v25 }
 0x6eb   : > { %7765 = vmatmul.msk.f32.vlgmr.msra.gmra.mxu2 %vm1068_vm8, %v7763_v25 }
 0x6ec   : > { %7766 = vmatmul.msk.f32.vlgmr.msra.gmra.mxu3 %vm1068_vm8, %v7763_v25  ;;  %v5194_v41 = vpop.permute.xlu1 %5193 }
 0x6ed   : > { %v5087_v56 = vpop.permute.xlu0 %5086  ;;  %v5198_v35 = vsel %vm4191_vm12, %v8286_v34, %v5194_v41 }
 0x6ee   : > { %v5091_v21 = vsel %vm1068_vm8, %v8281_v42, %v5087_v56  ;;  %v5413_v56 = vld [vmem:[%s10892_s10] sm:$0xff] }
 0x6ef   : > { %5174 = vmatpush.msrb.mxu0 %v5091_v21 }
 0x6f0   : > { %7752 = vmatmul.msk.f32.vlgmr.msra.gmra.mxu0 %vm1068_vm8, %v7748_v55 }
 0x6f1   : > { %5281 = vmatpush.msra.mxu0 %v5198_v35 }
 0x6f5   : > { %v4452_v58 = vpop.permute.xlu0 %4451 }
 0x6f6   : > { %v4538_v16 = vadd.f32 %v4475_v54, %v4452_v58  ;;  %v4539_v3 = vadd.f32 %v4495_v17, %v4452_v58  ;;  %v4540_v34 = vadd.f32 %v4515_v32, %v4452_v58 }
 0x6f8   : > { %7757 = vmatmul.msk.f32.vlgmr.msrb.gmra.mxu0 %vm1068_vm8, %v7753_v24 }
 0x6f9   : > { %5388 = vmatpush.msrb.mxu0 %v5305_v43 }
 0x700   : > { %7762 = vmatmul.msk.f32.vlgmr.msra.gmra.mxu0 %vm1068_vm8, %v7758_v8 }
 0x708   : > { %7767 = vmatmul.msk.f32.vlgmr.msrb.gmra.mxu0 %vm1068_vm8, %v7763_v25 }
 0x72f   : > { %v4583_v12 = vpop.f32.mrf.mxu1  ;;  %v10405_v59 = vpop.f32.mrf.mxu0 }
 0x730   : > { %v4646_v22 = vadd.f32 %v4583_v12, %v4538_v16 }
 0x736   : > { %v4603_v10 = vpop.f32.mrf.mxu2 }
 0x737   : > { %v4623_v49 = vpop.f32.mrf.mxu3  ;;  %v4687_v23 = vpop.f32.mrf.mxu1  ;;  %v4647_v62 = vadd.f32 %v4603_v10, %v4539_v3  ;;  %v4541_v10 = vadd.f32 %v10403_v31, %v4452_v58 }
 0x738   : > { %v10407_v7 = vpop.f32.mrf.mxu0  ;;  %v4750_v6 = vadd.f32 %v4687_v23, %v4646_v22  ;;  %v4648_v55 = vadd.f32 %v4623_v49, %v4540_v34  ;;  %v5414_v49 = vld [vmem:[%s10892_s10 + $0x8] sm:$0xff] }
 0x739   : > { %v4649_v23 = vadd.f32 %v10405_v59, %v4541_v10 }
 0x73e   : > { %v4707_v61 = vpop.f32.mrf.mxu2 }
 0x73f   : > { %v4727_v5 = vpop.f32.mrf.mxu3  ;;  %v4795_v27 = vpop.f32.mrf.mxu1  ;;  %v4751_v51 = vadd.f32 %v4707_v61, %v4647_v62  ;;  %v4753_v61 = vadd.f32 %v10407_v7, %v4649_v23 }
 0x740   : > { %v4858_v2 = vadd.f32 %v4795_v27, %v4750_v6  ;;  %v4752_v50 = vadd.f32 %v4727_v5, %v4648_v55  ;;  %v7774_v55 = vld [vmem:[%s10892_s10 + $0x10] sm:$0xff] }
 0x746   : > { %v4815_v53 = vpop.f32.mrf.mxu2 }
 0x747   : > { %v4835_v38 = vpop.f32.mrf.mxu3  ;;  %v4902_v9 = vpop.f32.mrf.mxu1  ;;  %v4859_v0 = vadd.f32 %v4815_v53, %v4751_v51 }
 0x748   : > { %v4965_v45 = vadd.f32 %v4902_v9, %v4858_v2  ;;  %v4860_v63 = vadd.f32 %v4835_v38, %v4752_v50 }
 0x74e   : > { %v4922_v60 = vpop.f32.mrf.mxu2 }
 0x74f   : > { %v4942_v28 = vpop.f32.mrf.mxu3  ;;  %v5009_v11 = vpop.f32.mrf.mxu1  ;;  %v4966_v24 = vadd.f32 %v4922_v60, %v4859_v0 }
 0x750   : > { %v5072_v48 = vadd.f32 %v5009_v11, %v4965_v45  ;;  %v4967_v39 = vadd.f32 %v4942_v28, %v4860_v63 }
 0x756   : > { %v5029_v30 = vpop.f32.mrf.mxu2 }
 0x757   : > { %v5049_v13 = vpop.f32.mrf.mxu3  ;;  %v5116_v42 = vpop.f32.mrf.mxu1  ;;  %v5073_v47 = vadd.f32 %v5029_v30, %v4966_v24  ;;  %v5402_v30 = vld [vmem:[%s10893_s11 + $0x8] sm:$0xff]  ;;  %v7775_v24 = vld [vmem:[%s10892_s10 + $0x18] sm:$0xff] }
 0x758   : > { %v5179_v37 = vadd.f32 %v5116_v42, %v5072_v48  ;;  %v5074_v4 = vadd.f32 %v5049_v13, %v4967_v39  ;;  %v5401_v13 = vld [vmem:[%s10893_s11] sm:$0xff]  ;;  %v10491_v39 = vld [vmem:[%s10892_s10 + $0x38] sm:$0xff] }
 0x75c   : > { %v4855_v1 = vpop.f32.mrf.mxu0 }
 0x75d   : > { %v4861_v5 = vadd.f32 %v4855_v1, %v4753_v61  ;;  %v10453_v1 = vld [vmem:[%s10892_s10 + $0x20] sm:$0xff] }
 0x75e   : > { %v5136_v36 = vpop.f32.mrf.mxu2 }
 0x75f   : > { %v5156_v52 = vpop.f32.mrf.mxu3  ;;  %v5223_v40 = vpop.f32.mrf.mxu1  ;;  %v5180_v18 = vadd.f32 %v5136_v36, %v5073_v47  ;;  %v10461_v36 = vld [vmem:[%s10892_s10 + $0x28] sm:$0xff] }
 0x760   : > { %v5286_v26 = vadd.f32 %v5223_v40, %v5179_v37  ;;  %v5181_v14 = vadd.f32 %v5156_v52, %v5074_v4  ;;  %v10475_v37 = vld [vmem:[%s10892_s10 + $0x30] sm:$0xff] }
 0x765   : > { %v4962_v15 = vpop.f32.mrf.mxu0 }
 0x766   : > { %v5243_v46 = vpop.f32.mrf.mxu2  ;;  %v4968_v31 = vadd.f32 %v4962_v15, %v4861_v5 }
 0x767   : > { %v5263_v29 = vpop.f32.mrf.mxu3  ;;  %v5330_v33 = vpop.f32.mrf.mxu1  ;;  %v5287_v20 = vadd.f32 %v5243_v46, %v5180_v18 }
 0x768   : > { %v5393_v8 = vadd.f32 %v5330_v33, %v5286_v26  ;;  %v5288_v57 = vadd.f32 %v5263_v29, %v5181_v14 }
 0x76a   : > { %v5397_v44 = vmax.f32 %v5393_v8, 0.0 }
 0x76c   : > { %5436 = vmatpush.msrb.mxu1 %v5397_v44 }
 0x76d   : > { %v5069_v25 = vpop.f32.mrf.mxu0  ;;  %7768 = vmatmul.msk.f32.vlgmr.msrb.gmra.mxu1 %vm1068_vm8, %v5413_v56 }
 0x76e   : > { %v5350_v41 = vpop.f32.mrf.mxu2  ;;  %v5075_v53 = vadd.f32 %v5069_v25, %v4968_v31 }
 0x76f   : > { %v5394_v35 = vadd.f32 %v5350_v41, %v5287_v20  ;;  %v5370_v21 = vpop.f32.mrf.mxu3 }
 0x770   : > { %v5395_v19 = vadd.f32 %v5370_v21, %v5288_v57 }
 0x771   : > { %v5398_v43 = vmax.f32 %v5394_v35, 0.0 }
 0x772   : > { %v5399_v54 = vmax.f32 %v5395_v19, 0.0 }
 0x773   : > { %5459 = vmatpush.msrb.mxu2 %v5398_v43  ;;  %v8302_v17 = vpack.i.bf16 %v5398_v43, %v5397_v44 }
 0x774   : > { %5482 = vmatpush.msrb.mxu3 %v5399_v54  ;;  %v8292_v32 = vpack.i.bf16 %v5398_v43, %v5399_v54  ;;  %7770 = vmatmul.msk.f32.vlgmr.msrb.gmra.mxu2 %vm1068_vm8, %v5413_v56  ;;  %v8307_v60 = vpack.i.bf16 %v5399_v54, %v5398_v43 }
 0x775   : > { %8303 = vrot.lane.b32.xlu0 %v8302_v17, %s11021_s1  ;;  %8298 = vrot.lane.b32.xlu2 %v8302_v17, %s8511_s30  ;;  %v5176_v12 = vpop.f32.mrf.mxu0 }
 0x776   : > { %8293 = vrot.lane.b32.xlu1 %v8292_v32, %s8504_s26  ;;  %7772 = vmatmul.msk.f32.vlgmr.msrb.gmra.mxu3 %vm1068_vm8, %v5413_v56  ;;  %v5182_v38 = vadd.f32 %v5176_v12, %v5075_v53 }
 0x777   : > { %7769 = vmatmul.msk.f32.gmra.mxu1 %vm1068_vm8, %v5414_v49 }
 0x77c   : > { %7771 = vmatmul.msk.f32.gmra.mxu2 %vm1068_vm8, %v5414_v49 }
 0x77d   : > { %5697 = vrot.lane.b32.xlu0 %v5399_v54, %s11021_s1  ;;  %5601 = vrot.lane.b32.xlu2 %v5399_v54, %s8511_s30  ;;  %v5283_v27 = vpop.f32.mrf.mxu0 }
 0x77e   : > { %5502 = vrot.lane.b32.xlu1 %v5397_v44, %s8504_s26  ;;  %7773 = vmatmul.msk.f32.gmra.mxu3 %vm1068_vm8, %v5414_v49  ;;  %v5289_v9 = vadd.f32 %v5283_v27, %v5182_v38  ;;  %v7799_v27 = vld [vmem:[%s10892_s10 + $0x48] sm:$0xff] }
 0x785   : > { %v5390_v59 = vpop.f32.mrf.mxu0 }
 0x786   : > { %8308 = vrot.lane.b32.xlu1 %v8307_v60, %s8510_s19  ;;  %v5396_v28 = vadd.f32 %v5390_v59, %v5289_v9 }
 0x788   : > { %v5400_v11 = vmax.f32 %v5396_v28, 0.0 }
 0x78a   : > { %v8317_v7 = vpack.i.bf16 %v5400_v11, %v5399_v54  ;;  %v8312_v58 = vpack.i.bf16 %v5400_v11, %v5397_v44 }
 0x78c   : > { %8318 = vrot.lane.b32.xlu0 %v8317_v7, %s10905_s0  ;;  %8313 = vrot.lane.b32.xlu2 %v8312_v58, %s8510_s19 }
 0x78e   : > { %5699 = vrot.lane.b32.xlu1 %v5400_v11, %s11021_s1 }
 0x794   : > { %8323 = vrot.lane.b32.xlu0 %v8302_v17, %s10903_s20  ;;  %5891 = vrot.lane.b32.xlu2 %v5398_v43, %s10905_s0 }
 0x796   : > { %8328 = vrot.lane.b32.xlu1 %v8302_v17, %s8514_s29 }
 0x79c   : > { %8333 = vrot.lane.b32.xlu0 %v8317_v7, %s10903_s20  ;;  %5889 = vrot.lane.b32.xlu2 %v5397_v44, %s10905_s0  ;;  %v7814_v7 = vld [vmem:[%s10892_s10 + $0x60] sm:$0xff] }
 0x79e   : > { %6089 = vrot.lane.b32.xlu1 %v5399_v54, %s8514_s29  ;;  %v7798_v54 = vld [vmem:[%s10892_s10 + $0x40] sm:$0xff] }
 0x7a4   : > { %6183 = vrot.lane.b32.xlu0 %v5397_v44, %s8515_s21  ;;  %8338 = vrot.lane.b32.xlu2 %v8307_v60, %s8515_s21 }
 0x7a6   : > { %6189 = vrot.lane.b32.xlu1 %v5400_v11, %s8515_s21 }
 0x7ac   : > { %5410 = vperm.xlu0 %7959, %v5402_v30   ;;  %6091 = vrot.lane.b32.xlu2 %v5400_v11, %s8514_s29 }
 0x7ae   : > { %5405 = vperm.xlu1 %7960, %v5401_v13  }
 0x7cf   : > { %v8299_v42 = vpop.permute.xlu2 %8298 }
 0x7d0   : > { %v8301_v16 = vunpack.i.h.bf16 %v8299_v42  ;;  %v8300_v22 = vunpack.i.l.bf16 %v8299_v42 }
 0x7d2   : > { %v5603_v6 = vsel %vm3529_vm10, %v8300_v22, %v8301_v16  ;;  %v7806_v22 = vld [vmem:[%s10892_s10 + $0x50] sm:$0xff] }
 0x7d3   : > { %5629 = vmatpush.msra.mxu3 %v5603_v6 }
 0x7d4   : > { %7784 = vmatmul.msk.f32.vlgmr.msra.gmra.mxu3 %vm1068_vm8, %v10453_v1 }
 0x7d7   : > { %v5602_v3 = vpop.permute.xlu2 %5601 }
 0x7d8   : > { %v5604_v26 = vsel %vm3529_vm10, %v8301_v16, %v5602_v3 }
 0x7dc   : > { %7785 = vmatmul.msk.f32.gmra.mxu3 %vm1068_vm8, %v10461_v36 }
 0x7e6   : > { %v8314_v50 = vpop.permute.xlu2 %8313 }
 0x7e7   : > { %v8304_v2 = vpop.permute.xlu0 %8303  ;;  %v8316_v47 = vunpack.i.h.bf16 %v8314_v50  ;;  %v8315_v8 = vunpack.i.l.bf16 %v8314_v50 }
 0x7e8   : > { %v8306_v52 = vunpack.i.h.bf16 %v8304_v2  ;;  %v8305_v34 = vunpack.i.l.bf16 %v8304_v2  ;;  %v8294_v40 = vpop.permute.xlu1 %8293  ;;  %v7807_v2 = vld [vmem:[%s10892_s10 + $0x58] sm:$0xff] }
 0x7e9   : > { %v8296_v62 = vunpack.i.h.bf16 %v8294_v40  ;;  %v8295_v45 = vunpack.i.l.bf16 %v8294_v40  ;;  %v7822_v40 = vld [vmem:[%s10892_s10 + $0x70] sm:$0xff] }
 0x7ea   : > { %v5701_v51 = vsel %vm903_vm5, %v8305_v34, %v8306_v52 }
 0x7eb   : > { %5580 = vmatpush.msra.mxu2 %v8295_v45  ;;  %v5509_v48 = vsel %vm673_vm1, %v8296_v62, %v8295_v45  ;;  %v7830_v45 = vld [vmem:[%s10892_s10 + $0x80] sm:$0xff] }
 0x7ec   : > { %5557 = vmatpush.msra.mxu1 %v5509_v48  ;;  %7780 = vmatmul.msk.f32.vlgmr.msra.gmra.mxu2 %vm1068_vm8, %v7774_v55  ;;  %v5438_v48 = vpop.f32.mrf.mxu1 }
 0x7ed   : > { %5728 = vmatpush.msrb.mxu2 %v5701_v51  ;;  %7778 = vmatmul.msk.f32.vlgmr.msra.gmra.mxu1 %vm1068_vm8, %v7774_v55 }
 0x7ee   : > { %5675 = vmatpush.msrb.mxu1 %v5602_v3  ;;  %v5892_v29 = vpop.permute.xlu2 %5891 }
 0x7ef   : > { %v5698_v0 = vpop.permute.xlu0 %5697 }
 0x7f0   : > { %v5702_v15 = vsel %vm903_vm5, %v8306_v52, %v5698_v0  ;;  %v5503_v63 = vpop.permute.xlu1 %5502 }
 0x7f1   : > { %v5508_v46 = vsel %vm673_vm1, %v5503_v63, %v8296_v62  ;;  %5751 = vmatpush.msrb.mxu3 %v5702_v15  ;;  %v7823_v62 = vld [vmem:[%s10892_s10 + $0x78] sm:$0xff] }
 0x7f2   : > { %5534 = vmatpush.msra.mxu0 %v5508_v46  ;;  %7794 = vmatmul.msk.f32.vlgmr.msrb.gmra.mxu3 %vm1068_vm8, %v10475_v37 }
 0x7f3   : > { %7776 = vmatmul.msk.f32.vlgmr.msra.gmra.mxu0 %vm1068_vm8, %v7774_v55  ;;  %v7831_v55 = vld [vmem:[%s10892_s10 + $0x88] sm:$0xff] }
 0x7f4   : > { %5652 = vmatpush.msrb.mxu0 %v5604_v26  ;;  %7781 = vmatmul.msk.f32.gmra.mxu2 %vm1068_vm8, %v7775_v24  ;;  %v5441_v15 = vpop.f32.mrf.mxu1 }
 0x7f5   : > { %7779 = vmatmul.msk.f32.gmra.mxu1 %vm1068_vm8, %v7775_v24 }
 0x7f6   : > { %v5890_v56 = vpop.permute.xlu2 %5889 }
 0x7f7   : > { %v5897_v17 = vsel %vm3926_vm11, %v5890_v56, %v5892_v29 }
 0x7f8   : > { %v8309_v33 = vpop.permute.xlu1 %8308 }
 0x7f9   : > { %v8311_v4 = vunpack.i.h.bf16 %v8309_v33  ;;  %v8310_v18 = vunpack.i.l.bf16 %v8309_v33  ;;  %v5484_v51 = vpop.f32.mrf.mxu3 }
 0x7fa   : > { %7795 = vmatmul.msk.f32.gmra.mxu3 %vm1068_vm8, %v10491_v39 }
 0x7fb   : > { %7777 = vmatmul.msk.f32.gmra.mxu0 %vm1068_vm8, %v7775_v24  ;;  %v5799_v44 = vsel %vm1025_vm7, %v8315_v8, %v8310_v18  ;;  %v5800_v14 = vsel %vm1025_vm7, %v8310_v18, %v8311_v4  ;;  %v5801_v20 = vsel %vm1025_vm7, %v8311_v4, %v8316_v47 }
 0x7fc   : > { %7792 = vmatmul.msk.f32.vlgmr.msrb.gmra.mxu2 %vm1068_vm8, %v10475_v37  ;;  %5826 = vmatpush.msra.mxu1 %v5799_v44 }
 0x7fd   : > { %5849 = vmatpush.msra.mxu2 %v5800_v14  ;;  %5872 = vmatpush.msra.mxu3 %v5801_v20 }
 0x7fe   : > { %7788 = vmatmul.msk.f32.vlgmr.msrb.gmra.mxu1 %vm1068_vm8, %v10453_v1  ;;  %v8319_v25 = vpop.permute.xlu0 %8318  ;;  %v8339_v58 = vpop.permute.xlu2 %8338 }
 0x7ff   : > { %v8321_v57 = vunpack.i.h.bf16 %v8319_v25  ;;  %v8320_v41 = vunpack.i.l.bf16 %v8319_v25  ;;  %v8341_v30 = vunpack.i.h.bf16 %v8339_v58  ;;  %v8340_v13 = vunpack.i.l.bf16 %v8339_v58 }
 0x800   : > { %v5700_v35 = vpop.permute.xlu1 %5699 }
 0x801   : > { %v5703_v21 = vsel %vm903_vm5, %v5698_v0, %v5700_v35  ;;  %v5898_v19 = vsel %vm3926_vm11, %v5892_v29, %v8320_v41  ;;  %v5899_v43 = vsel %vm3926_vm11, %v8320_v41, %v8321_v57  ;;  %v10588_v50 = vpop.f32.mrf.mxu3  ;;  %v5461_v0 = vpop.f32.mrf.mxu2 }
 0x802   : > { %5774 = vmatpush.msra.mxu0 %v5703_v21  ;;  %5947 = vmatpush.msrb.mxu1 %v5898_v19 }
 0x803   : > { %7786 = vmatmul.msk.f32.vlgmr.msrb.gmra.mxu0 %vm1068_vm8, %v10453_v1  ;;  %5970 = vmatpush.msrb.mxu2 %v5899_v43  ;;  %v7815_v1 = vld [vmem:[%s10892_s10 + $0x68] sm:$0xff] }
 0x804   : > { %5924 = vmatpush.msrb.mxu0 %v5897_v17  ;;  %7793 = vmatmul.msk.f32.gmra.mxu2 %vm1068_vm8, %v10491_v39 }
 0x805   : > { %7804 = vmatmul.msk.f32.vlgmr.msra.gmra.mxu3 %vm1068_vm8, %v7798_v54 }
 0x806   : > { %7789 = vmatmul.msk.f32.gmra.mxu1 %vm1068_vm8, %v10461_v36  ;;  %v8324_v32 = vpop.permute.xlu0 %8323  ;;  %v6092_v52 = vpop.permute.xlu2 %6091 }
 0x807   : > { %v8326_v12 = vunpack.i.h.bf16 %v8324_v32  ;;  %v8325_v10 = vunpack.i.l.bf16 %v8324_v32 }
 0x808   : > { %v8329_v49 = vpop.permute.xlu1 %8328 }
 0x809   : > { %v8331_v23 = vunpack.i.h.bf16 %v8329_v49  ;;  %v8330_v61 = vunpack.i.l.bf16 %v8329_v49  ;;  %v5995_v5 = vsel %vm1068_vm8, %v8325_v10, %v8326_v12  ;;  %v5464_v63 = vpop.f32.mrf.mxu2 }
 0x80a   : > { %6022 = vmatpush.msrb.mxu3 %v5995_v5 }
 0x80b   : > { %7787 = vmatmul.msk.f32.gmra.mxu0 %vm1068_vm8, %v10461_v36  ;;  %v6093_v31 = vsel %vm4191_vm12, %v8330_v61, %v8331_v23  ;;  %v6192_v36 = vsel %vm4324_vm13, %v8340_v13, %v8341_v30 }
 0x80c   : > { %7802 = vmatmul.msk.f32.vlgmr.msra.gmra.mxu2 %vm1068_vm8, %v7798_v54 }
 0x80d   : > { %6120 = vmatpush.msra.mxu2 %v6093_v31  ;;  %7805 = vmatmul.msk.f32.gmra.mxu3 %vm1068_vm8, %v7799_v27 }
 0x80e   : > { %7800 = vmatmul.msk.f32.vlgmr.msra.gmra.mxu1 %vm1068_vm8, %v7798_v54  ;;  %v8334_v53 = vpop.permute.xlu0 %8333 }
 0x80f   : > { %v8336_v38 = vunpack.i.h.bf16 %v8334_v53  ;;  %v8335_v9 = vunpack.i.l.bf16 %v8334_v53 }
 0x810   : > { %v6090_v60 = vpop.permute.xlu1 %6089 }
 0x811   : > { %v6094_v59 = vsel %vm4191_vm12, %v8331_v23, %v6090_v60  ;;  %v5996_v28 = vsel %vm1068_vm8, %v8326_v12, %v8335_v9  ;;  %v5997_v11 = vsel %vm1068_vm8, %v8335_v9, %v8336_v38  ;;  %v6095_v34 = vsel %vm4191_vm12, %v6090_v60, %v6092_v52 }
 0x812   : > { %6143 = vmatpush.msra.mxu3 %v6094_v59  ;;  %6068 = vmatpush.msra.mxu1 %v5997_v11 }
 0x813   : > { %7796 = vmatmul.msk.f32.vlgmr.msra.gmra.mxu0 %vm1068_vm8, %v10475_v37 }
 0x814   : > { %7803 = vmatmul.msk.f32.gmra.mxu2 %vm1068_vm8, %v7799_v27  ;;  %6045 = vmatpush.msra.mxu0 %v5996_v28 }
 0x815   : > { %7816 = vmatmul.msk.f32.vlgmr.msrb.gmra.mxu3 %vm1068_vm8, %v7814_v7 }
 0x816   : > { %7801 = vmatmul.msk.f32.gmra.mxu1 %vm1068_vm8, %v7799_v27  ;;  %v6184_v6 = vpop.permute.xlu0 %6183 }
 0x817   : > { %v6191_v3 = vsel %vm4324_vm13, %v6184_v6, %v8340_v13 }
 0x818   : > { %v6190_v42 = vpop.permute.xlu1 %6189 }
 0x819   : > { %v6193_v16 = vsel %vm4324_vm13, %v8341_v30, %v6190_v42 }
 0x81a   : > { %6264 = vmatpush.msrb.mxu3 %v6193_v16 }
 0x81b   : > { %7797 = vmatmul.msk.f32.gmra.mxu0 %vm1068_vm8, %v10491_v39 }
 0x81c   : > { %7812 = vmatmul.msk.f32.vlgmr.msrb.gmra.mxu2 %vm1068_vm8, %v7806_v22 }
 0x81d   : > { %6241 = vmatpush.msrb.mxu2 %v6192_v36  ;;  %7817 = vmatmul.msk.f32.gmra.mxu3 %vm1068_vm8, %v7815_v1 }
 0x81e   : > { %7810 = vmatmul.msk.f32.vlgmr.msrb.gmra.mxu1 %vm1068_vm8, %v7806_v22  ;;  %v5411_v28 = vpop.permute.xlu0 %5410 }
 0x81f   : > { %6218 = vmatpush.msrb.mxu1 %v6191_v3  ;;  %v5493_v58 = vadd.f32 %v5441_v15, %v5411_v28  ;;  %v5494_v6 = vadd.f32 %v5464_v63, %v5411_v28 }
 0x820   : > { %v5406_v5 = vpop.permute.xlu1 %5405 }
 0x821   : > { %v5490_v53 = vadd.f32 %v5438_v48, %v5406_v5  ;;  %v5491_v60 = vadd.f32 %v5461_v0, %v5406_v5  ;;  %v5492_v52 = vadd.f32 %v5484_v51, %v5406_v5 }
 0x823   : > { %7808 = vmatmul.msk.f32.vlgmr.msrb.gmra.mxu0 %vm1068_vm8, %v7806_v22 }
 0x824   : > { %6166 = vmatpush.msrb.mxu0 %v6095_v34  ;;  %7813 = vmatmul.msk.f32.gmra.mxu2 %vm1068_vm8, %v7807_v2 }
 0x825   : > { %7826 = vmatmul.msk.f32.vlgmr.msra.gmra.mxu3 %vm1068_vm8, %v7822_v40 }
 0x826   : > { %7811 = vmatmul.msk.f32.gmra.mxu1 %vm1068_vm8, %v7807_v2 }
 0x82b   : > { %7809 = vmatmul.msk.f32.gmra.mxu0 %vm1068_vm8, %v7807_v2 }
 0x82c   : > { %7824 = vmatmul.msk.f32.vlgmr.msra.gmra.mxu2 %vm1068_vm8, %v7822_v40 }
 0x82d   : > { %7827 = vmatmul.msk.f32.gmra.mxu3 %vm1068_vm8, %v7823_v62 }
 0x82e   : > { %7820 = vmatmul.msk.f32.vlgmr.msra.gmra.mxu1 %vm1068_vm8, %v7814_v7 }
 0x833   : > { %7818 = vmatmul.msk.f32.vlgmr.msra.gmra.mxu0 %vm1068_vm8, %v7814_v7 }
 0x834   : > { %7825 = vmatmul.msk.f32.gmra.mxu2 %vm1068_vm8, %v7823_v62 }
 0x835   : > { %7836 = vmatmul.msk.f32.vlgmr.msrb.gmra.mxu3 %vm1068_vm8, %v7830_v45 }
 0x836   : > { %7821 = vmatmul.msk.f32.gmra.mxu1 %vm1068_vm8, %v7815_v1 }
 0x83b   : > { %7819 = vmatmul.msk.f32.gmra.mxu0 %vm1068_vm8, %v7815_v1 }
 0x83c   : > { %7834 = vmatmul.msk.f32.vlgmr.msrb.gmra.mxu2 %vm1068_vm8, %v7830_v45 }
 0x83d   : > { %7837 = vmatmul.msk.f32.gmra.mxu3 %vm1068_vm8, %v7831_v55 }
 0x83e   : > { %7832 = vmatmul.msk.f32.vlgmr.msrb.gmra.mxu1 %vm1068_vm8, %v7830_v45 }
 0x843   : > { %7828 = vmatmul.msk.f32.vlgmr.msrb.gmra.mxu0 %vm1068_vm8, %v7822_v40 }
 0x844   : > { %7835 = vmatmul.msk.f32.gmra.mxu2 %vm1068_vm8, %v7831_v55 }
 0x846   : > { %7833 = vmatmul.msk.f32.gmra.mxu1 %vm1068_vm8, %v7831_v55 }
 0x84b   : > { %7829 = vmatmul.msk.f32.gmra.mxu0 %vm1068_vm8, %v7823_v62 }
 0x857   : > { %v5631_v37 = vpop.f32.mrf.mxu3 }
 0x85f   : > { %v5634_v24 = vpop.f32.mrf.mxu3 }
 0x86a   : > { %v5559_v46 = vpop.f32.mrf.mxu1 }
 0x86b   : > { %v5589_v11 = vadd.f32 %v5559_v46, %v5491_v60 }
 0x86f   : > { %v5582_v26 = vpop.f32.mrf.mxu2 }
 0x870   : > { %v5536_v29 = vpop.f32.mrf.mxu0  ;;  %v5590_v55 = vadd.f32 %v5582_v26, %v5492_v52  ;;  %v6284_v52 = vld [vmem:[%s10895_s13] sm:$0xff] }
 0x871   : > { %v5588_v59 = vadd.f32 %v5536_v29, %v5490_v53  ;;  %v5495_v29 = vadd.f32 %v10588_v50, %v5411_v28 }
 0x872   : > { %v5562_v39 = vpop.f32.mrf.mxu1 }
 0x873   : > { %v5683_v30 = vadd.f32 %v5631_v37, %v5588_v59  ;;  %v5592_v34 = vadd.f32 %v5562_v39, %v5494_v6 }
 0x875   : > { %v5753_v33 = vpop.f32.mrf.mxu3 }
 0x877   : > { %v5585_v47 = vpop.f32.mrf.mxu2 }
 0x878   : > { %v5539_v8 = vpop.f32.mrf.mxu0 }
 0x879   : > { %v5591_v16 = vadd.f32 %v5539_v8, %v5493_v58 }
 0x87b   : > { %v5677_v4 = vpop.f32.mrf.mxu1  ;;  %v5686_v40 = vadd.f32 %v5634_v24, %v5591_v16 }
 0x87c   : > { %v5685_v8 = vadd.f32 %v5677_v4, %v5590_v55 }
 0x87d   : > { %v5756_v18 = vpop.f32.mrf.mxu3 }
 0x87f   : > { %v5730_v44 = vpop.f32.mrf.mxu2 }
 0x880   : > { %v5654_v14 = vpop.f32.mrf.mxu0  ;;  %v5782_v22 = vadd.f32 %v5730_v44, %v5683_v30 }
 0x881   : > { %v5684_v13 = vadd.f32 %v5654_v14, %v5589_v11 }
 0x883   : > { %v5680_v20 = vpop.f32.mrf.mxu1  ;;  %v5783_v36 = vadd.f32 %v5753_v33, %v5684_v13  ;;  %v5593_v33 = vadd.f32 %v5585_v47, %v5495_v29 }
 0x887   : > { %v5733_v25 = vpop.f32.mrf.mxu2 }
 0x888   : > { %v5657_v57 = vpop.f32.mrf.mxu0  ;;  %v10590_v41 = vpop.f32.mrf.mxu3  ;;  %v5785_v0 = vadd.f32 %v5733_v25, %v5686_v40 }
 0x889   : > { %v5687_v46 = vadd.f32 %v5657_v57, %v5592_v34 }
 0x88b   : > { %v5828_v56 = vpop.f32.mrf.mxu1  ;;  %v5786_v51 = vadd.f32 %v5756_v18, %v5687_v46 }
 0x88c   : > { %v5880_v3 = vadd.f32 %v5828_v56, %v5782_v22 }
 0x88f   : > { %v5851_v35 = vpop.f32.mrf.mxu2 }
 0x890   : > { %v5776_v21 = vpop.f32.mrf.mxu0  ;;  %v10592_v19 = vpop.f32.mrf.mxu3  ;;  %v5881_v62 = vadd.f32 %v5851_v35, %v5783_v36  ;;  %v5688_v35 = vadd.f32 %v5680_v20, %v5593_v33 }
 0x891   : > { %v5784_v56 = vadd.f32 %v5776_v21, %v5685_v8 }
 0x893   : > { %v5831_v43 = vpop.f32.mrf.mxu1  ;;  %v5882_v57 = vadd.f32 %v10590_v41, %v5784_v56 }
 0x894   : > { %v5883_v44 = vadd.f32 %v5831_v43, %v5785_v0 }
 0x897   : > { %v5854_v54 = vpop.f32.mrf.mxu2 }
 0x898   : > { %v5779_v17 = vpop.f32.mrf.mxu0  ;;  %v6024_v32 = vpop.f32.mrf.mxu3 }
 0x89b   : > { %v5949_v12 = vpop.f32.mrf.mxu1 }
 0x89c   : > { %v5979_v15 = vadd.f32 %v5949_v12, %v5881_v62  ;;  %v5787_v12 = vadd.f32 %v5779_v17, %v5688_v35 }
 0x89f   : > { %v5972_v10 = vpop.f32.mrf.mxu2 }
 0x8a0   : > { %v5926_v49 = vpop.f32.mrf.mxu0  ;;  %v6027_v23 = vpop.f32.mrf.mxu3  ;;  %v5980_v59 = vadd.f32 %v5972_v10, %v5882_v57 }
 0x8a1   : > { %v5978_v45 = vadd.f32 %v5926_v49, %v5880_v3  ;;  %v5884_v49 = vadd.f32 %v5854_v54, %v5786_v51  ;;  %v6297_v3 = vld [vmem:[%s10894_s12 + $0x8] sm:$0x3] }
 0x8a3   : > { %v5952_v61 = vpop.f32.mrf.mxu1  ;;  %v6076_v14 = vadd.f32 %v6024_v32, %v5978_v45 }
 0x8a4   : > { %v5982_v50 = vadd.f32 %v5952_v61, %v5884_v49 }
 0x8a7   : > { %v10594_v27 = vpop.f32.mrf.mxu2 }
 0x8a8   : > { %v5929_v31 = vpop.f32.mrf.mxu0  ;;  %v6145_v38 = vpop.f32.mrf.mxu3 }
 0x8a9   : > { %v5981_v39 = vadd.f32 %v5929_v31, %v5883_v44  ;;  %v5885_v31 = vadd.f32 %v10592_v19, %v5787_v12  ;;  %v6296_v19 = vld [vmem:[%s10894_s12] sm:$0xff] }
 0x8ab   : > { %v6070_v9 = vpop.f32.mrf.mxu1  ;;  %v6079_v4 = vadd.f32 %v6027_v23, %v5981_v39 }
 0x8ac   : > { %v6078_v20 = vadd.f32 %v6070_v9, %v5980_v59 }
 0x8af   : > { %v6122_v7 = vpop.f32.mrf.mxu2 }
 0x8b0   : > { %v6047_v42 = vpop.f32.mrf.mxu0  ;;  %v6148_v2 = vpop.f32.mrf.mxu3  ;;  %v6174_v24 = vadd.f32 %v6122_v7, %v6076_v14  ;;  %v5983_v7 = vadd.f32 %v10594_v27, %v5885_v31  ;;  %v7854_v31 = vld [vmem:[%s10894_s12 + $0x30] sm:$0xff] }
 0x8b1   : > { %v6077_v63 = vadd.f32 %v6047_v42, %v5979_v15 }
 0x8b3   : > { %v6073_v1 = vpop.f32.mrf.mxu1  ;;  %v6175_v26 = vadd.f32 %v6145_v38, %v6077_v63 }
 0x8b4   : > { %v6081_v23 = vadd.f32 %v6073_v1, %v5983_v7 }
 0x8b7   : > { %v6125_v48 = vpop.f32.mrf.mxu2 }
 0x8b8   : > { %v6050_v37 = vpop.f32.mrf.mxu0  ;;  %v6266_v25 = vpop.f32.mrf.mxu3  ;;  %v6177_v47 = vadd.f32 %v6125_v48, %v6079_v4 }
 0x8b9   : > { %v6080_v21 = vadd.f32 %v6050_v37, %v5982_v50  ;;  %v7842_v37 = vld [vmem:[%s10894_s12 + $0x10] sm:$0xff] }
 0x8bb   : > { %v6220_v53 = vpop.f32.mrf.mxu1  ;;  %v6178_v17 = vadd.f32 %v6148_v2, %v6080_v21  ;;  %v6285_v2 = vld [vmem:[%s10895_s13 + $0x8] sm:$0x3] }
 0x8bc   : > { %v6272_v5 = vadd.f32 %v6220_v53, %v6174_v24  ;;  %v7843_v53 = vld [vmem:[%s10894_s12 + $0x18] sm:$0x3] }
 0x8be   : > { %v6278_v28 = vmax.f32 %v6272_v5, 0.0 }
 0x8bf   : > { %v6243_v60 = vpop.f32.mrf.mxu2 }
 0x8c0   : > { %v6273_v43 = vadd.f32 %v6243_v60, %v6175_v26  ;;  %v6168_v32 = vpop.f32.mrf.mxu0  ;;  %v6269_v13 = vpop.f32.mrf.mxu3 }
 0x8c1   : > { %v6176_v41 = vadd.f32 %v6168_v32, %v6078_v20 }
 0x8c2   : > { %v6279_v18 = vmax.f32 %v6273_v43, 0.0 }
 0x8c3   : > { %v6223_v54 = vpop.f32.mrf.mxu1  ;;  %v6274_v9 = vadd.f32 %v6266_v25, %v6176_v41  ;;  %v7848_v25 = vld [vmem:[%s10894_s12 + $0x20] sm:$0xff] }
 0x8c4   : > { %v6275_v38 = vadd.f32 %v6223_v54, %v6177_v47  ;;  %v8347_v11 = vpack.i.bf16 %v6279_v18, %v6278_v28 }
 0x8c5   : > { %v6280_v6 = vmax.f32 %v6274_v9, 0.0  ;;  %v7855_v9 = vld [vmem:[%s10894_s12 + $0x38] sm:$0x3] }
 0x8c6   : > { %v6281_v58 = vmax.f32 %v6275_v38, 0.0  ;;  %8348 = vrot.lane.b32.xlu0 %v8347_v11, %s8504_s26  ;;  %v7849_v38 = vld [vmem:[%s10894_s12 + $0x28] sm:$0x3] }
 0x8c7   : > { %v6246_v61 = vpop.f32.mrf.mxu2 }
 0x8c8   : > { %v6276_v10 = vadd.f32 %v6246_v61, %v6178_v17  ;;  %6318 = vmatpush.msra.mxu0 %v6281_v58  ;;  %v6171_v30 = vpop.f32.mrf.mxu0 }
 0x8c9   : > { %v6179_v42 = vadd.f32 %v6171_v30, %v6081_v23 }
 0x8ca   : > { %v6282_v16 = vmax.f32 %v6276_v10, 0.0  ;;  %6319 = vmatpush.msra.mxu0 %v6278_v28 }
 0x8cb   : > { %v6277_v27 = vadd.f32 %v6269_v13, %v6179_v42  ;;  %7838 = vmatmul.msk.f32.vlgmr.msra.gmra.mxu0 %vm3160_vm9, %v6296_v19 }
 0x8cc   : > { %6341 = vmatpush.msra.mxu1 %v6282_v16  ;;  %v8412_v22 = vpack.i.bf16 %v6282_v16, %v6281_v58 }
 0x8cd   : > { %v6283_v1 = vmax.f32 %v6277_v27, 0.0  ;;  %v7860_v27 = vld [vmem:[%s10894_s12 + $0x40] sm:$0xff] }
 0x8ce   : > { %6342 = vmatpush.msra.mxu1 %v6279_v18  ;;  %8413 = vrot.lane.b32.xlu0 %v8412_v22, %s11021_s1 }
 0x8cf   : > { %8353 = vrot.lane.b32.xlu1 %v8412_v22, %s8511_s30  ;;  %8343 = vrot.lane.b32.xlu2 %v8412_v22, %s8504_s26  ;;  %v8367_v36 = vpack.i.bf16 %v6280_v6, %v6283_v1 }
 0x8d0   : > { %7840 = vmatmul.msk.f32.vlgmr.msra.gmra.mxu1 %vm3160_vm9, %v6296_v19 }
 0x8d3   : > { %7839 = vmatmul.msk.f32.gmra.mxu0 %vm3160_vm9, %v6297_v3 }
 0x8d6   : > { %8418 = vrot.lane.b32.xlu0 %v8412_v22, %s8510_s19 }
 0x8d7   : > { %8363 = vrot.lane.b32.xlu1 %v8347_v11, %s11021_s1  ;;  %8358 = vrot.lane.b32.xlu2 %v8347_v11, %s8511_s30 }
 0x8d8   : > { %7841 = vmatmul.msk.f32.gmra.mxu1 %vm3160_vm9, %v6297_v3 }
 0x8de   : > { %8423 = vrot.lane.b32.xlu0 %v8412_v22, %s11022_s18 }
 0x8df   : > { %8373 = vrot.lane.b32.xlu1 %v8347_v11, %s8510_s19  ;;  %8368 = vrot.lane.b32.xlu2 %v8367_v36, %s11021_s1 }
 0x8e6   : > { %8428 = vrot.lane.b32.xlu0 %v8412_v22, %s11023_s22 }
 0x8e7   : > { %8383 = vrot.lane.b32.xlu1 %v8347_v11, %s11022_s18  ;;  %8378 = vrot.lane.b32.xlu2 %v8367_v36, %s8510_s19 }
 0x8ee   : > { %8433 = vrot.lane.b32.xlu0 %v8412_v22, %s8514_s29 }
 0x8ef   : > { %8393 = vrot.lane.b32.xlu1 %v8347_v11, %s11023_s22  ;;  %8388 = vrot.lane.b32.xlu2 %v8367_v36, %s11022_s18 }
 0x8f6   : > { %8438 = vrot.lane.b32.xlu0 %v8412_v22, %s8515_s21 }
 0x8f7   : > { %8403 = vrot.lane.b32.xlu1 %v8347_v11, %s8514_s29  ;;  %8398 = vrot.lane.b32.xlu2 %v8367_v36, %s11023_s22 }
 0x8fe   : > { %6293 = vperm.xlu0 %7959, %v6285_v2  }
 0x8ff   : > { %8443 = vrot.lane.b32.xlu1 %v8347_v11, %s8515_s21  ;;  %8408 = vrot.lane.b32.xlu2 %v8367_v36, %s8514_s29 }
 0x907   : > { %6288 = vperm.xlu1 %7960, %v6284_v52   ;;  %8448 = vrot.lane.b32.xlu2 %v8367_v36, %s8515_s21 }
 0x929   : > { %v8344_v34 = vpop.permute.xlu2 %8343 }
 0x92a   : > { %v8346_v40 = vunpack.i.h.bf16 %v8344_v34  ;;  %v8345_v62 = vunpack.i.l.bf16 %v8344_v34 }
 0x92c   : > { %6418 = vmatpush.msra.mxu3 %v8346_v40  ;;  %v6370_v45 = vsel %vm673_vm1, %v8345_v62, %v8346_v40 }
 0x92d   : > { %6395 = vmatpush.msra.mxu2 %v6370_v45  ;;  %v7866_v45 = vld [vmem:[%s10894_s12 + $0x50] sm:$0xff] }
 0x931   : > { %v8359_v55 = vpop.permute.xlu2 %8358 }
 0x932   : > { %v8361_v51 = vunpack.i.h.bf16 %v8359_v55  ;;  %v8360_v39 = vunpack.i.l.bf16 %v8359_v55 }
 0x934   : > { %v6442_v57 = vsel %vm3529_vm10, %v8360_v39, %v8361_v51 }
 0x938   : > { %v8349_v48 = vpop.permute.xlu0 %8348 }
 0x939   : > { %v8351_v0 = vunpack.i.h.bf16 %v8349_v48  ;;  %v8350_v46 = vunpack.i.l.bf16 %v8349_v48  ;;  %v8369_v15 = vpop.permute.xlu2 %8368 }
 0x93a   : > { %v8370_v44 = vunpack.i.l.bf16 %v8369_v15  ;;  %v8371_v59 = vunpack.i.h.bf16 %v8369_v15 }
 0x93b   : > { %6419 = vmatpush.msra.mxu3 %v8351_v0  ;;  %v6369_v29 = vsel %vm673_vm1, %v8350_v46, %v8351_v0  ;;  %v7861_v46 = vld [vmem:[%s10894_s12 + $0x48] sm:$0x3]  ;;  %vm7417_vm1 = vcmask 1016832  }
 0x93c   : > { %6396 = vmatpush.msra.mxu2 %v6369_v29  ;;  %7846 = vmatmul.msk.f32.vlgmr.msra.gmra.mxu3 %vm3160_vm9, %v7842_v37 }
 0x93d   : > { %7844 = vmatmul.msk.f32.vlgmr.msra.gmra.mxu2 %vm3160_vm9, %v7842_v37 }
 0x940   : > { %v8414_v8 = vpop.permute.xlu0 %8413 }
 0x941   : > { %v8416_v14 = vunpack.i.h.bf16 %v8414_v8  ;;  %v8415_v63 = vunpack.i.l.bf16 %v8414_v8  ;;  %v8354_v33 = vpop.permute.xlu1 %8353  ;;  %v8379_v56 = vpop.permute.xlu2 %8378 }
 0x942   : > { %v8356_v24 = vunpack.i.h.bf16 %v8354_v33  ;;  %v8355_v35 = vunpack.i.l.bf16 %v8354_v33  ;;  %v8380_v60 = vunpack.i.l.bf16 %v8379_v56  ;;  %v8381_v23 = vunpack.i.h.bf16 %v8379_v56 }
 0x943   : > { %v6523_v49 = vsel %vm903_vm5, %v8415_v63, %v8416_v14  ;;  %v6524_v26 = vsel %vm903_vm5, %v8416_v14, %v8370_v44 }
 0x944   : > { %6491 = vmatpush.msrb.mxu1 %v8356_v24  ;;  %7847 = vmatmul.msk.f32.gmra.mxu3 %vm3160_vm9, %v7843_v53  ;;  %v6443_v5 = vsel %vm3529_vm10, %v8355_v35, %v8356_v24  ;;  %v7872_v35 = vld [vmem:[%s10894_s12 + $0x60] sm:$0xff] }
 0x945   : > { %6468 = vmatpush.msrb.mxu0 %v6443_v5  ;;  %6549 = vmatpush.msrb.mxu2 %v6523_v49 }
 0x946   : > { %6572 = vmatpush.msrb.mxu3 %v6524_v26  ;;  %7845 = vmatmul.msk.f32.gmra.mxu2 %vm3160_vm9, %v7843_v53 }
 0x947   : > { %6492 = vmatpush.msrb.mxu1 %v8361_v51  ;;  %6469 = vmatpush.msrb.mxu0 %v6442_v57  ;;  %v7867_v51 = vld [vmem:[%s10894_s12 + $0x58] sm:$0x3] }
 0x948   : > { %7852 = vmatmul.msk.f32.vlgmr.msrb.gmra.mxu1 %vm3160_vm9, %v7848_v25  ;;  %7850 = vmatmul.msk.f32.vlgmr.msrb.gmra.mxu0 %vm3160_vm9, %v7848_v25  ;;  %v8419_v12 = vpop.permute.xlu0 %8418 }
 0x949   : > { %v8421_v50 = vunpack.i.h.bf16 %v8419_v12  ;;  %v8420_v4 = vunpack.i.l.bf16 %v8419_v12  ;;  %v8364_v43 = vpop.permute.xlu1 %8363  ;;  %v8389_v32 = vpop.permute.xlu2 %8388 }
 0x94a   : > { %v8366_v47 = vunpack.i.h.bf16 %v8364_v43  ;;  %v8365_v21 = vunpack.i.l.bf16 %v8364_v43  ;;  %v8390_v7 = vunpack.i.l.bf16 %v8389_v32  ;;  %v8391_v2 = vunpack.i.h.bf16 %v8389_v32 }
 0x94b   : > { %v6602_v28 = vsel %vm1025_vm7, %v8420_v4, %v8421_v50  ;;  %v6603_v18 = vsel %vm1025_vm7, %v8421_v50, %v8380_v60 }
 0x94c   : > { %v6521_v20 = vsel %vm903_vm5, %v8365_v21, %v8366_v47  ;;  %v6522_v54 = vsel %vm903_vm5, %v8366_v47, %v8371_v59  ;;  %6628 = vmatpush.msra.mxu0 %v6602_v28  ;;  %6651 = vmatpush.msra.mxu1 %v6603_v18  ;;  %v7878_v59 = vld [vmem:[%s10894_s12 + $0x70] sm:$0xff]  ;;  %v7873_v28 = vld [vmem:[%s10894_s12 + $0x68] sm:$0x3] }
 0x94d   : > { %6550 = vmatpush.msrb.mxu2 %v6521_v20  ;;  %6573 = vmatpush.msrb.mxu3 %v6522_v54 }
 0x94e   : > { %7856 = vmatmul.msk.f32.vlgmr.msrb.gmra.mxu2 %vm3160_vm9, %v7854_v31  ;;  %7858 = vmatmul.msk.f32.vlgmr.msrb.gmra.mxu3 %vm3160_vm9, %v7854_v31 }
 0x950   : > { %7853 = vmatmul.msk.f32.gmra.mxu1 %vm3160_vm9, %v7849_v38  ;;  %7851 = vmatmul.msk.f32.gmra.mxu0 %vm3160_vm9, %v7849_v38  ;;  %v8424_v11 = vpop.permute.xlu0 %8423  ;;  %v7879_v38 = vld [vmem:[%s10894_s12 + $0x78] sm:$0x3] }
 0x951   : > { %v8426_v41 = vunpack.i.h.bf16 %v8424_v11  ;;  %v8425_v17 = vunpack.i.l.bf16 %v8424_v11  ;;  %v8374_v58 = vpop.permute.xlu1 %8373  ;;  %v8399_v30 = vpop.permute.xlu2 %8398 }
 0x952   : > { %v8376_v61 = vunpack.i.h.bf16 %v8374_v58  ;;  %v8375_v10 = vunpack.i.l.bf16 %v8374_v58  ;;  %v8400_v6 = vunpack.i.l.bf16 %v8399_v30  ;;  %v8401_v14 = vunpack.i.h.bf16 %v8399_v30  ;;  %v6344_v58 = vpop.f32.mrf.mxu1 }
 0x953   : > { %v6681_v13 = vsel %vm3926_vm11, %v8425_v17, %v8426_v41  ;;  %v6682_v19 = vsel %vm3926_vm11, %v8426_v41, %v8390_v7  ;;  %v7884_v41 = vld [vmem:[%s10894_s12 + $0x80] sm:$0xff]  ;;  %v7885_v17 = vld [vmem:[%s10894_s12 + $0x88] sm:$0x3] }
 0x954   : > { %v6600_v42 = vsel %vm1025_vm7, %v8375_v10, %v8376_v61  ;;  %v6601_v16 = vsel %vm1025_vm7, %v8376_v61, %v8381_v23  ;;  %6707 = vmatpush.msra.mxu2 %v6681_v13  ;;  %6730 = vmatpush.msra.mxu3 %v6682_v19  ;;  %v6321_v23 = vpop.f32.mrf.mxu0 }
 0x955   : > { %6629 = vmatpush.msra.mxu0 %v6600_v42  ;;  %6652 = vmatpush.msra.mxu1 %v6601_v16 }
 0x956   : > { %7857 = vmatmul.msk.f32.gmra.mxu2 %vm3160_vm9, %v7855_v9  ;;  %7859 = vmatmul.msk.f32.gmra.mxu3 %vm3160_vm9, %v7855_v9 }
 0x958   : > { %7864 = vmatmul.msk.f32.vlgmr.msra.gmra.mxu1 %vm3160_vm9, %v7860_v27  ;;  %7862 = vmatmul.msk.f32.vlgmr.msra.gmra.mxu0 %vm3160_vm9, %v7860_v27  ;;  %v8429_v22 = vpop.permute.xlu0 %8428 }
 0x959   : > { %v8431_v1 = vunpack.i.h.bf16 %v8429_v22  ;;  %v8430_v36 = vunpack.i.l.bf16 %v8429_v22  ;;  %v8384_v3 = vpop.permute.xlu1 %8383  ;;  %v8409_v55 = vpop.permute.xlu2 %8408 }
 0x95a   : > { %v8386_v52 = vunpack.i.h.bf16 %v8384_v3  ;;  %v8385_v34 = vunpack.i.l.bf16 %v8384_v3  ;;  %v8410_v37 = vunpack.i.l.bf16 %v8409_v55  ;;  %v8411_v60 = vunpack.i.h.bf16 %v8409_v55  ;;  %v6347_v61 = vpop.f32.mrf.mxu1 }
 0x95b   : > { %v6760_v40 = vsel %vm1068_vm8, %v8430_v36, %v8431_v1  ;;  %v6761_v62 = vsel %vm1068_vm8, %v8431_v1, %v8400_v6 }
 0x95c   : > { %v6679_v48 = vsel %vm3926_vm11, %v8385_v34, %v8386_v52  ;;  %v6680_v0 = vsel %vm3926_vm11, %v8386_v52, %v8391_v2  ;;  %6786 = vmatpush.msrb.mxu0 %v6760_v40  ;;  %6809 = vmatpush.msrb.mxu1 %v6761_v62  ;;  %v6324_v10 = vpop.f32.mrf.mxu0 }
 0x95d   : > { %6708 = vmatpush.msra.mxu2 %v6679_v48  ;;  %6731 = vmatpush.msra.mxu3 %v6680_v0 }
 0x95e   : > { %7868 = vmatmul.msk.f32.vlgmr.msra.gmra.mxu2 %vm3160_vm9, %v7866_v45  ;;  %7870 = vmatmul.msk.f32.vlgmr.msra.gmra.mxu3 %vm3160_vm9, %v7866_v45 }
 0x960   : > { %7865 = vmatmul.msk.f32.gmra.mxu1 %vm3160_vm9, %v7861_v46  ;;  %7863 = vmatmul.msk.f32.gmra.mxu0 %vm3160_vm9, %v7861_v46  ;;  %v8434_v15 = vpop.permute.xlu0 %8433 }
 0x961   : > { %v8436_v29 = vunpack.i.h.bf16 %v8434_v15  ;;  %v8435_v8 = vunpack.i.l.bf16 %v8434_v15  ;;  %v8394_v44 = vpop.permute.xlu1 %8393  ;;  %v8449_v49 = vpop.permute.xlu2 %8448 }
 0x962   : > { %v8396_v63 = vunpack.i.h.bf16 %v8394_v44  ;;  %v8395_v33 = vunpack.i.l.bf16 %v8394_v44  ;;  %v8450_v5 = vunpack.i.l.bf16 %v8449_v49  ;;  %v8451_v31 = vunpack.i.h.bf16 %v8449_v49 }
 0x963   : > { %v6839_v56 = vsel %vm4191_vm12, %v8435_v8, %v8436_v29  ;;  %v6840_v53 = vsel %vm4191_vm12, %v8436_v29, %v8410_v37 }
 0x964   : > { %v6758_v39 = vsel %vm1068_vm8, %v8395_v33, %v8396_v63  ;;  %v6759_v24 = vsel %vm1068_vm8, %v8396_v63, %v8401_v14  ;;  %6865 = vmatpush.msrb.mxu2 %v6839_v56  ;;  %6888 = vmatpush.msrb.mxu3 %v6840_v53 }
 0x965   : > { %6787 = vmatpush.msrb.mxu0 %v6758_v39  ;;  %6810 = vmatpush.msrb.mxu1 %v6759_v24 }
 0x966   : > { %7869 = vmatmul.msk.f32.gmra.mxu2 %vm3160_vm9, %v7867_v51  ;;  %7871 = vmatmul.msk.f32.gmra.mxu3 %vm3160_vm9, %v7867_v51 }
 0x968   : > { %7876 = vmatmul.msk.f32.vlgmr.msrb.gmra.mxu1 %vm3160_vm9, %v7872_v35  ;;  %7874 = vmatmul.msk.f32.vlgmr.msrb.gmra.mxu0 %vm3160_vm9, %v7872_v35  ;;  %v8439_v26 = vpop.permute.xlu0 %8438 }
 0x969   : > { %v8441_v25 = vunpack.i.h.bf16 %v8439_v26  ;;  %v8440_v57 = vunpack.i.l.bf16 %v8439_v26  ;;  %v8404_v12 = vpop.permute.xlu1 %8403 }
 0x96a   : > { %v8406_v50 = vunpack.i.h.bf16 %v8404_v12  ;;  %v8405_v4 = vunpack.i.l.bf16 %v8404_v12 }
 0x96b   : > { %v6918_v43 = vsel %vm4324_vm13, %v8440_v57, %v8441_v25  ;;  %v6919_v32 = vsel %vm4324_vm13, %v8441_v25, %v8450_v5 }
 0x96c   : > { %v6837_v47 = vsel %vm4191_vm12, %v8405_v4, %v8406_v50  ;;  %v6838_v21 = vsel %vm4191_vm12, %v8406_v50, %v8411_v60  ;;  %6944 = vmatpush.msra.mxu0 %v6918_v43  ;;  %6967 = vmatpush.msra.mxu1 %v6919_v32 }
 0x96d   : > { %6866 = vmatpush.msrb.mxu2 %v6837_v47  ;;  %6889 = vmatpush.msrb.mxu3 %v6838_v21 }
 0x96e   : > { %7880 = vmatmul.msk.f32.vlgmr.msrb.gmra.mxu2 %vm3160_vm9, %v7878_v59  ;;  %7882 = vmatmul.msk.f32.vlgmr.msrb.gmra.mxu3 %vm3160_vm9, %v7878_v59 }
 0x970   : > { %7877 = vmatmul.msk.f32.gmra.mxu1 %vm3160_vm9, %v7873_v28  ;;  %7875 = vmatmul.msk.f32.gmra.mxu0 %vm3160_vm9, %v7873_v28  ;;  %v6294_v46 = vpop.permute.xlu0 %6293 }
 0x971   : > { %v8444_v18 = vpop.permute.xlu1 %8443  ;;  %v6353_v14 = vadd.f32 %v6347_v61, %v6294_v46  ;;  %v6352_v25 = vadd.f32 %v6324_v10, %v6294_v46 }
 0x972   : > { %v8446_v20 = vunpack.i.h.bf16 %v8444_v18  ;;  %v8445_v54 = vunpack.i.l.bf16 %v8444_v18 }
 0x974   : > { %v6916_v11 = vsel %vm4324_vm13, %v8445_v54, %v8446_v20  ;;  %v6917_v7 = vsel %vm4324_vm13, %v8446_v20, %v8451_v31 }
 0x975   : > { %6945 = vmatpush.msra.mxu0 %v6916_v11  ;;  %6968 = vmatpush.msra.mxu1 %v6917_v7 }
 0x976   : > { %7881 = vmatmul.msk.f32.gmra.mxu2 %vm3160_vm9, %v7879_v38  ;;  %7883 = vmatmul.msk.f32.gmra.mxu3 %vm3160_vm9, %v7879_v38 }
 0x978   : > { %7888 = vmatmul.msk.f32.vlgmr.msra.gmra.mxu1 %vm3160_vm9, %v7884_v41  ;;  %7886 = vmatmul.msk.f32.vlgmr.msra.gmra.mxu0 %vm3160_vm9, %v7884_v41 }
 0x979   : > { %v6289_v34 = vpop.permute.xlu1 %6288 }
 0x97a   : > { %v6351_v45 = vadd.f32 %v6344_v58, %v6289_v34  ;;  %v6350_v8 = vadd.f32 %v6321_v23, %v6289_v34  ;;  %v6984_v34 = vld [vmem:[%s10897_s15] sm:$0xff] }
 0x980   : > { %7889 = vmatmul.msk.f32.gmra.mxu1 %vm3160_vm9, %v7885_v17  ;;  %7887 = vmatmul.msk.f32.gmra.mxu0 %vm3160_vm9, %v7885_v17 }
 0x9bf   : > { %v6421_v30 = vpop.f32.mrf.mxu3 }
 0x9c0   : > { %v6398_v13 = vpop.f32.mrf.mxu2  ;;  %v6428_v0 = vadd.f32 %v6421_v30, %v6351_v45 }
 0x9c1   : > { %v6427_v63 = vadd.f32 %v6398_v13, %v6350_v8 }
 0x9c5   : > { %v6494_v19 = vpop.f32.mrf.mxu1  ;;  %v6471_v9 = vpop.f32.mrf.mxu0 }
 0x9c6   : > { %v6501_v15 = vadd.f32 %v6494_v19, %v6428_v0  ;;  %v6500_v53 = vadd.f32 %v6471_v9, %v6427_v63  ;;  %v7893_v0 = vld [vmem:[%s10896_s14 + $0x10] sm:$0xff] }
 0x9c7   : > { %v6424_v42 = vpop.f32.mrf.mxu3 }
 0x9c8   : > { %v6430_v51 = vadd.f32 %v6424_v42, %v6353_v14 }
 0x9c9   : > { %v6401_v16 = vpop.f32.mrf.mxu2 }
 0x9ca   : > { %v6429_v60 = vadd.f32 %v6401_v16, %v6352_v25 }
 0x9cd   : > { %v6497_v27 = vpop.f32.mrf.mxu1  ;;  %v6474_v22 = vpop.f32.mrf.mxu0 }
 0x9ce   : > { %v6503_v24 = vadd.f32 %v6497_v27, %v6430_v51  ;;  %v6502_v59 = vadd.f32 %v6474_v22, %v6429_v60  ;;  %v7908_v51 = vld [vmem:[%s10896_s14 + $0x40] sm:$0xff] }
 0x9d1   : > { %v6552_v6 = vpop.f32.mrf.mxu2  ;;  %v6575_v1 = vpop.f32.mrf.mxu3 }
 0x9d2   : > { %v6582_v44 = vadd.f32 %v6575_v1, %v6501_v15  ;;  %v6581_v35 = vadd.f32 %v6552_v6, %v6500_v53 }
 0x9d5   : > { %v6654_v36 = vpop.f32.mrf.mxu1  ;;  %v6631_v3 = vpop.f32.mrf.mxu0 }
 0x9d6   : > { %v6661_v39 = vadd.f32 %v6654_v36, %v6582_v44  ;;  %v6660_v57 = vadd.f32 %v6631_v3, %v6581_v35  ;;  %v6996_v3 = vld [vmem:[%s10896_s14] sm:$0xff] }
 0x9d9   : > { %v6555_v2 = vpop.f32.mrf.mxu2  ;;  %v6578_v52 = vpop.f32.mrf.mxu3 }
 0x9da   : > { %v6584_v12 = vadd.f32 %v6578_v52, %v6503_v24  ;;  %v6583_v18 = vadd.f32 %v6555_v2, %v6502_v59  ;;  %v6997_v2 = vld [vmem:[%s10896_s14 + $0x8] sm:$0x3] }
 0x9db   : > { %v6985_v52 = vld [vmem:[%s10897_s15 + $0x8] sm:$0x3] }
 0x9dd   : > { %v6657_v40 = vpop.f32.mrf.mxu1  ;;  %v6634_v62 = vpop.f32.mrf.mxu0 }
 0x9de   : > { %v6663_v47 = vadd.f32 %v6657_v40, %v6584_v12  ;;  %v6662_v11 = vadd.f32 %v6634_v62, %v6583_v18 }
 0x9e1   : > { %v6710_v55 = vpop.f32.mrf.mxu2  ;;  %v6733_v48 = vpop.f32.mrf.mxu3 }
 0x9e2   : > { %v6740_v49 = vadd.f32 %v6733_v48, %v6661_v39  ;;  %v6739_v50 = vadd.f32 %v6710_v55, %v6660_v57 }
 0x9e5   : > { %v6812_v37 = vpop.f32.mrf.mxu1  ;;  %v6789_v29 = vpop.f32.mrf.mxu0 }
 0x9e6   : > { %v6819_v4 = vadd.f32 %v6812_v37, %v6740_v49  ;;  %v6818_v21 = vadd.f32 %v6789_v29, %v6739_v50  ;;  %v7894_v37 = vld [vmem:[%s10896_s14 + $0x18] sm:$0x3]  ;;  %v7903_v50 = vld [vmem:[%s10896_s14 + $0x30] sm:$0xff] }
 0x9e9   : > { %v6713_v33 = vpop.f32.mrf.mxu2  ;;  %v6736_v56 = vpop.f32.mrf.mxu3 }
 0x9ea   : > { %v6742_v31 = vadd.f32 %v6736_v56, %v6663_v47  ;;  %v6741_v17 = vadd.f32 %v6713_v33, %v6662_v11  ;;  %v7899_v11 = vld [vmem:[%s10896_s14 + $0x28] sm:$0x3] }
 0x9ed   : > { %v6815_v26 = vpop.f32.mrf.mxu1  ;;  %v6792_v5 = vpop.f32.mrf.mxu0 }
 0x9ee   : > { %v6821_v58 = vadd.f32 %v6815_v26, %v6742_v31  ;;  %v6820_v13 = vadd.f32 %v6792_v5, %v6741_v17 }
 0x9f1   : > { %v6868_v43 = vpop.f32.mrf.mxu2  ;;  %v6891_v32 = vpop.f32.mrf.mxu3 }
 0x9f2   : > { %v6898_v28 = vadd.f32 %v6891_v32, %v6819_v4  ;;  %v6897_v20 = vadd.f32 %v6868_v43, %v6818_v21  ;;  %v7898_v43 = vld [vmem:[%s10896_s14 + $0x20] sm:$0xff]  ;;  %v7909_v32 = vld [vmem:[%s10896_s14 + $0x48] sm:$0x3] }
 0x9f5   : > { %v6970_v54 = vpop.f32.mrf.mxu1  ;;  %v6947_v38 = vpop.f32.mrf.mxu0 }
 0x9f6   : > { %v6977_v7 = vadd.f32 %v6970_v54, %v6898_v28  ;;  %v6976_v41 = vadd.f32 %v6947_v38, %v6897_v20  ;;  %v7913_v20 = vld [vmem:[%s10896_s14 + $0x50] sm:$0xff]  ;;  %v7904_v54 = vld [vmem:[%s10896_s14 + $0x38] sm:$0x3] }
 0x9f8   : > { %v6981_v23 = vmax.f32 %v6977_v7, 0.0  ;;  %v6980_v61 = vmax.f32 %v6976_v41, 0.0 }
 0x9f9   : > { %v6871_v10 = vpop.f32.mrf.mxu2  ;;  %v6894_v30 = vpop.f32.mrf.mxu3 }
 0x9fa   : > { %v6900_v19 = vadd.f32 %v6894_v30, %v6821_v58  ;;  %7038 = vrot.lane.b32.xlu0 %v6980_v61, %s8504_s26  ;;  %v8452_v9 = vpack.i.bf16 %v6981_v23, %v6980_v61  ;;  %v6899_v42 = vadd.f32 %v6871_v10, %v6820_v13 }
 0x9fc   : > { %8453 = vrot.lane.b32.xlu2 %v8452_v9, %s8510_s19 }
 0x9fd   : > { %v6973_v16 = vpop.f32.mrf.mxu1  ;;  %v6950_v27 = vpop.f32.mrf.mxu0 }
 0x9fe   : > { %v6979_v22 = vadd.f32 %v6973_v16, %v6900_v19  ;;  %v6978_v6 = vadd.f32 %v6950_v27, %v6899_v42  ;;  %v7914_v19 = vld [vmem:[%s10896_s14 + $0x58] sm:$0x3]  ;;  %v7918_v42 = vld [vmem:[%s10896_s14 + $0x60] sm:$0xff] }
 0x9ff   : > { %v7928_v16 = vld [vmem:[%s10896_s14 + $0x80] sm:$0xff] }
 0xa00   : > { %v6983_v1 = vmax.f32 %v6979_v22, 0.0  ;;  %v6982_v36 = vmax.f32 %v6978_v6, 0.0 }
 0xa02   : > { %7087 = vrot.lane.b32.xlu1 %v6983_v1, %s8511_s30  ;;  %7890 = vmatpush.msk.msra.mxu2 %vm7005_vm14, %v6982_v36 }
 0xa03   : > { %8458 = vrot.lane.b32.xlu0 %v8452_v9, %s8511_s30 }
 0xa04   : > { %7024 = vmatpush.msra.mxu2 %v6980_v61  ;;  %7181 = vrot.lane.b32.xlu2 %v6983_v1, %s8510_s19 }
 0xa05   : > { %7891 = vmatmul.msk.f32.vlgmr.msra.gmra.mxu2 %vm6998_vm15, %v6996_v3 }
 0xa0a   : > { %7275 = vrot.lane.b32.xlu1 %v6983_v1, %s11023_s22 }
 0xa0b   : > { %8463 = vrot.lane.b32.xlu0 %v8452_v9, %s11021_s1 }
 0xa0c   : > { %7134 = vrot.lane.b32.xlu2 %v6983_v1, %s11021_s1 }
 0xa0d   : > { %7892 = vmatmul.msk.f32.gmra.mxu2 %vm6998_vm15, %v6997_v2 }
 0xa12   : > { %7179 = vrot.lane.b32.xlu1 %v6982_v36, %s8510_s19 }
 0xa13   : > { %8468 = vrot.lane.b32.xlu0 %v8452_v9, %s11022_s18 }
 0xa14   : > { %7040 = vrot.lane.b32.xlu2 %v6982_v36, %s8504_s26 }
 0xa1a   : > { %7132 = vrot.lane.b32.xlu1 %v6982_v36, %s11021_s1 }
 0xa1b   : > { %7085 = vrot.lane.b32.xlu0 %v6982_v36, %s8511_s30  ;;  %s7935_s30 = sshll.u32 %s11025_s25, 4 }
 0xa1c   : > { %7228 = vrot.lane.b32.xlu2 %v6983_v1, %s11022_s18 }
 0xa22   : > { %7226 = vrot.lane.b32.xlu1 %v6982_v36, %s11022_s18  ;;  %s545_s18 = scalar_lea.vmem %s10899_s17, %s7935_s30 }
 0xa23   : > { %8478 = vrot.lane.b32.xlu0 %v8452_v9, %s11023_s22 }
 0xa24   : > { %7369 = vrot.lane.b32.xlu2 %v6983_v1, %s8515_s21 }
 0xa2a   : > { %7367 = vrot.lane.b32.xlu1 %v6982_v36, %s8515_s21 }
 0xa2b   : > { %7273 = vrot.lane.b32.xlu0 %v6982_v36, %s11023_s22 }
 0xa2c   : > { %8473 = vrot.lane.b32.xlu2 %v8452_v9, %s8515_s21 }
 0xa32   : > { %7320 = vrot.lane.b32.xlu1 %v6982_v36, %s8514_s29 }
 0xa33   : > { %8483 = vrot.lane.b32.xlu0 %v8452_v9, %s8514_s29 }
 0xa34   : > { %7322 = vrot.lane.b32.xlu2 %v6983_v1, %s8514_s29 }
 0xa3a   : > { %6993 = vperm.xlu1 %7960, %v6985_v52   ;;  %v7919_v52 = vld [vmem:[%s10896_s14 + $0x68] sm:$0x3] }
 0xa3c   : > { %6988 = vperm.xlu2 %7961, %v6984_v34   ;;  %v7923_v34 = vld [vmem:[%s10896_s14 + $0x70] sm:$0xff] }
 0xa56   : > { %v8454_v40 = vpop.permute.xlu2 %8453 }
 0xa57   : > { %v8456_v44 = vunpack.i.h.bf16 %v8454_v40  ;;  %v8455_v14 = vunpack.i.l.bf16 %v8454_v40 }
 0xa59   : > { %v7183_v39 = vsel %vm1025_vm7, %v8455_v14, %v8456_v44 }
 0xa5e   : > { %v7182_v62 = vpop.permute.xlu2 %7181 }
 0xa66   : > { %v7135_v45 = vpop.permute.xlu2 %7134 }
 0xa6c   : > { %v7039_v55 = vpop.permute.xlu0 %7038 }
 0xa6e   : > { %v7041_v48 = vpop.permute.xlu2 %7040 }
 0xa6f   : > { %7895 = vmatpush.msk.msra.mxu3 %vm7005_vm14, %v7041_v48 }
 0xa71   : > { %7066 = vmatpush.msra.mxu3 %v7039_v55 }
 0xa72   : > { %7896 = vmatmul.msk.f32.vlgmr.msra.gmra.mxu3 %vm6998_vm15, %v7893_v0 }
 0xa74   : > { %v7088_v46 = vpop.permute.xlu1 %7087 }
 0xa75   : > { %v8459_v15 = vpop.permute.xlu0 %8458 }
 0xa76   : > { %v7229_v63 = vpop.permute.xlu2 %7228  ;;  %v8461_v49 = vunpack.i.h.bf16 %v8459_v15  ;;  %v8460_v26 = vunpack.i.l.bf16 %v8459_v15 }
 0xa78   : > { %v7089_v59 = vsel %vm3529_vm10, %v8460_v26, %v8461_v49 }
 0xa7a   : > { %7897 = vmatmul.msk.f32.gmra.mxu3 %vm6998_vm15, %v7894_v37 }
 0xa7c   : > { %v7276_v29 = vpop.permute.xlu1 %7275 }
 0xa7d   : > { %v8464_v8 = vpop.permute.xlu0 %8463 }
 0xa7e   : > { %v8466_v24 = vunpack.i.h.bf16 %v8464_v8  ;;  %v8465_v35 = vunpack.i.l.bf16 %v8464_v8  ;;  %v7370_v12 = vpop.permute.xlu2 %7369 }
 0xa80   : > { %v7136_v4 = vsel %vm903_vm5, %v8465_v35, %v8466_v24 }
 0xa84   : > { %v7180_v33 = vpop.permute.xlu1 %7179 }
 0xa85   : > { %v7184_v56 = vsel %vm1025_vm7, %v7180_v33, %v7182_v62  ;;  %v8469_v53 = vpop.permute.xlu0 %8468  ;;  %v7929_v62 = vld [vmem:[%s10896_s14 + $0x88] sm:$0x3] }
 0xa86   : > { %7910 = vmatpush.msk.msrb.mxu2 %vm7005_vm14, %v7184_v56  ;;  %v8471_v47 = vunpack.i.h.bf16 %v8469_v53  ;;  %v8470_v21 = vunpack.i.l.bf16 %v8469_v53  ;;  %v8474_v7 = vpop.permute.xlu2 %8473 }
 0xa87   : > { %v8476_v41 = vunpack.i.h.bf16 %v8474_v7  ;;  %v8475_v17 = vunpack.i.l.bf16 %v8474_v7 }
 0xa88   : > { %7209 = vmatpush.msrb.mxu2 %v7183_v39  ;;  %v7230_v38 = vsel %vm3926_vm11, %v8470_v21, %v8471_v47  ;;  %v7026_v55 = vpop.f32.mrf.mxu2  ;;  %v8487_v47 = vld [vmem:[%s10898_s16] ss:$0 sm:$0xff] }
 0xa89   : > { %7911 = vmatmul.msk.f32.vlgmr.msrb.gmra.mxu2 %vm6998_vm15, %v7908_v51  ;;  %v7371_v9 = vsel %vm4324_vm13, %v8475_v17, %v8476_v41 }
 0xa8c   : > { %v7133_v5 = vpop.permute.xlu1 %7132 }
 0xa8d   : > { %v7137_v25 = vsel %vm903_vm5, %v7133_v5, %v7135_v45  ;;  %v7086_v57 = vpop.permute.xlu0 %7085  ;;  %v7924_v45 = vld [vmem:[%s10896_s14 + $0x78] sm:$0x3] }
 0xa8e   : > { %v7090_v60 = vsel %vm3529_vm10, %v7086_v57, %v7088_v46  ;;  %7905 = vmatpush.msk.msrb.mxu1 %vm7005_vm14, %v7137_v25  ;;  %v7323_v22 = vpop.permute.xlu2 %7322 }
 0xa8f   : > { %7900 = vmatpush.msk.msrb.mxu0 %vm7005_vm14, %v7090_v60 }
 0xa90   : > { %7162 = vmatpush.msrb.mxu1 %v7136_v4  ;;  %v7029_v48 = vpop.f32.mrf.mxu2 }
 0xa91   : > { %7115 = vmatpush.msrb.mxu0 %v7089_v59  ;;  %7906 = vmatmul.msk.f32.vlgmr.msrb.gmra.mxu1 %vm6998_vm15, %v7903_v50 }
 0xa92   : > { %7901 = vmatmul.msk.f32.vlgmr.msrb.gmra.mxu0 %vm6998_vm15, %v7898_v43  ;;  %7912 = vmatmul.msk.f32.gmra.mxu2 %vm6998_vm15, %v7909_v32 }
 0xa94   : > { %v7227_v28 = vpop.permute.xlu1 %7226 }
 0xa95   : > { %v7231_v18 = vsel %vm3926_vm11, %v7227_v28, %v7229_v63  ;;  %v8479_v31 = vpop.permute.xlu0 %8478 }
 0xa96   : > { %7915 = vmatpush.msk.msrb.mxu3 %vm7005_vm14, %v7231_v18  ;;  %v8481_v58 = vunpack.i.h.bf16 %v8479_v31  ;;  %v8480_v23 = vunpack.i.l.bf16 %v8479_v31  ;;  %v6989_v15 = vpop.permute.xlu2 %6988 }
 0xa98   : > { %7256 = vmatpush.msrb.mxu3 %v7230_v38  ;;  %v7277_v27 = vsel %vm1068_vm8, %v8480_v23, %v8481_v58 }
 0xa99   : > { %7916 = vmatmul.msk.f32.vlgmr.msrb.gmra.mxu3 %vm6998_vm15, %v7913_v20  ;;  %7907 = vmatmul.msk.f32.gmra.mxu1 %vm6998_vm15, %v7904_v54 }
 0xa9a   : > { %7902 = vmatmul.msk.f32.gmra.mxu0 %vm6998_vm15, %v7899_v11 }
 0xa9c   : > { %v7368_v61 = vpop.permute.xlu1 %7367 }
 0xa9d   : > { %v7372_v10 = vsel %vm4324_vm13, %v7368_v61, %v7370_v12  ;;  %v7274_v30 = vpop.permute.xlu0 %7273 }
 0xa9e   : > { %v7278_v13 = vsel %vm1068_vm8, %v7274_v30, %v7276_v29  ;;  %7930 = vmatpush.msk.msra.mxu2 %vm7005_vm14, %v7372_v10  ;;  %v7032_v29 = vadd.f32 %v7026_v55, %v6989_v15 }
 0xa9f   : > { %7920 = vmatpush.msk.msra.mxu0 %vm7005_vm14, %v7278_v13 }
 0xaa0   : > { %7397 = vmatpush.msra.mxu2 %v7371_v9 }
 0xaa1   : > { %7917 = vmatmul.msk.f32.gmra.mxu3 %vm6998_vm15, %v7914_v19  ;;  %7303 = vmatpush.msra.mxu0 %v7277_v27 }
 0xaa2   : > { %7921 = vmatmul.msk.f32.vlgmr.msra.gmra.mxu0 %vm6998_vm15, %v7918_v42  ;;  %7931 = vmatmul.msk.f32.vlgmr.msra.gmra.mxu2 %vm6998_vm15, %v7928_v16 }
 0xaa4   : > { %v7321_v6 = vpop.permute.xlu1 %7320 }
 0xaa5   : > { %v7325_v1 = vsel %vm4191_vm12, %v7321_v6, %v7323_v22  ;;  %v8484_v36 = vpop.permute.xlu0 %8483 }
 0xaa6   : > { %v8486_v3 = vunpack.i.h.bf16 %v8484_v36  ;;  %v8485_v2 = vunpack.i.l.bf16 %v8484_v36  ;;  %7925 = vmatpush.msk.msra.mxu1 %vm7005_vm14, %v7325_v1 }
 0xaa8   : > { %v7324_v40 = vsel %vm4191_vm12, %v8485_v2, %v8486_v3 }
 0xaa9   : > { %7350 = vmatpush.msra.mxu1 %v7324_v40 }
 0xaaa   : > { %7922 = vmatmul.msk.f32.gmra.mxu0 %vm6998_vm15, %v7919_v52  ;;  %7926 = vmatmul.msk.f32.vlgmr.msra.gmra.mxu1 %vm6998_vm15, %v7923_v34 }
 0xaab   : > { %7932 = vmatmul.msk.f32.gmra.mxu2 %vm6998_vm15, %v7929_v62 }
 0xaac   : > { %v6994_v56 = vpop.permute.xlu1 %6993 }
 0xaad   : > { %v7033_v53 = vadd.f32 %v7029_v48, %v6994_v56 }
 0xab2   : > { %7927 = vmatmul.msk.f32.gmra.mxu1 %vm6998_vm15, %v7924_v45 }
 0xaf5   : > { %v7068_v0 = vpop.f32.mrf.mxu3 }
 0xaf6   : > { %v7074_v14 = vadd.f32 %v7068_v0, %v7032_v29 }
 0xafd   : > { %v7071_v8 = vpop.f32.mrf.mxu3 }
 0xafe   : > { %v7075_v35 = vadd.f32 %v7071_v8, %v7033_v53 }
 0xb0c   : > { %v7211_v37 = vpop.f32.mrf.mxu2 }
 0xb0e   : > { %v7164_v44 = vpop.f32.mrf.mxu1 }
 0xb0f   : > { %v7117_v46 = vpop.f32.mrf.mxu0 }
 0xb10   : > { %v7123_v33 = vadd.f32 %v7117_v46, %v7074_v14 }
 0xb12   : > { %v7170_v51 = vadd.f32 %v7164_v44, %v7123_v33 }
 0xb14   : > { %v7217_v26 = vadd.f32 %v7211_v37, %v7170_v51 }
 0xb15   : > { %v7214_v39 = vpop.f32.mrf.mxu2 }
 0xb16   : > { %v7167_v49 = vpop.f32.mrf.mxu1 }
 0xb17   : > { %v7120_v63 = vpop.f32.mrf.mxu0 }
 0xb18   : > { %v7124_v5 = vadd.f32 %v7120_v63, %v7075_v35 }
 0xb1a   : > { %v7171_v12 = vadd.f32 %v7167_v49, %v7124_v5 }
 0xb1c   : > { %v7258_v24 = vpop.f32.mrf.mxu3  ;;  %v7218_v32 = vadd.f32 %v7214_v39, %v7171_v12 }
 0xb1d   : > { %v7264_v57 = vadd.f32 %v7258_v24, %v7217_v26 }
 0xb1f   : > { %v7305_v25 = vpop.f32.mrf.mxu0 }
 0xb20   : > { %v7311_v50 = vadd.f32 %v7305_v25, %v7264_v57 }
 0xb24   : > { %v7261_v4 = vpop.f32.mrf.mxu3 }
 0xb25   : > { %v7399_v60 = vpop.f32.mrf.mxu2  ;;  %v7265_v21 = vadd.f32 %v7261_v4, %v7218_v32 }
 0xb27   : > { %v7352_v43 = vpop.f32.mrf.mxu1  ;;  %v7308_v18 = vpop.f32.mrf.mxu0 }
 0xb28   : > { %v7358_v59 = vadd.f32 %v7352_v43, %v7311_v50  ;;  %v7312_v20 = vadd.f32 %v7308_v18, %v7265_v21 }
 0xb2a   : > { %v7405_v28 = vadd.f32 %v7399_v60, %v7358_v59 }
 0xb2c   : > { %v7411_v31 = vmul.f32 %v8487_v47, %v7405_v28 }
 0xb2e   : > { %v7414_v54 = vsel %vm7413_vm0, %v7411_v31, 0.0  ;;  %v7402_v11 = vpop.f32.mrf.mxu2 }
 0xb2f   : > { %v7355_v38 = vpop.f32.mrf.mxu1  ;;  %7415 = vadd.xlane.f32.xlu1 %v7414_v54 }
 0xb30   : > { %v7359_v7 = vadd.f32 %v7355_v38, %v7312_v20 }
 0xb32   : > { %v7406_v41 = vadd.f32 %v7402_v11, %v7359_v7 }
 0xb34   : > { %v7412_v17 = vmul.f32 %v8487_v47, %v7406_v41 }
 0xb36   : > { %v7418_v58 = vsel %vm7417_vm1, %v7412_v17, 0.0 }
 0xb37   : > { %7419 = vadd.xlane.f32.xlu0 %v7418_v58 }
 0xba2   : > { %v7416_v61 = vpop.xlane.xlu1 %7415 }
 0xbaa   : > { %v7420_v23 = vpop.xlane.xlu0 %7419 }
 0xbab   : > { %v7421_v10 = vsel %vm7005_vm14, %v7420_v23, -inf }
 0xbac   : > { %v7422_v30 = vmax.f32 %v7416_v61, %v7421_v10 }
 0xbae   : > { %v7423_v13 = vrot.slane %v7422_v30, 4 }
 0xbb0   : > { %v7424_v19 = vmax.f32 %v7422_v30, %v7423_v13 }
 0xbb2   : > { %v7425_v9 = vrot.slane %v7424_v19, 2 }
 0xbb4   : > { %v7426_v42 = vmax.f32 %v7424_v19, %v7425_v9 }
 0xbb6   : > { %v7427_v16 = vrot.slane %v7426_v42, 1 }
 0xbb8   : > { %v7428_v27 = vmax.f32 %v7426_v42, %v7427_v16 }
 0xbba   : > { %v7429_v22 = vsub.f32 %v7416_v61, %v7428_v27  ;;  %v7430_v6 = vsub.f32 %v7420_v23, %v7428_v27 }
 0xbbc   : > { %v7431_v1 = vmul.f32 1.442695, %v7429_v22  ;;  %v7433_v36 = vmul.f32 1.442695, %v7430_v6 }
 0xbbe   : > { %8488 = vpow2.f32 %v7431_v1 }
 0xbbf   : > { %8490 = vpow2.f32 %v7433_v36 }
 0xbc4   : > { %v8489_v3 = vpop.eup %8488 }
 0xbc5   : > { %v8491_v2 = vpop.eup %8490 }
 0xbc6   : > { %v7435_v52 = vsel %vm7005_vm14, %v8491_v2, 0.0 }
 0xbc7   : > { %v7436_v34 = vadd.f32 %v8489_v3, %v7435_v52 }
 0xbc9   : > { %v7437_v40 = vrot.slane %v7436_v34, 4 }
 0xbcb   : > { %v7438_v62 = vadd.f32 %v7437_v40, %v7436_v34 }
 0xbcd   : > { %v7439_v45 = vrot.slane %v7438_v62, 2 }
 0xbcf   : > { %v7440_v55 = vadd.f32 %v7439_v45, %v7438_v62 }
 0xbd1   : > { %v7441_v48 = vrot.slane %v7440_v55, 1 }
 0xbd3   : > { %v7442_v0 = vadd.f32 %v7441_v48, %v7440_v55 }
 0xbd5   : > { %8492 = vlog2.f32 %v7442_v0 }
 0xbdb   : > { %v8493_v46 = vpop.eup %8492 }
 0xbdc   : > { %v7444_v15 = vmul.f32 0.6931472, %v8493_v46 }
 0xbde   : > { %v7445_v37 = vadd.f32 %v7444_v15, %v7428_v27 }
 0xbe0   : > { %v7446_v29 = vsub.f32 %v7416_v61, %v7445_v37  ;;  %v7447_v8 = vsub.f32 %v7420_v23, %v7445_v37 }
 0xbe2   : > { %7449 = vst.msk [vmem:[%s545_s18] sm:$0xff] %vm7448_vm2, %v7446_v29 }
 0xbe3   : > { %7451 = vst.msk [vmem:[%s545_s18 + $0x8] sm:$0x3] %vm7450_vm3, %v7447_v8 }
 0xbe4 PF: > { %s27_s24 = sadd.s32 1, %s8500_s24  }
 0xbe5   : > { %p24_p4 = scmp.ge.s32.totalorder %s27_s24, 4  }
 0xbe7   :  { %26 = sbr.rel (!%p24_p4) target bundleno = 3 (0x3), region = 174 }

</bundles_post_ra>
